<compile_context>
chip_gen: v7x
topology: tpu7x:2x2x1
jax: 0.10.0
libtpu: 0.0.40
codegen_flags: <defaults>
</compile_context>

<pallas_src>
import functools

import jax
import jax.numpy as jnp
import numpy as np
from jax.experimental import pallas as pl
from jax.experimental.pallas import tpu as pltpu

KSIZE = 7
PAD = KSIZE // 2
_HP = jax.lax.Precision.HIGHEST


def _cbam_kernel(x_ref, w1t_ref, w2t_ref, a_avg_ref, a_max_ref, o_ref, *,
                 bf16_elementwise):
    # x_ref     : (Bt, C, HW)  VMEM  (HW = H*W, lane-dense last dim)
    # w1t_ref   : (C, Cr)      VMEM  (shared-MLP conv1x1 #1 weight, transposed)
    # w2t_ref   : (Cr, C)      VMEM  (shared-MLP conv1x1 #2 weight, transposed)
    # a_avg_ref : (HW, HW)     VMEM  banded 7x7-conv matrix (avg map, zero-pad folded in)
    # a_max_ref : (HW, HW)     VMEM  banded 7x7-conv matrix (max map, zero-pad folded in)
    # o_ref     : (Bt, C, HW)  VMEM
    x_in = x_ref[...]                                     # HBM dtype
    xf = x_in.astype(jnp.float32)
    Bt, C, HW = xf.shape

    # ---------------- channel attention (tiny batched MLP on the MXU) ----------------
    avg_c = jnp.sum(xf, axis=2) * (1.0 / HW)              # (Bt, C)  AdaptiveAvgPool2d(1)
    max_c = jnp.max(xf, axis=2)                           # (Bt, C)  AdaptiveMaxPool2d(1)
    pooled = jnp.concatenate([avg_c, max_c], axis=0)      # (2*Bt, C)
    hid = jnp.maximum(
        jnp.dot(pooled, w1t_ref[...], preferred_element_type=jnp.float32,
                precision=_HP), 0.0)
    mlp = jnp.dot(hid, w2t_ref[...], preferred_element_type=jnp.float32,
                  precision=_HP)                          # (2*Bt, C)
    ch_att = jax.nn.sigmoid(mlp[:Bt] + mlp[Bt:])          # (Bt, C)  f32

    # Big elementwise passes stay in bf16 for bf16 inputs (packed-bf16 VALU on
    # v6e/v7x -> 2x element throughput, half the vreg/VMEM traffic); f32 otherwise.
    x_ew = x_in if bf16_elementwise else xf
    ew_dtype = x_ew.dtype
    x_ca = x_ew * ch_att.astype(ew_dtype)[:, :, None]     # (Bt, C, HW)

    # ---------------- spatial attention (7x7 conv as one MXU GEMM) ----------------
    x_ca_f32 = x_ca.astype(jnp.float32)
    avg_s = jnp.sum(x_ca_f32, axis=1) * (1.0 / C)         # (Bt, HW) mean over channels
    max_s = jnp.max(x_ca_f32, axis=1)                     # (Bt, HW) max  over channels
    conv = (jnp.dot(avg_s, a_avg_ref[...], preferred_element_type=jnp.float32,
                    precision=_HP)
            + jnp.dot(max_s, a_max_ref[...], preferred_element_type=jnp.float32,
                      precision=_HP))                     # (Bt, HW)
    sp_att = jax.nn.sigmoid(conv)                         # (Bt, HW)

    o_ref[...] = (x_ca * sp_att.astype(ew_dtype)[:, None, :]).astype(o_ref.dtype)


def _build_conv_matrices(wsp, H, W):
    """Banded (HW, HW) matrices A_avg, A_max such that

        conv_flat = avg_s @ A_avg + max_s @ A_max

    exactly reproduces Conv2d(2, 1, 7, padding=3, bias=False) with zero padding
    on the flattened (row-major) H*W maps.  Built trace-safely from `wsp`."""
    HW = H * W
    K = KSIZE
    wsp_flat = jnp.asarray(wsp, jnp.float32).reshape(2, K * K)

    r = np.arange(H)[:, None]
    c = np.arange(W)[None, :]
    p_out = np.broadcast_to(r * W + c, (H, W))            # output flat index
    rows, cols, taps = [], [], []
    for i in range(K):
        for j in range(K):
            rq = r + i - PAD
            cq = c + j - PAD
            valid = (rq >= 0) & (rq < H) & (cq >= 0) & (cq < W)
            q_in = np.broadcast_to(rq * W + cq, (H, W))    # input flat index
            rows.append(q_in[valid])
            cols.append(p_out[valid])
            taps.append(np.full(int(valid.sum()), i * K + j, dtype=np.int32))
    rows = np.concatenate(rows).astype(np.int32)
    cols = np.concatenate(cols).astype(np.int32)
    taps = np.concatenate(taps)

    a_avg = jnp.zeros((HW, HW), jnp.float32).at[rows, cols].set(wsp_flat[0, taps])
    a_max = jnp.zeros((HW, HW), jnp.float32).at[rows, cols].set(wsp_flat[1, taps])
    return a_avg, a_max


def _choose_batch_tile(B, C, HW, itemsize, budget_bytes):
    """Largest batch tile (divisor of B) whose real VMEM footprint fits the budget."""
    # Per image: 2x double-buffered in + 2x out blocks in HBM dtype, plus ~3 live
    # f32 copies inside the kernel (x_f32, x_ca, pre-store value).
    per_image = max(C * HW * (4 * itemsize + 3 * 4), 1)
    bt = max(1, min(B, budget_bytes // per_image))
    if bt >= 8:
        bt -= bt % 8                      # fill sublanes / MXU rows
    while B % bt:
        bt -= 1
    # Always keep >= 2 grid steps when B > 1: dimension_semantics=("parallel",)
    # only shards across the two v7x TensorCores if the grid has >= 2 steps, and
    # an extra grid step only costs ~0.35 us.
    if bt == B and B > 1:
        bt = B // 2
        while B % bt:
            bt -= 1
    return bt


def cbam_pallas(x, w1, w2, wsp):
    B, C, H, W = x.shape
    Cr = w1.shape[0]
    HW = H * W

    x2 = x.reshape(B, C, HW)                       # free (contiguous) HBM-level view
    w1t = jnp.asarray(w1, jnp.float32).T           # (C, Cr)
    w2t = jnp.asarray(w2, jnp.float32).T           # (Cr, C)
    a_avg, a_max = _build_conv_matrices(wsp, H, W)  # (HW, HW) x2, fetched once

    # TODO(synk): for very large feature maps (8*HW^2 bytes approaching VMEM) fall
    # back to a rolled/masked VPU conv instead of the banded-matrix GEMM.
    a_bytes = 2 * 2 * HW * HW * 4                  # both matrices, double-buffered
    budget = max(12 * 1024 * 1024 - a_bytes, 1 * 1024 * 1024)
    Bt = _choose_batch_tile(B, C, HW, x.dtype.itemsize, budget_bytes=budget)
    grid = (B // Bt,)

    kernel = functools.partial(
        _cbam_kernel, bf16_elementwise=(x.dtype == jnp.bfloat16))
    out = pl.pallas_call(
        kernel,
        out_shape=jax.ShapeDtypeStruct((B, C, HW), x.dtype),
        grid=grid,
        in_specs=[
            pl.BlockSpec((Bt, C, HW), lambda b: (b, 0, 0)),
            pl.BlockSpec((C, Cr), lambda b: (0, 0)),
            pl.BlockSpec((Cr, C), lambda b: (0, 0)),
            pl.BlockSpec((HW, HW), lambda b: (0, 0)),
            pl.BlockSpec((HW, HW), lambda b: (0, 0)),
        ],
        out_specs=pl.BlockSpec((Bt, C, HW), lambda b: (b, 0, 0)),
        compiler_params=pltpu.CompilerParams(
            dimension_semantics=("parallel",),
            vmem_limit_bytes=32 * 1024 * 1024),
    )(x2, w1t, w2t, a_avg, a_max)
    return out.reshape(B, C, H, W)


def cbam_ref(x, w1, w2, wsp):
    """Pure-JAX reference matching the PyTorch CBAM.forward semantics."""
    avg = jnp.mean(x, axis=(2, 3))                 # (B, C)
    mx = jnp.max(x, axis=(2, 3))                   # (B, C)

    def mlp(v):
        h = jnp.maximum(jnp.dot(v, w1.T, precision=_HP), 0.0)
        return jnp.dot(h, w2.T, precision=_HP)

    ch = jax.nn.sigmoid(mlp(avg) + mlp(mx))[:, :, None, None]
    xc = x * ch
    avg_s = jnp.mean(xc, axis=1, keepdims=True)
    max_s = jnp.max(xc, axis=1, keepdims=True)
    inp = jnp.concatenate([avg_s, max_s], axis=1)  # (B, 2, H, W)
    conv = jax.lax.conv_general_dilated(
        inp, wsp[None], window_strides=(1, 1),
        padding=[(PAD, PAD), (PAD, PAD)],
        dimension_numbers=("NCHW", "OIHW", "NCHW"),
        precision=_HP)
    return xc * jax.nn.sigmoid(conv)


if __name__ == "__main__":
    B, C, H, W = 2, 32, 16, 16
    reduction = 16
    Cr = C // reduction                            # = 2

    key = jax.random.PRNGKey(0)
    kx, k1, k2, k3 = jax.random.split(key, 4)
    x = jax.random.normal(kx, (B, C, H, W), dtype=jnp.float32)
    w1 = 0.3 * jax.random.normal(k1, (Cr, C), dtype=jnp.float32)       # Conv2d(C, C//r, 1)
    w2 = 0.3 * jax.random.normal(k2, (C, Cr), dtype=jnp.float32)       # Conv2d(C//r, C, 1)
    wsp = 0.2 * jax.random.normal(k3, (2, KSIZE, KSIZE), jnp.float32)  # Conv2d(2, 1, 7)

    out = cbam_pallas(x, w1, w2, wsp)
    out = jax.block_until_ready(out)

    ref = cbam_ref(x, w1, w2, wsp)
    np.testing.assert_allclose(np.asarray(out), np.asarray(ref),
                               rtol=1e-4, atol=1e-4)
    print("KERNEL_OK")
</pallas_src>

<mosaic_0001>
module attributes {stable_mosaic.version = 11 : i64} {
  func.func @_cbam_kernel(%arg0: i32, %arg1: memref<1x32x256xf32, #tpu.memory_space<vmem>>, %arg2: memref<32x2xf32, #tpu.memory_space<vmem>>, %arg3: memref<2x32xf32, #tpu.memory_space<vmem>>, %arg4: memref<256x256xf32, #tpu.memory_space<vmem>>, %arg5: memref<256x256xf32, #tpu.memory_space<vmem>>, %arg6: memref<1x32x256xf32, #tpu.memory_space<vmem>>) attributes {dimension_semantics = [#tpu.dimension_semantics<parallel>], iteration_bounds = array<i64: 2>, scalar_prefetch = 0 : i64, scratch_operands = 0 : i64, tpu.core_type = #tpu.core_type<tc>, window_params = [{transform_indices = @transform_0, window_bounds = array<i64: 1, 32, 256>}, {pipeline_mode = #tpu.pipeline_mode<synchronous>, transform_indices = @transform_1, window_bounds = array<i64: 32, 2>}, {pipeline_mode = #tpu.pipeline_mode<synchronous>, transform_indices = @transform_2, window_bounds = array<i64: 2, 32>}, {pipeline_mode = #tpu.pipeline_mode<synchronous>, transform_indices = @transform_3, window_bounds = array<i64: 256, 256>}, {pipeline_mode = #tpu.pipeline_mode<synchronous>, transform_indices = @transform_4, window_bounds = array<i64: 256, 256>}, {transform_indices = @transform_5, window_bounds = array<i64: 1, 32, 256>}]} {
    %c0 = arith.constant 0 : index
    %c0_0 = arith.constant 0 : index
    %c0_1 = arith.constant 0 : index
    %0 = vector.load %arg1[%c0, %c0_0, %c0_1] : memref<1x32x256xf32, #tpu.memory_space<vmem>>, vector<1x32x256xf32>
    %cst = arith.constant dense<0.000000e+00> : vector<1x32xf32>
    %1 = vector.multi_reduction <add>, %0, %cst [2] : vector<1x32x256xf32> to vector<1x32xf32>
    %cst_2 = arith.constant 3.906250e-03 : f32
    %2 = vector.broadcast %cst_2 : f32 to vector<1x32xf32>
    %3 = arith.mulf %1, %2 : vector<1x32xf32>
    %cst_3 = arith.constant dense<0xFF800000> : vector<1x32xf32>
    %4 = vector.multi_reduction <maximumf>, %0, %cst_3 [2] : vector<1x32x256xf32> to vector<1x32xf32>
    %5 = tpu.concatenate %3, %4 in 0 : vector<1x32xf32>, vector<1x32xf32> -> vector<2x32xf32>
    %c0_4 = arith.constant 0 : index
    %c0_5 = arith.constant 0 : index
    %6 = vector.load %arg2[%c0_4, %c0_5] : memref<32x2xf32, #tpu.memory_space<vmem>>, vector<32x2xf32>
    %cst_6 = arith.constant dense<0.000000e+00> : vector<2x2xf32>
    %7 = tpu.matmul %5, %6, %cst_6 {dimension_numbers = #tpu.dot_dimension_numbers<[1], [0], [0], [1], [0, 0, 1, 1], [], []>, precision = #tpu.contract_precision<fp32>} : vector<2x32xf32>, vector<32x2xf32>, vector<2x2xf32> -> vector<2x2xf32>
    %cst_7 = arith.constant 0.000000e+00 : f32
    %8 = vector.broadcast %cst_7 : f32 to vector<2x2xf32>
    %9 = arith.maximumf %7, %8 : vector<2x2xf32>
    %c0_8 = arith.constant 0 : index
    %c0_9 = arith.constant 0 : index
    %10 = vector.load %arg3[%c0_8, %c0_9] : memref<2x32xf32, #tpu.memory_space<vmem>>, vector<2x32xf32>
    %cst_10 = arith.constant dense<0.000000e+00> : vector<2x32xf32>
    %11 = tpu.matmul %9, %10, %cst_10 {dimension_numbers = #tpu.dot_dimension_numbers<[1], [0], [0], [1], [0, 0, 1, 1], [], []>, precision = #tpu.contract_precision<fp32>} : vector<2x2xf32>, vector<2x32xf32>, vector<2x32xf32> -> vector<2x32xf32>
    %12 = vector.extract_strided_slice %11 {offsets = [0, 0], sizes = [1, 32], strides = [1, 1]} : vector<2x32xf32> to vector<1x32xf32>
    %13 = vector.extract_strided_slice %11 {offsets = [1, 0], sizes = [1, 32], strides = [1, 1]} : vector<2x32xf32> to vector<1x32xf32>
    %14 = arith.addf %12, %13 : vector<1x32xf32>
    %15 = arith.negf %14 : vector<1x32xf32>
    %16 = math.exp %15 : vector<1x32xf32>
    %cst_11 = arith.constant 1.000000e+00 : f32
    %17 = vector.broadcast %cst_11 : f32 to vector<1x32xf32>
    %18 = arith.addf %17, %16 : vector<1x32xf32>
    %19 = arith.divf %17, %18 : vector<1x32xf32>
    %20 = vector.shape_cast %19 : vector<1x32xf32> to vector<1x32x1xf32>
    %21 = vector.broadcast %20 : vector<1x32x1xf32> to vector<1x32x256xf32>
    %22 = arith.mulf %0, %21 : vector<1x32x256xf32>
    %cst_12 = arith.constant dense<0.000000e+00> : vector<1x256xf32>
    %23 = vector.multi_reduction <add>, %22, %cst_12 [1] : vector<1x32x256xf32> to vector<1x256xf32>
    %cst_13 = arith.constant 3.125000e-02 : f32
    %24 = vector.broadcast %cst_13 : f32 to vector<1x256xf32>
    %25 = arith.mulf %23, %24 : vector<1x256xf32>
    %cst_14 = arith.constant dense<0xFF800000> : vector<1x256xf32>
    %26 = vector.multi_reduction <maximumf>, %22, %cst_14 [1] : vector<1x32x256xf32> to vector<1x256xf32>
    %c0_15 = arith.constant 0 : index
    %c0_16 = arith.constant 0 : index
    %27 = vector.load %arg4[%c0_15, %c0_16] : memref<256x256xf32, #tpu.memory_space<vmem>>, vector<256x256xf32>
    %cst_17 = arith.constant dense<0.000000e+00> : vector<1x256xf32>
    %28 = tpu.matmul %25, %27, %cst_17 {dimension_numbers = #tpu.dot_dimension_numbers<[1], [0], [0], [1], [0, 0, 1, 1], [], []>, precision = #tpu.contract_precision<fp32>} : vector<1x256xf32>, vector<256x256xf32>, vector<1x256xf32> -> vector<1x256xf32>
    %c0_18 = arith.constant 0 : index
    %c0_19 = arith.constant 0 : index
    %29 = vector.load %arg5[%c0_18, %c0_19] : memref<256x256xf32, #tpu.memory_space<vmem>>, vector<256x256xf32>
    %cst_20 = arith.constant dense<0.000000e+00> : vector<1x256xf32>
    %30 = tpu.matmul %26, %29, %cst_20 {dimension_numbers = #tpu.dot_dimension_numbers<[1], [0], [0], [1], [0, 0, 1, 1], [], []>, precision = #tpu.contract_precision<fp32>} : vector<1x256xf32>, vector<256x256xf32>, vector<1x256xf32> -> vector<1x256xf32>
    %31 = arith.addf %28, %30 : vector<1x256xf32>
    %32 = arith.negf %31 : vector<1x256xf32>
    %33 = math.exp %32 : vector<1x256xf32>
    %cst_21 = arith.constant 1.000000e+00 : f32
    %34 = vector.broadcast %cst_21 : f32 to vector<1x256xf32>
    %35 = arith.addf %34, %33 : vector<1x256xf32>
    %36 = arith.divf %34, %35 : vector<1x256xf32>
    %37 = vector.shape_cast %36 : vector<1x256xf32> to vector<1x1x256xf32>
    %38 = vector.broadcast %37 : vector<1x1x256xf32> to vector<1x32x256xf32>
    %39 = arith.mulf %22, %38 : vector<1x32x256xf32>
    %c0_22 = arith.constant 0 : index
    %c0_23 = arith.constant 0 : index
    %c0_24 = arith.constant 0 : index
    %40 = vector.load %arg6[%c0_22, %c0_23, %c0_24] : memref<1x32x256xf32, #tpu.memory_space<vmem>>, vector<1x32x256xf32>
    tpu.vector_store %arg6[%c0_22, %c0_23, %c0_24], %39 {strides = array<i32>} : memref<1x32x256xf32, #tpu.memory_space<vmem>>, vector<1x32x256xf32>,
    return
  }
  func.func @transform_0(%arg0: i32) -> (i32, i32, i32) {
    %c0_i32 = arith.constant 0 : i32
    %c0_i32_0 = arith.constant 0 : i32
    %c0_i32_1 = arith.constant 0 : i32
    return %arg0, %c0_i32, %c0_i32_0 : i32, i32, i32
  }
  func.func @transform_1(%arg0: i32) -> (i32, i32) {
    %c0_i32 = arith.constant 0 : i32
    %c0_i32_0 = arith.constant 0 : i32
    %c0_i32_1 = arith.constant 0 : i32
    return %c0_i32, %c0_i32_0 : i32, i32
  }
  func.func @transform_2(%arg0: i32) -> (i32, i32) {
    %c0_i32 = arith.constant 0 : i32
    %c0_i32_0 = arith.constant 0 : i32
    %c0_i32_1 = arith.constant 0 : i32
    return %c0_i32, %c0_i32_0 : i32, i32
  }
  func.func @transform_3(%arg0: i32) -> (i32, i32) {
    %c0_i32 = arith.constant 0 : i32
    %c0_i32_0 = arith.constant 0 : i32
    %c0_i32_1 = arith.constant 0 : i32
    return %c0_i32, %c0_i32_0 : i32, i32
  }
  func.func @transform_4(%arg0: i32) -> (i32, i32) {
    %c0_i32 = arith.constant 0 : i32
    %c0_i32_0 = arith.constant 0 : i32
    %c0_i32_1 = arith.constant 0 : i32
    return %c0_i32, %c0_i32_0 : i32, i32
  }
  func.func @transform_5(%arg0: i32) -> (i32, i32, i32) {
    %c0_i32 = arith.constant 0 : i32
    %c0_i32_0 = arith.constant 0 : i32
    %c0_i32_1 = arith.constant 0 : i32
    return %arg0, %c0_i32, %c0_i32_0 : i32, i32, i32
  }
}

</mosaic_0001>

<bundles_post_ra>
// kernel: tpu_custom_call.1
= control target key start
LH: loop header
LB: loop body
LE: loop exit
PB: predicated region body
PF: predicated region fallthrough
CT: control target
= control target key end

     0   :  { %10 = vsyncpa [#allocation3], 0  ;;  %s8111_s0 = inlined_call_operand.hbm [shape: f32[2,32,256], index: 0, kind: input, shape index: {}]   ;;  %s8112_s1 = inlined_call_operand.vmem [shape: f32[32,2], index: 1, kind: input, shape index: {}]   ;;  %s8113_s2 = inlined_call_operand.vmem [shape: f32[2,32], index: 2, kind: input, shape index: {}]   ;;  %s8114_s3 = inlined_call_operand.hbm [shape: f32[256,256], index: 3, kind: input, shape index: {}]   ;;  %s8115_s4 = inlined_call_operand.hbm [shape: f32[256,256], index: 4, kind: input, shape index: {}]   ;;  %s8116_s5 = inlined_call_operand.hbm [shape: f32[2,32,256], index: 5, kind: output, shape index: {}]  }
   0x1   :  { %12 = vsyncpa [#allocation3 + $0x1], 0 }
   0x2   :  { %13 = vsyncpa [#allocation6], 0 }
   0x3   :  { %14 = vsyncpa [#allocation4], 0 }
   0x4   :  { %16 = vsyncpa [#allocation4 + $0x1], 0  ;;  %s5527_s18 = smov 0   ;;  %s5529_s19 = smov 0  }
   0x5   :  { %s5531_s20 = smov 0   ;;  %s5533_s21 = smov 0  }
   0x6 LB: > { %s5548_s22 = sadd.s32 4294967295, %s5484_s21   ;;  %s4228_s23 = sadd.s32 4294967294, %s5484_s21   ;;  %s5484_s21 = sphi %s5533_s21, %s9618_s21   ;;  %s5480_s20 = sphi %s5531_s20, %s9617_s20   ;;  %s5476_s19 = sphi %s5529_s19, %s9616_s19   ;;  %s5472_s18 = sphi %s5527_s18, %s9615_s18  }
   0x7   : > { %p42_p0 = scmp.ne.s32.totalorder %s5476_s19, %s5472_s18  ;;  %p8117_p1 = scmp.eq.s32.totalorder %s5548_s22, 0 }
   0x8   : > { %p156_p3 = scmp.eq.s32.totalorder %s4228_s23, 1  ;;  %p4229_p5 = scmp.ge.s32.totalorder %s5484_s21, 1 }
   0x9   : > { %p5557_p4 = por %p8117_p1, %p42_p0  ;;  %p163_p7 = scmp.lt.s32.totalorder %s5484_s21, 3 }
   0xa   : > { %p5562_p6 = por %p156_p3, %p42_p0  ;;  %s5486_s27 = smov [#allocation5]  }
   0xb   : > { %s8570_s24 = scalar_select %p5557_p4, 1, 0 }
   0xc   : > { %s8571_s25 = scalar_select %p5562_p6, 1, 0 }
   0xd   : > { %p5567_p8 = pnand %p4229_p5, %p163_p7  ;;  %s181_s28 = sshll.u32 %s5486_s27, 4  ;;  %s5571_s28 = int_to_ptr.vmem [resolvable:$true] %s181_s28 }
   0xe   : > { %s5487_s30 = smov [#allocation7]   ;;  %s5328_s9 = scalar_lea.hbm %s8114_s3, 8192 }
   0xf   : > { %p5246_p9 = pneg %p5567_p8  ;;  %s194_s6 = sshll.u32 %s5487_s30, 4  ;;  %s5582_s6 = int_to_ptr.vmem [resolvable:$true] %s194_s6 }
  0x10   : > { %p5329_p12 = scmp.ne.s32.totalorder %s8114_s3, %s5328_s9  ;;  %p5335_p5 = scmp.lt.u32.totalorder %s5328_s9, %s8114_s3 }
  0x11   : > { %p5578_p11 = pnand %p5246_p9, %p8117_p1 }
  0x13   : > { %p5330_p13 = pneg %p5578_p11 }
  0x15   : > { %p5331_p0 = pnand %p5330_p13, %p5329_p12 }
  0x17   : > { %p5332_p3 = pneg %p5331_p0 }
  0x19   : > { %p5337_p7 = pnand %p5335_p5, %p5332_p3 }
  0x1b   : > { %5340 = shalt.err (!%p5337_p7)
}
  0x1c   : > { %s5341_s14 = scalar_lea.vmem %s5571_s28, 8192  ;;  %p5349_p2 = scmp.lt.s32.totalorder %s5571_s28, %s5571_s28 }
  0x1d   : > { %p5342_p9 = scmp.ne.s32.totalorder %s5571_s28, %s5341_s14  ;;  %p5350_p12 = scmp.lt.s32.totalorder %s5341_s14, %s5341_s14 }
  0x1f   : > { %p5344_p10 = pnand %p5342_p9, %p5330_p13  ;;  %p5351_p0 = por %p5350_p12, %p5349_p2 }
  0x21   : > { %p5345_p1 = pneg %p5344_p10 }
  0x23   : > { %p5352_p6 = pnand %p5351_p0, %p5345_p1 }
  0x25   : > { %5355 = shalt.err (!%p5352_p6)
}
  0x26   : > { %s5488_s15 = smov 256   ;;  %s5489_s16 = smov 16  }
  0x27   : > { %5249 = dma.hbm_to_vmem [thread:$0]  (!%p5578_p11), %s8114_s3, 8192, %s5571_s28, [#allocation6], %s5488_s15, %s5488_s15, %s5489_s16  }
  0x28   : > { %s5356_s7 = scalar_lea.hbm %s8115_s4, 8192 }
  0x29   : > { %p5357_p1 = scmp.ne.s32.totalorder %s8115_s4, %s5356_s7  ;;  %p5363_p10 = scmp.lt.u32.totalorder %s5356_s7, %s8115_s4 }
  0x2b   : > { %p5359_p2 = pnand %p5357_p1, %p5330_p13 }
  0x2d   : > { %p5360_p6 = pneg %p5359_p2 }
  0x2f   : > { %p5365_p3 = pnand %p5363_p10, %p5360_p6 }
  0x31   : > { %5368 = shalt.err (!%p5365_p3)
}
  0x32   : > { %s5369_s28 = scalar_lea.vmem %s5582_s6, 8192  ;;  %p5377_p12 = scmp.lt.s32.totalorder %s5582_s6, %s5582_s6 }
  0x33   : > { %p5370_p5 = scmp.ne.s32.totalorder %s5582_s6, %s5369_s28  ;;  %p5378_p0 = scmp.lt.s32.totalorder %s5369_s28, %s5369_s28 }
  0x35   : > { %p5372_p7 = pnand %p5370_p5, %p5330_p13  ;;  %p5379_p1 = por %p5378_p0, %p5377_p12 }
  0x37   : > { %p5373_p9 = pneg %p5372_p7 }
  0x39   : > { %p5380_p2 = pnand %p5379_p1, %p5373_p9 }
  0x3b   : > { %5383 = shalt.err (!%p5380_p2)
}
  0x3c   : > { %5252 = dma.hbm_to_vmem [thread:$0]  (!%p5578_p11), %s8115_s4, 8192, %s5582_s6, [#allocation6], %s5488_s15, %s5488_s15, %s5489_s16  }
  0x3d   : > { %s5643_s29 = sadd.s32 1, %s5484_s21   ;;  %s29_s14 = sadd.s32 1, %s5480_s20 }
  0x3e   : > { %s26_s17 = ssub.s32 %s5484_s21, %s5643_s29  ;;  %p36_p13 = scmp.ne.s32.totalorder %s5480_s20, %s5476_s19 }
  0x3f   : > { %p27_p6 = scmp.eq.s32.totalorder %s26_s17, 0  ;;  %p37_p10 = scmp.eq.s32.totalorder %s5484_s21, 0 }
  0x40   : > { %p8574_p3 = scmp.eq.s32.totalorder %s5548_s22, 1  ;;  %p5263_p7 = scmp.lt.s32.totalorder %s5484_s21, 2 }
  0x41   : > { %s5659_s27 = scalar_select %p27_p6, %s5480_s20, %s29_s14  }
  0x42   : > { %p5653_p5 = por %p8574_p3, %p36_p13  ;;  %p38_p9 = por %p37_p10, %p36_p13 }
  0x43   : > { %s208_s30 = sand.u32 1, %s5480_s20   ;;  %s4249_s6 = sshll.u32 %s5484_s21, 10 }
  0x44   : > { %s8575_s23 = scalar_select %p5653_p5, 1, 0 }
  0x45   : > { %s4233_s7 = sshll.u32 %s208_s30, 6  ;;  %s5666_s10 = scalar_lea.hbm %s8111_s0, %s4249_s6 }
  0x46   : > { %s212_s11 = scalar_lea.vmem [#allocation2], %s4233_s7  ;;  %p5670_p11 = pnand %p5263_p7, %p38_p9 }
  0x47   : > { %s219_s28 = sshll.u32 %s212_s11, 4  ;;  %s5674_s13 = scalar_lea.sflag [#allocation3], %s208_s30  ;;  %s5668_s28 = int_to_ptr.vmem [resolvable:$true] %s219_s28 }
  0x48   : > { %s5384_s14 = scalar_lea.hbm %s5666_s10, 1024  ;;  %p5386_p0 = pneg %p5670_p11 }
  0x49   : > { %p5385_p12 = scmp.ne.s32.totalorder %s5666_s10, %s5384_s14  ;;  %s5389_s6 = scalar_lea.hbm %s8111_s0, 2048 }
  0x4a   : > { %p5390_p13 = scmp.lt.u32.totalorder %s5666_s10, %s8111_s0  ;;  %p5391_p6 = scmp.lt.u32.totalorder %s5389_s6, %s5384_s14 }
  0x4b   : > { %p5387_p1 = pnand %p5386_p0, %p5385_p12  ;;  %p5393_p3 = scmp.lt.u32.totalorder %s5384_s14, %s5666_s10 }
  0x4c   : > { %p5392_p10 = por %p5391_p6, %p5390_p13 }
  0x4d   : > { %p5388_p2 = pneg %p5387_p1 }
  0x4e   : > { %p5394_p7 = por %p5393_p3, %p5392_p10 }
  0x50   : > { %p5395_p9 = pnand %p5394_p7, %p5388_p2 }
  0x52   : > { %5398 = shalt.err (!%p5395_p9)
}
  0x53   : > { %s5399_s30 = scalar_lea.vmem %s5668_s28, 1024  ;;  %s5490_s11 = smov [#allocation2]  }
  0x54   : > { %p5400_p12 = scmp.ne.s32.totalorder %s5668_s28, %s5399_s30  ;;  %s5404_s17 = sshll.u32 %s5490_s11, 4  ;;  %s5405_s17 = int_to_ptr.vmem [resolvable:$false] %s5404_s17 }
  0x55   : > { %s5406_s7 = scalar_lea.vmem %s5405_s17, 2048  ;;  %p5407_p4 = scmp.lt.s32.totalorder %s5668_s28, %s5405_s17 }
  0x56   : > { %p5402_p1 = pnand %p5400_p12, %p5386_p0  ;;  %p5408_p13 = scmp.lt.s32.totalorder %s5406_s7, %s5399_s30 }
  0x58   : > { %p5403_p5 = pneg %p5402_p1  ;;  %p5409_p6 = por %p5408_p13, %p5407_p4 }
  0x5a   : > { %p5410_p10 = pnand %p5409_p6, %p5403_p5 }
  0x5c   : > { %5413 = shalt.err (!%p5410_p10)
}
  0x5d   : > { %5256 = dma.hbm_to_vmem [thread:$0]  (!%p5670_p11), %s5666_s10, 1024, %s5668_s28, %s5674_s13, %s5488_s15, %s5488_s15, %s5489_s16  }
  0x5e   : > { %231 = sbr.rel (%p5567_p8) target bundleno = 1553 (0x611), region = 40 }
  0x65   : > { %s5708_s14 = sand.u32 1, %s5476_s19   ;;  %p8577_p4 = scmp.ne.s32.totalorder %s8570_s24, 0 }
  0x66   : > { %s4237_s6 = sshll.u32 %s5708_s14, 6  ;;  %s234_s8 = scalar_lea.sflag [#allocation3], %s5708_s14 }
  0x67   : > { %s5714_s12 = scalar_lea.vmem [#allocation2], %s4237_s6 }
  0x68   : > { %5459 = dma.done.wait (%p8577_p4), %s234_s8, 1024  }
  0x69   : > { %5461 = vsyncadd (%p8577_p4), %s234_s8, 4294966272  ;;  %p8578_p5 = scmp.eq.s32.totalorder %s5548_s22, 0 }
  0x6b   : > { %5463 = dma.done.wait (%p8578_p5), [#allocation6], 16384   ;;  %p8579_p8 = pmov %p8578_p5 }
  0x6c   : > { %v276_v0 = vld [vmem:[%s5714_s12 + $0x20] sm:$0xff]  ;;  %v277_v1 = vld [vmem:[%s5714_s12 + $0x28] sm:$0xff]  ;;  %v278_v5 = vld [vmem:[%s5714_s12 + $0x30] sm:$0xff]  ;;  %v5491_v36 = vmov 0.0|0.0   ;;  %vm5492_vm0 = vmmov 0   ;;  %v5493_v43 = vmov 0.0   ;;  %v312_v50 = vlaneseq }
  0x6d   : > { %5465 = vsyncadd (%p8579_p8), [#allocation6], 4294950912  ;;  %v272_v2 = vld [vmem:[%s5714_s12] sm:$0xff]  ;;  %v286_v3 = vadd.f32 %v277_v1, %v276_v0  ;;  %v273_v4 = vld [vmem:[%s5714_s12 + $0x8] sm:$0xff]  ;;  %v302_v15 = vmax.f32 %v276_v0, %v277_v1  ;;  %4395 = vmatprep.subr.bf16.mxu0 %v5491_v36  ;;  %4389 = vmatprep.subr.bf16.mxu1 %v5491_v36  ;;  %vm323_vm1 = vcmask 130112   ;;  %vm330_vm2 = vcmask 195712  }
  0x6e   : > { %v279_v6 = vld [vmem:[%s5714_s12 + $0x38] sm:$0xff]  ;;  %v280_v7 = vadd.f32 %v273_v4, %v272_v2  ;;  %v274_v8 = vld [vmem:[%s5714_s12 + $0x10] sm:$0xff]  ;;  %v296_v13 = vmax.f32 %v272_v2, %v273_v4  ;;  %v366_v16 = vld [vmem:[%s8112_s1] sm:$0xff]  ;;  %4312 = vmatprep.mubr.msk.f32.mxu0 %vm5492_vm0, %v5493_v43  ;;  %4301 = vmatprep.mubr.msk.f32.mxu1 %vm5492_vm0, %v5493_v43  ;;  %v313_v51 = vand.u32 127, %v312_v50  ;;  %v5784_v54 = vshrl.u32 %v312_v50, 7  ;;  %s4250_s17 = sshll.u32 %s5548_s22, 10 }
  0x6f   : > { %v275_v9 = vld [vmem:[%s5714_s12 + $0x18] sm:$0xff]  ;;  %287 = vadd.xlane.f32.xlu1 %v286_v3  ;;  %v289_v10 = vadd.f32 %v279_v6, %v278_v5  ;;  %v305_v14 = vmax.f32 %v278_v5, %v279_v6  ;;  %v367_v17 = vld [vmem:[%s8112_s1 + $0x8] sm:$0xff]  ;;  %v375_v18 = vand.u32 4294901760, %v366_v16  ;;  %v368_v22 = vld [vmem:[%s8112_s1 + $0x10] sm:$0xff]  ;;  %vm337_vm3 = vcmask 261312   ;;  %s271_s7 = scalar_lea.vmem [#allocation8], %s4237_s6  ;;  %s8061_s22 = scalar_lea.hbm %s8116_s5, %s4250_s17 }
  0x70   : > { %281 = vadd.xlane.f32.xlu0 %v280_v7  ;;  %v283_v11 = vadd.f32 %v275_v9, %v274_v8  ;;  %v299_v12 = vmax.f32 %v274_v8, %v275_v9  ;;  %v378_v19 = vand.u32 4294901760, %v367_v17  ;;  %v369_v23 = vld [vmem:[%s8112_s1 + $0x18] sm:$0xff]  ;;  %v381_v26 = vand.u32 4294901760, %v368_v22  ;;  %s4136_s8 = sshll.u32 %s271_s7, 4  ;;  %s4123_s6 = scalar_lea.sflag [#allocation4], %s5708_s14  ;;  %s8063_s8 = int_to_ptr.vmem [resolvable:$true] %s4136_s8 }
  0x71   : > { %v5738_v20 = vsub.f32 %v366_v16, %v375_v18  ;;  %v384_v27 = vand.u32 4294901760, %v369_v23  ;;  %v318_v53 = vadd.s32 4294967288, %v313_v51  ;;  %v325_v56 = vadd.s32 4294967280, %v313_v51  ;;  %v1457_v50 = vld [vmem:[#allocation7 + $0x18] sm:$0xff]  ;;  %s5414_s26 = scalar_lea.vmem %s8063_s8, 1024  ;;  %p9612_p0 = scmp.ne.s32.totalorder %s8575_s23, 0 }
  0x72   : > { %v5740_v21 = vsub.f32 %v367_v17, %v378_v19  ;;  %v5752_v30 = vsub.f32 %v368_v22, %v381_v26  ;;  %v5768_v45 = vpack.c.bf16 %v378_v19, %v375_v18  ;;  %v316_v59 = vsub.s32 %v313_v51, %v5784_v54  ;;  %p5415_p11 = scmp.ne.s32.totalorder %s8063_s8, %s5414_s26  ;;  %s5494_s15 = smov [#allocation8]  }
  0x73   : > { %290 = vadd.xlane.f32.xlu1 %v289_v10  ;;  %v456_v24 = vand.u32 4294901760, %v5738_v20  ;;  %v5754_v31 = vsub.f32 %v369_v23, %v384_v27  ;;  %v5776_v47 = vpack.c.bf16 %v384_v27, %v381_v26  ;;  %v321_v58 = vsub.s32 %v318_v53, %v5784_v54  ;;  %s5418_s16 = sshll.u32 %s5494_s15, 4  ;;  %s5419_s16 = int_to_ptr.vmem [resolvable:$false] %s5418_s16 }
  0x74   : > { %284 = vadd.xlane.f32.xlu0 %v283_v11  ;;  %v463_v25 = vand.u32 4294901760, %v5740_v21  ;;  %v470_v34 = vand.u32 4294901760, %v5752_v30  ;;  %v4402_v44 = vpack.c.bf16 %v5740_v21, %v5738_v20  ;;  %4391 = vmatpush3.bf16.msra.mxu1 %v5768_v45  ;;  %v332_v61 = vadd.s32 4294967272, %v313_v51  ;;  %v1391_v51 = vld [vmem:[#allocation5 + $0x8] sm:$0xff]  ;;  %p5416_p2 = pnand %p5415_p11, %p9612_p0  ;;  %s5420_s10 = scalar_lea.vmem %s5419_s16, 2048 }
  0x75   : > { %v457_v28 = vsub.f32 %v5738_v20, %v456_v24  ;;  %v477_v35 = vand.u32 4294901760, %v5754_v31  ;;  %4392 = vmatprep.subr.bf16.mxu1 %v5491_v36  ;;  %v4405_v46 = vpack.c.bf16 %v5754_v31, %v5752_v30  ;;  %v328_v0 = vsub.s32 %v325_v56, %v5784_v54  ;;  %p5421_p7 = scmp.lt.s32.totalorder %s8063_s8, %s5419_s16  ;;  %p5422_p9 = scmp.lt.s32.totalorder %s5420_s10, %s5414_s26 }
  0x76   : > { %v464_v29 = vsub.f32 %v5740_v21, %v463_v25  ;;  %v471_v38 = vsub.f32 %v5752_v30, %v470_v34  ;;  %v5780_v48 = vpack.c.bf16 %v463_v25, %v456_v24  ;;  %v335_v5 = vsub.s32 %v332_v61, %v5784_v54  ;;  %p5417_p3 = pneg %p5416_p2 }
  0x77   : > { %300 = vmax.xlane.f32.xlu1 %v299_v12  ;;  %v458_v32 = vand.u32 4294901760, %v457_v28  ;;  %v478_v39 = vsub.f32 %v5754_v31, %v477_v35  ;;  %v5782_v49 = vpack.c.bf16 %v477_v35, %v470_v34  ;;  %vm364_vm4 = vcmask 1040384   ;;  %p5423_p12 = por %p5422_p9, %p5421_p7 }
  0x78   : > { %297 = vmax.xlane.f32.xlu0 %v296_v13  ;;  %v465_v33 = vand.u32 4294901760, %v464_v29  ;;  %v472_v40 = vand.u32 4294901760, %v471_v38  ;;  %4394 = vmatpush3.bf16.msra.mxu1 %v5776_v47  ;;  %vm370_vm5 = vcmask 261120   ;;  %v860_v29 = vld [vmem:[%s8113_s2] sm:$0x3]  ;;  %vm865_vm6 = vcmask 1041408  }
  0x79   : > { %v479_v41 = vand.u32 4294901760, %v478_v39  ;;  %4359 = vmatprep.subr.mxu1 %v5493_v43  ;;  %v867_v30 = vsel %vm865_vm6, %v860_v29, 0  ;;  %vm861_vm7 = vcmask 15360   ;;  %v1522_v53 = vand.u32 4294901760, %v1457_v50  ;;  %v1399_v29 = vld [vmem:[#allocation5 + $0x48] sm:$0xff]  ;;  %p5424_p1 = pnand %p5423_p12, %p5417_p3 }
  0x7a   : > { %v4396_v37 = vpack.c.bf16 %v465_v33, %v458_v32  ;;  %v870_v31 = vand.u32 4294901760, %v867_v30  ;;  %v2802_v56 = vand.u32 4294901760, %v1391_v51 }
  0x7b   : > { %306 = vmax.xlane.f32.xlu1 %v305_v14  ;;  %v4399_v42 = vpack.c.bf16 %v479_v41, %v472_v40 }
  0x7c   : > { %303 = vmax.xlane.f32.xlu0 %v302_v15  ;;  %4397 = vmatpush3.bf16.msra.mxu0 %v4396_v37  ;;  %v947_v38 = vsub.f32 %v867_v30, %v870_v31 }
  0x7d   : > { %4398 = vmatprep.subr.bf16.mxu0 %v5491_v36 }
  0x7e   : > { %v948_v40 = vand.u32 4294901760, %v947_v38 }
  0x80   : > { %4400 = vmatpush3.bf16.msra.mxu0 %v4399_v42 }
  0x81   : > { %4401 = vmatprep.subr.bf16.mxu0 %v5491_v36 }
  0xfc   : > { %v288_v52 = vpop.xlane.xlu1 %287 }
  0xfd   : > { %v282_v55 = vpop.xlane.xlu0 %281  ;;  %v294_v1 = vmul.f32 0.00390625, %v288_v52 }
  0xfe   : > { %v292_v60 = vmul.f32 0.00390625, %v282_v55  ;;  %v1393_v55 = vld [vmem:[#allocation5 + $0x18] sm:$0xff] }
  0xff   : > { %v329_v11 = vrot.slane %v294_v1, %v328_v0 }
 0x100   : > { %v291_v57 = vpop.xlane.xlu1 %290  ;;  %v317_v4 = vrot.slane %v292_v60, %v316_v59 }
 0x101   : > { %v285_v62 = vpop.xlane.xlu0 %284  ;;  %v295_v6 = vmul.f32 0.00390625, %v291_v57  ;;  %v1454_v57 = vld [vmem:[#allocation7] sm:$0xff] }
 0x102   : > { %v293_v63 = vmul.f32 0.00390625, %v285_v62  ;;  %v1520_v60 = vand.u32 4294901760, %v1454_v57  ;;  %v1390_v62 = vld [vmem:[#allocation5] sm:$0xff] }
 0x103   : > { %v336_v13 = vrot.slane %v295_v6, %v335_v5  ;;  %v1397_v6 = vld [vmem:[#allocation5 + $0x38] sm:$0xff] }
 0x104   : > { %v322_v2 = vrot.slane %v293_v63, %v321_v58  ;;  %v301_v3 = vpop.xlane.xlu1 %300  ;;  %v1392_v63 = vld [vmem:[#allocation5 + $0x10] sm:$0xff] }
 0x105   : > { %v298_v7 = vpop.xlane.xlu0 %297  ;;  %v351_v9 = vrot.slane %v301_v3, %v321_v58  ;;  %v1456_v58 = vld [vmem:[#allocation7 + $0x10] sm:$0xff]  ;;  %v5839_v3 = vsub.f32 %v1391_v51, %v2802_v56 }
 0x106   : > { %v324_v8 = vsel %vm323_vm1, %v322_v2, %v317_v4  ;;  %v347_v10 = vrot.slane %v298_v7, %v316_v59  ;;  %v2806_v59 = vand.u32 4294901760, %v1393_v55  ;;  %v1524_v61 = vand.u32 4294901760, %v1456_v58  ;;  %v1461_v4 = vld [vmem:[#allocation7 + $0x38] sm:$0xff]  ;;  %v1400_v51 = vld [vmem:[#allocation5 + $0x50] sm:$0xff] }
 0x107   : > { %v331_v16 = vsel %vm330_vm2, %v329_v11, %v324_v8  ;;  %8583 = vst [vmem:[#allocation15_spill] sm:$0xff] %v5839_v3  ;;  %v1458_v11 = vld [vmem:[#allocation7 + $0x20] sm:$0xff] }
 0x108   : > { %v307_v12 = vpop.xlane.xlu1 %306  ;;  %v352_v18 = vsel %vm323_vm1, %v351_v9, %v347_v10  ;;  %v338_v20 = vsel %vm337_vm3, %v336_v13, %v331_v16  ;;  %v5841_v7 = vpack.c.bf16 %v2806_v59, %v2802_v56  ;;  %v5843_v8 = vsub.f32 %v1393_v55, %v2806_v59  ;;  %v1460_v16 = vld [vmem:[#allocation7 + $0x30] sm:$0xff]  ;;  %v1403_v59 = vld [vmem:[#allocation5 + $0x68] sm:$0xff] }
 0x109   : > { %v304_v14 = vpop.xlane.xlu0 %303  ;;  %v361_v15 = vrot.slane %v307_v12, %v335_v5  ;;  %v1395_v5 = vld [vmem:[#allocation5 + $0x28] sm:$0xff]  ;;  %v5845_v9 = vpack.c.bf16 %v1524_v61, %v1520_v60  ;;  %v5847_v10 = vsub.f32 %v1454_v57, %v1520_v60  ;;  %v5850_v12 = vsub.f32 %v1456_v58, %v1524_v61  ;;  %v1469_v58 = vld [vmem:[#allocation7 + $0x78] sm:$0xff] }
 0x10a   : > { %v356_v17 = vrot.slane %v304_v14, %v328_v0  ;;  %v1459_v0 = vld [vmem:[#allocation7 + $0x28] sm:$0xff]  ;;  %8584 = vst [vmem:[#allocation16_spill] sm:$0xff] %v5841_v7  ;;  %8585 = vst [vmem:[#allocation17_spill] sm:$0xff] %v5843_v8  ;;  %v2804_v13 = vand.u32 4294901760, %v1390_v62  ;;  %v2808_v14 = vand.u32 4294901760, %v1392_v63  ;;  %v1405_v60 = vld [vmem:[#allocation5 + $0x78] sm:$0xff] }
 0x10b   : > { %8586 = vst [vmem:[#allocation18_spill] sm:$0xff] %v5845_v9  ;;  %8587 = vst [vmem:[#allocation19_spill] sm:$0xff] %v5847_v10 }
 0x10c   : > { %v357_v19 = vsel %vm330_vm2, %v356_v17, %v352_v18  ;;  %8588 = vst [vmem:[#allocation20_spill] sm:$0xff] %v5850_v12  ;;  %v1530_v17 = vand.u32 4294901760, %v1461_v4  ;;  %v2810_v18 = vand.u32 4294901760, %v1395_v5 }
 0x10d   : > { %v362_v21 = vsel %vm337_vm3, %v361_v15, %v357_v19  ;;  %v1526_v15 = vand.u32 4294901760, %v1459_v0  ;;  %v2814_v19 = vand.u32 4294901760, %v1397_v6 }
 0x10e   : > { %v365_v22 = vsel %vm364_vm4, %v338_v20, %v362_v21  ;;  %v1528_v20 = vand.u32 4294901760, %v1458_v11  ;;  %v1394_v21 = vld [vmem:[#allocation5 + $0x20] sm:$0xff] }
 0x10f   : > { %v372_v23 = vsel %vm370_vm5, %v365_v22, 0  ;;  %v1396_v22 = vld [vmem:[#allocation5 + $0x30] sm:$0xff]  ;;  %v5862_v30 = vpack.c.bf16 %v1530_v17, %v1526_v15 }
 0x110   : > { %v443_v24 = vand.u32 4294901760, %v372_v23 }
 0x111   : > { %8593 = vst [vmem:[#allocation25_spill] sm:$0xff] %v5862_v30 }
 0x112   : > { %4313 = vmatmul.mubr.f32.vlgmr.msra.gmra.mrb[0].mxu0 %v443_v24  ;;  %v444_v25 = vsub.f32 %v372_v23, %v443_v24  ;;  %v5854_v23 = vpack.c.bf16 %v2808_v14, %v2804_v13 }
 0x113   : > { %4403 = vmatpush3.bf16.msra.mxu0 %v4402_v44  ;;  %4323 = vmatprep.mubr.msk.f32.mxu0 %vm5492_vm0, %v5493_v43  ;;  %v949_v44 = vsub.f32 %v947_v38, %v948_v40 }
 0x114   : > { %4404 = vmatprep.subr.bf16.mxu0 %v5491_v36  ;;  %v445_v26 = vand.u32 4294901760, %v444_v25  ;;  %8589 = vst [vmem:[#allocation21_spill] sm:$0xff] %v5854_v23 }
 0x116   : > { %v446_v27 = vsub.f32 %v444_v25, %v445_v26 }
 0x117   : > { %4406 = vmatpush3.bf16.msra.mxu0 %v4405_v46 }
 0x118   : > { %4407 = vmatprep.subr.bf16.mxu0 %v5491_v36  ;;  %v447_v28 = vand.u32 4294901760, %v446_v27  ;;  %v1463_v27 = vld [vmem:[#allocation7 + $0x48] sm:$0xff] }
 0x11a   : > { %4302 = vmatmul.mubr.f32.vlgmr.msra.gmra.mrb[0].mxu1 %v447_v28  ;;  %4324 = vmatmul.mubr.f32.vlgmr.msra.gmra.mrb[0].mxu0 %v444_v25  ;;  %v5858_v25 = vsub.f32 %v1392_v63, %v2808_v14  ;;  %v1465_v28 = vld [vmem:[#allocation7 + $0x58] sm:$0xff]  ;;  %v1546_v14 = vand.u32 4294901760, %v1469_v58 }
 0x11b   : > { %4409 = vmatpush3.bf16.msra.mxu0 %v5768_v45  ;;  %4334 = vmatprep.mubr.msk.f32.mxu0 %vm5492_vm0, %v5493_v43 }
 0x11c   : > { %4410 = vmatprep.subr.bf16.mxu0 %v5491_v36  ;;  %4361 = vmatprep.mubr.msk.f32.mxu1 %vm5492_vm0, %v5493_v43  ;;  %8591 = vst [vmem:[#allocation23_spill] sm:$0xff] %v5858_v25  ;;  %v6356_v25 = vld [vmem:[#allocation7 + $0x1d0] sm:$0xff] }
 0x11d   : > { %4360 = vmatpush3.msra.mxu1 %v870_v31 }
 0x11e   : > { %4364 = vmatprep.subr.mxu1 %v5493_v43 }
 0x11f   : > { %4412 = vmatpush3.bf16.msra.mxu0 %v5776_v47 }
 0x120   : > { %4413 = vmatprep.subr.bf16.mxu0 %v5491_v36 }
 0x122   : > { %4335 = vmatmul.mubr.f32.vlgmr.msra.gmra.mrb[0].mxu0 %v445_v26  ;;  %v5860_v26 = vsub.f32 %v1459_v0, %v1526_v15  ;;  %v2826_v15 = vand.u32 4294901760, %v1403_v59 }
 0x123   : > { %4415 = vmatpush3.bf16.msra.mxu0 %v5780_v48  ;;  %4345 = vmatprep.mubr.msk.f32.mxu0 %vm5492_vm0, %v5493_v43 }
 0x124   : > { %4416 = vmatprep.subr.bf16.mxu0 %v5491_v36  ;;  %8592 = vst [vmem:[#allocation24_spill] sm:$0xff] %v5860_v26  ;;  %v6354_v26 = vld [vmem:[#allocation7 + $0x1c0] sm:$0xff] }
 0x125   : > { %8746 = vst [vmem:[#allocation141_spill] sm:$0xff] %v6354_v26 }
 0x127   : > { %4418 = vmatpush3.bf16.msra.mxu0 %v5782_v49  ;;  %v1455_v49 = vld [vmem:[#allocation7 + $0x8] sm:$0xff] }
 0x128   : > { %4419 = vmatprep.subr.bf16.mxu0 %v5491_v36  ;;  %v1518_v52 = vand.u32 4294901760, %v1455_v49 }
 0x12a   : > { %4346 = vmatmul.mubr.f32.vlgmr.msra.gmra.mrb[0].mxu0 %v443_v24  ;;  %v5833_v1 = vpack.c.bf16 %v1522_v53, %v1518_v52  ;;  %v5835_v2 = vsub.f32 %v1455_v49, %v1518_v52  ;;  %v1467_v52 = vld [vmem:[#allocation7 + $0x68] sm:$0xff] }
 0x12b   : > { %4421 = vmatpush3.bf16.msra.mxu0 %v5768_v45  ;;  %4356 = vmatprep.mubr.msk.f32.mxu0 %vm5492_vm0, %v5493_v43 }
 0x12c   : > { %4422 = vmatprep.subr.bf16.mxu0 %v5491_v36  ;;  %8580 = vst [vmem:[#allocation12_spill] sm:$0xff] %v5833_v1  ;;  %8581 = vst [vmem:[#allocation13_spill] sm:$0xff] %v5835_v2 }
 0x12f   : > { %4424 = vmatpush3.bf16.msra.mxu0 %v5776_v47  ;;  %v950_v47 = vand.u32 4294901760, %v949_v44  ;;  %v1462_v44 = vld [vmem:[#allocation7 + $0x40] sm:$0xff] }
 0x130   : > { %4426 = vmatprep.subr.bf16.mxu0 %v5833_v1 }
 0x132   : > { %4357 = vmatmul.mubr.f32.vlgmr.msra.gmra.mrb[0].mxu0 %v443_v24  ;;  %v5856_v24 = vsub.f32 %v1390_v62, %v2804_v13  ;;  %v1542_v13 = vand.u32 4294901760, %v1467_v52 }
 0x133   : > { %4428 = vmatpush1.bf16.msra.mxu0 %v5845_v9 }
 0x134   : > { %8590 = vst [vmem:[#allocation22_spill] sm:$0xff] %v5856_v24  ;;  %4430 = vmatprep.subr.bf16.mxu0 %v5862_v30  ;;  %v1411_v30 = vld [vmem:[#allocation5 + $0xa8] sm:$0xff] }
 0x1ed   : > { %v449_v32 = vpop.f32.mrb[0].mxu1 }
 0x1ee   : > { %v4303_v33 = vpop.f32.mrb[1].mxu1 }
 0x1ef   : > { %v5868_v33 = vsub.f32 %v1395_v5, %v2810_v18 }
 0x1f1   : > { %8596 = vst [vmem:[#allocation28_spill] sm:$0xff] %v5868_v33 }
 0x205   : > { %v855_v34 = vpop.f32.mrb[0].mxu0 }
 0x206   : > { %v5193_v35 = vadd.f32 %v855_v34, %v449_v32  ;;  %v4358_v37 = vpop.f32.mrb[1].mxu0  ;;  %v5866_v32 = vpack.c.bf16 %v2814_v19, %v2810_v18  ;;  %v1401_v34 = vld [vmem:[#allocation5 + $0x58] sm:$0xff] }
 0x207   : > { %v1532_v37 = vand.u32 4294901760, %v1460_v16  ;;  %v2822_v49 = vand.u32 4294901760, %v1401_v34 }
 0x208   : > { %v859_v36 = vmax.f32 %v5193_v35, 0.0  ;;  %8595 = vst [vmem:[#allocation27_spill] sm:$0xff] %v5866_v32  ;;  %v5871_v35 = vsub.f32 %v1397_v6, %v2814_v19 }
 0x209   : > { %v5898_v0 = vsub.f32 %v1401_v34, %v2822_v49 }
 0x20a   : > { %v863_v39 = vsel %vm861_vm7, %v859_v36, 0  ;;  %8597 = vst [vmem:[#allocation29_spill] sm:$0xff] %v5871_v35  ;;  %v2812_v36 = vand.u32 4294901760, %v1394_v21  ;;  %v6339_v35 = vld [vmem:[#allocation7 + $0x1d8] sm:$0xff] }
 0x20b   : > { %v935_v41 = vand.u32 4294901760, %v863_v39  ;;  %8609 = vst [vmem:[#allocation41_spill] sm:$0xff] %v5898_v0 }
 0x20d   : > { %v936_v42 = vsub.f32 %v863_v39, %v935_v41  ;;  %v2816_v39 = vand.u32 4294901760, %v1396_v22 }
 0x20f   : > { %v937_v45 = vand.u32 4294901760, %v936_v42  ;;  %v5885_v55 = vsub.f32 %v1396_v22, %v2816_v39  ;;  %v1468_v22 = vld [vmem:[#allocation7 + $0x70] sm:$0xff] }
 0x211   : > { %v938_v46 = vsub.f32 %v936_v42, %v937_v45  ;;  %8603 = vst [vmem:[#allocation35_spill] sm:$0xff] %v5885_v55 }
 0x213   : > { %v939_v48 = vand.u32 4294901760, %v938_v46  ;;  %v5877_v46 = vpack.c.bf16 %v1532_v37, %v1528_v20 }
 0x215   : > { %4362 = vmatmul.mubr.f32.vlgmr.msra.gmra.mrb[2].mxu1 %v939_v48  ;;  %8599 = vst [vmem:[#allocation31_spill] sm:$0xff] %v5877_v46  ;;  %v5881_v48 = vsub.f32 %v1394_v21, %v2812_v36  ;;  %4432 = vmatpush1.bf16.msra.mxu0 %v5877_v46 }
 0x216   : > { %4365 = vmatpush3.msra.mxu1 %v950_v47  ;;  %4366 = vmatprep.mubr.msk.f32.mxu1 %vm5492_vm0, %v5493_v43  ;;  %v5879_v47 = vsub.f32 %v1460_v16, %v1532_v37  ;;  %v2830_v16 = vand.u32 4294901760, %v1405_v60  ;;  %v5915_v37 = vpack.c.bf16 %v1546_v14, %v1542_v13 }
 0x217   : > { %4369 = vmatprep.subr.mxu1 %v5493_v43  ;;  %8601 = vst [vmem:[#allocation33_spill] sm:$0xff] %v5881_v48  ;;  %v6303_v48 = vld [vmem:[#allocation5 + $0x1a0] sm:$0xff] }
 0x218   : > { %8600 = vst [vmem:[#allocation32_spill] sm:$0xff] %v5879_v47  ;;  %8616 = vst [vmem:[#allocation48_spill] sm:$0xff] %v5915_v37  ;;  %v8747_v24 = vand.u32 4294901760, %v6303_v48 }
 0x21d   : > { %4367 = vmatmul.mubr.f32.vlgmr.msra.gmra.mrb[2].mxu1 %v935_v41 }
 0x21e   : > { %4370 = vmatpush3.msra.mxu1 %v947_v38  ;;  %4371 = vmatprep.mubr.msk.f32.mxu1 %vm5492_vm0, %v5493_v43  ;;  %v5873_v38 = vsub.f32 %v1458_v11, %v1528_v20  ;;  %v2824_v11 = vand.u32 4294901760, %v1400_v51 }
 0x21f   : > { %4374 = vmatprep.subr.mxu1 %v5493_v43 }
 0x220   : > { %8598 = vst [vmem:[#allocation30_spill] sm:$0xff] %v5873_v38  ;;  %v5913_v34 = vsub.f32 %v1400_v51, %v2824_v11  ;;  %v1548_v51 = vand.u32 4294901760, %v1468_v22 }
 0x222   : > { %8615 = vst [vmem:[#allocation47_spill] sm:$0xff] %v5913_v34  ;;  %v6060_v34 = vld [vmem:[#allocation7 + $0x128] sm:$0xff] }
 0x223   : > { %v8749_v8 = vand.u32 4294901760, %v6060_v34 }
 0x225   : > { %4372 = vmatmul.mubr.f32.vlgmr.msra.gmra.mrb[2].mxu1 %v936_v42  ;;  %v2818_v42 = vand.u32 4294901760, %v1399_v29  ;;  %v6368_v3 = vsub.f32 %v6060_v34, %v8749_v8 }
 0x226   : > { %4375 = vmatpush3.msra.mxu1 %v870_v31  ;;  %4376 = vmatprep.mubr.msk.f32.mxu1 %vm5492_vm0, %v5493_v43 }
 0x227   : > { %4379 = vmatprep.subr.mxu1 %v5493_v43  ;;  %v5894_v62 = vpack.c.bf16 %v2822_v49, %v2818_v42  ;;  %v5896_v63 = vsub.f32 %v1399_v29, %v2818_v42  ;;  %v5921_v42 = vsub.f32 %v1469_v58, %v1546_v14  ;;  %v1470_v14 = vld [vmem:[#allocation7 + $0x80] sm:$0xff]  ;;  %8750 = vst [vmem:[#allocation143_spill] sm:$0xff] %v6368_v3 }
 0x229   : > { %8607 = vst [vmem:[#allocation39_spill] sm:$0xff] %v5894_v62  ;;  %8608 = vst [vmem:[#allocation40_spill] sm:$0xff] %v5896_v63 }
 0x22a   : > { %8618 = vst [vmem:[#allocation50_spill] sm:$0xff] %v5921_v42 }
 0x22d   : > { %4377 = vmatmul.mubr.f32.vlgmr.msra.gmra.mrb[2].mxu1 %v937_v45  ;;  %v1464_v45 = vld [vmem:[#allocation7 + $0x50] sm:$0xff] }
 0x22e   : > { %4380 = vmatpush3.msra.mxu1 %v948_v40  ;;  %4381 = vmatprep.mubr.msk.f32.mxu1 %vm5492_vm0, %v5493_v43  ;;  %v1534_v40 = vand.u32 4294901760, %v1463_v27  ;;  %v1540_v5 = vand.u32 4294901760, %v1464_v45 }
 0x22f   : > { %4384 = vmatprep.subr.mxu1 %v5493_v43 }
 0x230   : > { %v5889_v57 = vsub.f32 %v1463_v27, %v1534_v40  ;;  %v5907_v20 = vsub.f32 %v1464_v45, %v1540_v5  ;;  %v1402_v27 = vld [vmem:[#allocation5 + $0x60] sm:$0xff]  ;;  %v5925_v45 = vsub.f32 %v1403_v59, %v2826_v15 }
 0x231   : > { %v1406_v59 = vld [vmem:[#allocation5 + $0x80] sm:$0xff] }
 0x232   : > { %8605 = vst [vmem:[#allocation37_spill] sm:$0xff] %v5889_v57  ;;  %8612 = vst [vmem:[#allocation44_spill] sm:$0xff] %v5907_v20  ;;  %v6294_v57 = vld [vmem:[#allocation7 + $0x1a0] sm:$0xff] }
 0x233   : > { %8620 = vst [vmem:[#allocation52_spill] sm:$0xff] %v5925_v45  ;;  %v1424_v45 = vld [vmem:[#allocation5 + $0x110] sm:$0xff]  ;;  %v8872_v3 = vld [vmem:[#allocation40_spill] sm:$0xff] }
 0x235   : > { %4382 = vmatmul.mubr.f32.vlgmr.msra.gmra.mrb[2].mxu1 %v935_v41 }
 0x236   : > { %4385 = vmatpush3.msra.mxu1 %v870_v31  ;;  %4386 = vmatprep.mubr.msk.f32.mxu1 %vm5492_vm0, %v5493_v43  ;;  %v5837_v43 = vsub.f32 %v1457_v50, %v1522_v53  ;;  %v5864_v31 = vsub.f32 %v1461_v4, %v1530_v17  ;;  %v1398_v50 = vld [vmem:[#allocation5 + $0x40] sm:$0xff]  ;;  %v5883_v53 = vpack.c.bf16 %v2816_v39, %v2812_v36  ;;  %v1536_v4 = vand.u32 4294901760, %v1462_v44  ;;  %v1471_v39 = vld [vmem:[#allocation7 + $0x88] sm:$0xff] }
 0x237   : > { %4810 = vmatprep.subr.bf16.mxu1 %v5841_v7  ;;  %v2820_v6 = vand.u32 4294901760, %v1398_v50  ;;  %v1466_v17 = vld [vmem:[#allocation7 + $0x60] sm:$0xff]  ;;  %v5917_v36 = vsub.f32 %v1467_v52, %v1542_v13  ;;  %v2828_v52 = vand.u32 4294901760, %v1402_v27 }
 0x238   : > { %8582 = vst [vmem:[#allocation14_spill] sm:$0xff] %v5837_v43  ;;  %8594 = vst [vmem:[#allocation26_spill] sm:$0xff] %v5864_v31  ;;  %v5903_v18 = vpack.c.bf16 %v1540_v5, %v1536_v4  ;;  %v5905_v19 = vsub.f32 %v1462_v44, %v1536_v4  ;;  %v5923_v44 = vpack.c.bf16 %v2830_v16, %v2826_v15  ;;  %v1544_v49 = vand.u32 4294901760, %v1466_v17  ;;  %v1409_v5 = vld [vmem:[#allocation5 + $0x98] sm:$0xff] }
 0x239   : > { %8602 = vst [vmem:[#allocation34_spill] sm:$0xff] %v5883_v53  ;;  %v5909_v21 = vpack.c.bf16 %v2824_v11, %v2820_v6  ;;  %v5911_v29 = vsub.f32 %v1398_v50, %v2820_v6  ;;  %8617 = vst [vmem:[#allocation49_spill] sm:$0xff] %v5917_v36  ;;  %v5928_v50 = vsub.f32 %v1405_v60, %v2830_v16  ;;  %v1550_v11 = vand.u32 4294901760, %v1471_v39 }
 0x23a   : > { %8610 = vst [vmem:[#allocation42_spill] sm:$0xff] %v5903_v18  ;;  %8611 = vst [vmem:[#allocation43_spill] sm:$0xff] %v5905_v19  ;;  %v5931_v6 = vsub.f32 %v1466_v17, %v1544_v49  ;;  %v5933_v15 = vpack.c.bf16 %v1548_v51, %v1544_v49  ;;  %v5939_v16 = vsub.f32 %v1402_v27, %v2828_v52  ;;  %v1552_v27 = vand.u32 4294901760, %v1470_v14 }
 0x23b   : > { %8613 = vst [vmem:[#allocation45_spill] sm:$0xff] %v5909_v21  ;;  %8614 = vst [vmem:[#allocation46_spill] sm:$0xff] %v5911_v29  ;;  %v6248_v29 = vld [vmem:[#allocation5 + $0x180] sm:$0xff]  ;;  %v1634_v31 = vand.u32 4294901760, %v6339_v35 }
 0x23c   : > { %8619 = vst [vmem:[#allocation51_spill] sm:$0xff] %v5923_v44  ;;  %8621 = vst [vmem:[#allocation53_spill] sm:$0xff] %v5928_v50  ;;  %v8733_v55 = vand.u32 4294901760, %v6248_v29 }
 0x23d   : > { %4387 = vmatmul.mubr.f32.vlgmr.msra.gmra.mrb[2].mxu1 %v935_v41  ;;  %v1538_v41 = vand.u32 4294901760, %v1465_v28  ;;  %8622 = vst [vmem:[#allocation54_spill] sm:$0xff] %v5931_v6  ;;  %8623 = vst [vmem:[#allocation55_spill] sm:$0xff] %v5933_v15 }
 0x23e   : > { %4812 = vmatpush1.bf16.msra.mxu1 %v5854_v23  ;;  %8626 = vst [vmem:[#allocation58_spill] sm:$0xff] %v5939_v16  ;;  %v1410_v23 = vld [vmem:[#allocation5 + $0xa0] sm:$0xff] }
 0x23f   : > { %4814 = vmatprep.subr.bf16.mxu1 %v5866_v32  ;;  %v5887_v56 = vpack.c.bf16 %v1538_v41, %v1534_v40  ;;  %v5892_v61 = vsub.f32 %v1465_v28, %v1538_v41  ;;  %v1404_v28 = vld [vmem:[#allocation5 + $0x70] sm:$0xff]  ;;  %v1473_v40 = vld [vmem:[#allocation7 + $0x98] sm:$0xff]  ;;  %v1407_v41 = vld [vmem:[#allocation5 + $0x88] sm:$0xff] }
 0x240   : > { %v2832_v4 = vand.u32 4294901760, %v1404_v28  ;;  %v1554_v58 = vand.u32 4294901760, %v1473_v40  ;;  %v2834_v13 = vand.u32 4294901760, %v1407_v41 }
 0x241   : > { %8604 = vst [vmem:[#allocation36_spill] sm:$0xff] %v5887_v56  ;;  %8606 = vst [vmem:[#allocation38_spill] sm:$0xff] %v5892_v61  ;;  %4434 = vmatprep.subr.bf16.mxu0 %v5887_v56  ;;  %v1477_v56 = vld [vmem:[#allocation7 + $0xb8] sm:$0xff] }
 0x242   : > { %4816 = vmatpush1.bf16.msra.mxu1 %v5883_v53  ;;  %4436 = vmatpush1.bf16.msra.mxu0 %v5903_v18  ;;  %v5935_v18 = vsub.f32 %v1468_v22, %v1548_v51  ;;  %v5937_v60 = vpack.c.bf16 %v2832_v4, %v2828_v52  ;;  %v5943_v17 = vpack.c.bf16 %v1554_v58, %v1550_v11  ;;  %v2838_v22 = vand.u32 4294901760, %v1409_v5 }
 0x243   : > { %4818 = vmatprep.subr.bf16.mxu1 %v5894_v62  ;;  %4438 = vmatprep.subr.bf16.mxu0 %v5915_v37  ;;  %v1408_v37 = vld [vmem:[#allocation5 + $0x90] sm:$0xff]  ;;  %v1475_v62 = vld [vmem:[#allocation7 + $0xa8] sm:$0xff]  ;;  %v5945_v53 = vsub.f32 %v1471_v39, %v1550_v11  ;;  %v5947_v46 = vsub.f32 %v1473_v40, %v1554_v58  ;;  %v5951_v49 = vsub.f32 %v1407_v41, %v2834_v13  ;;  %v2836_v52 = vand.u32 4294901760, %v1406_v59  ;;  %v1413_v39 = vld [vmem:[#allocation5 + $0xb8] sm:$0xff] }
 0x244   : > { %8624 = vst [vmem:[#allocation56_spill] sm:$0xff] %v5935_v18  ;;  %8625 = vst [vmem:[#allocation57_spill] sm:$0xff] %v5937_v60  ;;  %v1562_v32 = vand.u32 4294901760, %v1477_v56  ;;  %v5954_v11 = vpack.c.bf16 %v2838_v22, %v2834_v13  ;;  %v5956_v40 = vsub.f32 %v1409_v5, %v2838_v22  ;;  %v1474_v41 = vld [vmem:[#allocation7 + $0xa0] sm:$0xff]  ;;  %v1479_v13 = vld [vmem:[#allocation7 + $0xc8] sm:$0xff] }
 0x245   : > { %8628 = vst [vmem:[#allocation60_spill] sm:$0xff] %v5943_v17  ;;  %8629 = vst [vmem:[#allocation61_spill] sm:$0xff] %v5945_v53  ;;  %v5966_v7 = vsub.f32 %v1406_v59, %v2836_v52  ;;  %v2846_v59 = vand.u32 4294901760, %v1413_v39  ;;  %v1422_v18 = vld [vmem:[#allocation5 + $0x100] sm:$0xff] }
 0x246   : > { %4820 = vmatpush1.bf16.msra.mxu1 %v5909_v21  ;;  %v1472_v21 = vld [vmem:[#allocation7 + $0x90] sm:$0xff]  ;;  %8630 = vst [vmem:[#allocation62_spill] sm:$0xff] %v5947_v46  ;;  %4440 = vmatpush1.bf16.msra.mxu0 %v5933_v15  ;;  %8631 = vst [vmem:[#allocation63_spill] sm:$0xff] %v5951_v49  ;;  %v1481_v46 = vld [vmem:[#allocation7 + $0xd8] sm:$0xff]  ;;  %v5976_v22 = vsub.f32 %v1477_v56, %v1562_v32 }
 0x247   : > { %4822 = vmatprep.subr.bf16.mxu1 %v5923_v44  ;;  %v5941_v44 = vsub.f32 %v1404_v28, %v2832_v4  ;;  %v1556_v51 = vand.u32 4294901760, %v1472_v21  ;;  %4442 = vmatprep.subr.bf16.mxu0 %v5943_v17  ;;  %v2840_v28 = vand.u32 4294901760, %v1408_v37  ;;  %v1558_v4 = vand.u32 4294901760, %v1475_v62  ;;  %8632 = vst [vmem:[#allocation64_spill] sm:$0xff] %v5954_v11  ;;  %8633 = vst [vmem:[#allocation65_spill] sm:$0xff] %v5956_v40  ;;  %v1476_v15 = vld [vmem:[#allocation7 + $0xb0] sm:$0xff] }
 0x248   : > { %8638 = vst [vmem:[#allocation70_spill] sm:$0xff] %v5966_v7  ;;  %v1412_v49 = vld [vmem:[#allocation5 + $0xb0] sm:$0xff]  ;;  %8642 = vst [vmem:[#allocation74_spill] sm:$0xff] %v5976_v22  ;;  %v1417_v7 = vld [vmem:[#allocation5 + $0xd8] sm:$0xff] }
 0x249   : > { %8627 = vst [vmem:[#allocation59_spill] sm:$0xff] %v5941_v44  ;;  %v5958_v58 = vpack.c.bf16 %v1556_v51, %v1552_v27  ;;  %v5962_v9 = vsub.f32 %v1472_v21, %v1556_v51  ;;  %v5964_v17 = vpack.c.bf16 %v2840_v28, %v2836_v52  ;;  %v5968_v1 = vsub.f32 %v1408_v37, %v2840_v28  ;;  %v1480_v22 = vld [vmem:[#allocation7 + $0xd0] sm:$0xff] }
 0x24a   : > { %4824 = vmatpush1.bf16.msra.mxu1 %v5937_v60  ;;  %v5960_v60 = vsub.f32 %v1470_v14, %v1552_v27  ;;  %v5972_v5 = vpack.c.bf16 %v1562_v32, %v1558_v4  ;;  %v5974_v14 = vsub.f32 %v1475_v62, %v1558_v4  ;;  %v2842_v21 = vand.u32 4294901760, %v1411_v30  ;;  %v1488_v40 = vld [vmem:[#allocation7 + $0x110] sm:$0xff] }
 0x24b   : > { %8634 = vst [vmem:[#allocation66_spill] sm:$0xff] %v5958_v58  ;;  %8636 = vst [vmem:[#allocation68_spill] sm:$0xff] %v5962_v9  ;;  %4826 = vmatprep.subr.bf16.mxu1 %v5954_v11  ;;  %4444 = vmatpush1.bf16.msra.mxu0 %v5958_v58  ;;  %v1560_v27 = vand.u32 4294901760, %v1474_v41  ;;  %v1564_v37 = vand.u32 4294901760, %v1476_v15  ;;  %v2844_v51 = vand.u32 4294901760, %v1410_v23  ;;  %v2848_v28 = vand.u32 4294901760, %v1412_v49 }
 0x24c   : > { %8635 = vst [vmem:[#allocation67_spill] sm:$0xff] %v5960_v60  ;;  %8637 = vst [vmem:[#allocation69_spill] sm:$0xff] %v5964_v17  ;;  %4446 = vmatprep.subr.bf16.mxu0 %v5972_v5  ;;  %v5980_v52 = vsub.f32 %v1411_v30, %v2842_v21  ;;  %v1566_v11 = vand.u32 4294901760, %v1479_v13  ;;  %v1570_v58 = vand.u32 4294901760, %v1481_v46  ;;  %v5982_v62 = vpack.c.bf16 %v2846_v59, %v2842_v21  ;;  %v1416_v60 = vld [vmem:[#allocation5 + $0xd0] sm:$0xff] }
 0x24d   : > { %8639 = vst [vmem:[#allocation71_spill] sm:$0xff] %v5968_v1  ;;  %8640 = vst [vmem:[#allocation72_spill] sm:$0xff] %v5972_v5  ;;  %v1415_v1 = vld [vmem:[#allocation5 + $0xc8] sm:$0xff]  ;;  %v5984_v32 = vsub.f32 %v1413_v39, %v2846_v59  ;;  %v5986_v56 = vpack.c.bf16 %v1564_v37, %v1560_v27  ;;  %v5988_v4 = vsub.f32 %v1474_v41, %v1560_v27  ;;  %v1588_v16 = vand.u32 4294901760, %v1488_v40 }
 0x24e   : > { %8641 = vst [vmem:[#allocation73_spill] sm:$0xff] %v5974_v14  ;;  %4828 = vmatpush1.bf16.msra.mxu1 %v5964_v17  ;;  %8643 = vst [vmem:[#allocation75_spill] sm:$0xff] %v5980_v52  ;;  %v1478_v17 = vld [vmem:[#allocation7 + $0xc0] sm:$0xff]  ;;  %v5990_v9 = vsub.f32 %v1476_v15, %v1564_v37  ;;  %v5992_v30 = vpack.c.bf16 %v2848_v28, %v2844_v51  ;;  %v5994_v5 = vsub.f32 %v1410_v23, %v2844_v51 }
 0x24f   : > { %8644 = vst [vmem:[#allocation76_spill] sm:$0xff] %v5982_v62  ;;  %8645 = vst [vmem:[#allocation77_spill] sm:$0xff] %v5984_v32  ;;  %v1414_v14 = vld [vmem:[#allocation5 + $0xc0] sm:$0xff]  ;;  %v5996_v52 = vsub.f32 %v1412_v49, %v2848_v28  ;;  %4830 = vmatprep.subr.bf16.mxu1 %v5982_v62  ;;  %4448 = vmatpush1.bf16.msra.mxu0 %v5986_v56  ;;  %v6000_v39 = vpack.c.bf16 %v1570_v58, %v1566_v11  ;;  %v2850_v59 = vand.u32 4294901760, %v1415_v1 }
 0x250   : > { %8646 = vst [vmem:[#allocation78_spill] sm:$0xff] %v5986_v56  ;;  %8647 = vst [vmem:[#allocation79_spill] sm:$0xff] %v5988_v4  ;;  %v6002_v41 = vsub.f32 %v1479_v13, %v1566_v11  ;;  %v6004_v21 = vsub.f32 %v1481_v46, %v1570_v58  ;;  %v2854_v15 = vand.u32 4294901760, %v1417_v7  ;;  %v1568_v27 = vand.u32 4294901760, %v1478_v17  ;;  %v1425_v4 = vld [vmem:[#allocation5 + $0x118] sm:$0xff]  ;;  %v1486_v32 = vld [vmem:[#allocation7 + $0x100] sm:$0xff] }
 0x251   : > { %8648 = vst [vmem:[#allocation80_spill] sm:$0xff] %v5990_v9  ;;  %8649 = vst [vmem:[#allocation81_spill] sm:$0xff] %v5992_v30  ;;  %v1572_v23 = vand.u32 4294901760, %v1480_v22  ;;  %v2852_v37 = vand.u32 4294901760, %v1414_v14  ;;  %4450 = vmatprep.subr.bf16.mxu0 %v6000_v39  ;;  %v6008_v49 = vsub.f32 %v1415_v1, %v2850_v59  ;;  %v2856_v51 = vand.u32 4294901760, %v1416_v60 }
 0x252   : > { %8650 = vst [vmem:[#allocation82_spill] sm:$0xff] %v5994_v5  ;;  %8651 = vst [vmem:[#allocation83_spill] sm:$0xff] %v5996_v52  ;;  %4832 = vmatpush1.bf16.msra.mxu1 %v5992_v30  ;;  %v6010_v28 = vpack.c.bf16 %v2854_v15, %v2850_v59  ;;  %v6012_v56 = vsub.f32 %v1417_v7, %v2854_v15  ;;  %v6016_v46 = vsub.f32 %v1478_v17, %v1568_v27  ;;  %v1423_v52 = vld [vmem:[#allocation5 + $0x108] sm:$0xff] }
 0x253   : > { %8652 = vst [vmem:[#allocation84_spill] sm:$0xff] %v6000_v39  ;;  %8653 = vst [vmem:[#allocation85_spill] sm:$0xff] %v6002_v41  ;;  %v6014_v11 = vpack.c.bf16 %v1572_v23, %v1568_v27  ;;  %v6018_v58 = vsub.f32 %v1480_v22, %v1572_v23  ;;  %v6020_v13 = vpack.c.bf16 %v2856_v51, %v2852_v37  ;;  %v1483_v22 = vld [vmem:[#allocation7 + $0xe8] sm:$0xff]  ;;  %v1485_v27 = vld [vmem:[#allocation7 + $0xf8] sm:$0xff]  ;;  %v2870_v53 = vand.u32 4294901760, %v1425_v4 }
 0x254   : > { %8654 = vst [vmem:[#allocation86_spill] sm:$0xff] %v6004_v21  ;;  %8655 = vst [vmem:[#allocation87_spill] sm:$0xff] %v6008_v49  ;;  %v6022_v30 = vsub.f32 %v1414_v14, %v2852_v37  ;;  %v6024_v62 = vsub.f32 %v1416_v60, %v2856_v51  ;;  %4834 = vmatprep.subr.bf16.mxu1 %v6010_v28  ;;  %v1419_v23 = vld [vmem:[#allocation5 + $0xe8] sm:$0xff]  ;;  %v1574_v39 = vand.u32 4294901760, %v1483_v22  ;;  %v1578_v14 = vand.u32 4294901760, %v1485_v27  ;;  %v1421_v37 = vld [vmem:[#allocation5 + $0xf8] sm:$0xff] }
 0x255   : > { %8656 = vst [vmem:[#allocation88_spill] sm:$0xff] %v6010_v28  ;;  %8657 = vst [vmem:[#allocation89_spill] sm:$0xff] %v6012_v56  ;;  %4452 = vmatpush1.bf16.msra.mxu0 %v6014_v11  ;;  %v2858_v60 = vand.u32 4294901760, %v1419_v23  ;;  %v1482_v51 = vld [vmem:[#allocation7 + $0xe0] sm:$0xff]  ;;  %v1487_v21 = vld [vmem:[#allocation7 + $0x108] sm:$0xff]  ;;  %v1584_v44 = vand.u32 4294901760, %v1486_v32 }
 0x256   : > { %8658 = vst [vmem:[#allocation90_spill] sm:$0xff] %v6014_v11  ;;  %8659 = vst [vmem:[#allocation91_spill] sm:$0xff] %v6016_v46  ;;  %4836 = vmatpush1.bf16.msra.mxu1 %v6020_v13  ;;  %v1576_v11 = vand.u32 4294901760, %v1482_v51  ;;  %v1420_v46 = vld [vmem:[#allocation5 + $0xf0] sm:$0xff]  ;;  %v1489_v41 = vld [vmem:[#allocation7 + $0x118] sm:$0xff]  ;;  %v6043_v6 = vsub.f32 %v1483_v22, %v1574_v39 }
 0x257   : > { %8660 = vst [vmem:[#allocation92_spill] sm:$0xff] %v6018_v58  ;;  %8661 = vst [vmem:[#allocation93_spill] sm:$0xff] %v6020_v13  ;;  %v1418_v13 = vld [vmem:[#allocation5 + $0xe0] sm:$0xff]  ;;  %v1586_v9 = vand.u32 4294901760, %v1489_v41  ;;  %v6064_v22 = vld [vmem:[#allocation5 + $0x128] sm:$0xff] }
 0x258   : > { %8662 = vst [vmem:[#allocation94_spill] sm:$0xff] %v6022_v30  ;;  %8663 = vst [vmem:[#allocation95_spill] sm:$0xff] %v6024_v62  ;;  %v1484_v62 = vld [vmem:[#allocation7 + $0xf0] sm:$0xff]  ;;  %v2862_v30 = vand.u32 4294901760, %v1421_v37  ;;  %v6052_v42 = vsub.f32 %v1482_v51, %v1576_v11  ;;  %v8753_v2 = vand.u32 4294901760, %v6064_v22 }
 0x259   : > { %v1580_v58 = vand.u32 4294901760, %v1484_v62  ;;  %8669 = vst [vmem:[#allocation101_spill] sm:$0xff] %v6043_v6  ;;  %v6082_v51 = vsub.f32 %v1489_v41, %v1586_v9  ;;  %v6284_v6 = vld [vmem:[#allocation7 + $0x1a8] sm:$0xff] }
 0x25a   : > { %v6049_v50 = vsub.f32 %v1421_v37, %v2862_v30  ;;  %8673 = vst [vmem:[#allocation105_spill] sm:$0xff] %v6052_v42  ;;  %v6077_v37 = vld [vmem:[#allocation7 + $0x120] sm:$0xff]  ;;  %v6225_v42 = vld [vmem:[#allocation7 + $0x188] sm:$0xff] }
 0x25b   : > { %v6036_v49 = vpack.c.bf16 %v1580_v58, %v1576_v11  ;;  %v2868_v11 = vand.u32 4294901760, %v1422_v18  ;;  %8681 = vst [vmem:[#allocation113_spill] sm:$0xff] %v6082_v51  ;;  %v6184_v51 = vld [vmem:[#allocation7 + $0x160] sm:$0xff]  ;;  %v8757_v8 = vand.u32 4294901760, %v6077_v37 }
 0x25c   : > { %8672 = vst [vmem:[#allocation104_spill] sm:$0xff] %v6049_v50 }
 0x25d   : > { %8667 = vst [vmem:[#allocation99_spill] sm:$0xff] %v6036_v49 }
 0x310   : > { %v1311_v1 = vpop.f32.mrb[2].mxu1 }
 0x311   : > { %v1316_v7 = vrot.slane %v1311_v1, 1  ;;  %v4388_v59 = vpop.f32.mrb[3].mxu1 }
 0x312   : > { %v6029_v59 = vpack.c.bf16 %v1578_v14, %v1574_v39  ;;  %v6062_v39 = vld [vmem:[#allocation7 + $0x138] sm:$0xff] }
 0x313   : > { %v1318_v15 = vadd.f32 %v1316_v7, %v1311_v1  ;;  %v2860_v1 = vand.u32 4294901760, %v1418_v13  ;;  %v2864_v7 = vand.u32 4294901760, %v1420_v46 }
 0x314   : > { %8664 = vst [vmem:[#allocation96_spill] sm:$0xff] %v6029_v59  ;;  %4454 = vmatprep.subr.bf16.mxu0 %v6029_v59  ;;  %v6047_v59 = vsub.f32 %v1419_v23, %v2858_v60  ;;  %v6070_v23 = vpack.c.bf16 %v1588_v16, %v1584_v44 }
 0x315   : > { %v4241_v17 = vmul.f32 -1.442695, %v1318_v15  ;;  %v6032_v15 = vsub.s32 0, %v5784_v54  ;;  %v6039_v5 = vpack.c.bf16 %v2864_v7, %v2860_v1  ;;  %4456 = vmatpush1.bf16.msra.mxu0 %v6036_v49  ;;  %v2866_v54 = vand.u32 4294901760, %v1423_v52 }
 0x316   : > { %8671 = vst [vmem:[#allocation103_spill] sm:$0xff] %v6047_v59  ;;  %v6056_v49 = vsub.f32 %v1418_v13, %v2860_v1  ;;  %v6058_v36 = vsub.f32 %v1420_v46, %v2864_v7  ;;  %8679 = vst [vmem:[#allocation111_spill] sm:$0xff] %v6070_v23  ;;  %v6092_v46 = vld [vmem:[#allocation5 + $0x130] sm:$0xff]  ;;  %v6094_v13 = vsub.f32 %v1425_v4, %v2870_v53  ;;  %v8690_v4 = vand.u32 4294901760, %v6062_v39 }
 0x317   : > { %5308 = vpow2.f32 %v4241_v17  ;;  %8665 = vst [vmem:[#allocation97_spill] sm:$0xff] %v6032_v15  ;;  %v6034_v17 = vpack.c.bf16 %v2862_v30, %v2858_v60  ;;  %8668 = vst [vmem:[#allocation100_spill] sm:$0xff] %v6039_v5  ;;  %v6068_v30 = vpack.c.bf16 %v2870_v53, %v2866_v54  ;;  %v6085_v1 = vsub.f32 %v1423_v52, %v2866_v54  ;;  %v6103_v52 = vld [vmem:[#allocation7 + $0x148] sm:$0xff] }
 0x318   : > { %8675 = vst [vmem:[#allocation107_spill] sm:$0xff] %v6056_v49  ;;  %8676 = vst [vmem:[#allocation108_spill] sm:$0xff] %v6058_v36  ;;  %v6107_v54 = vld [vmem:[#allocation5 + $0x148] sm:$0xff]  ;;  %v6109_v7 = vsub.f32 %v1422_v18, %v2868_v11  ;;  %v8689_v53 = vand.u32 4294901760, %v6060_v34  ;;  %v6389_v34 = vsub.f32 %v6077_v37, %v8757_v8 }
 0x319   : > { %8666 = vst [vmem:[#allocation98_spill] sm:$0xff] %v6034_v17  ;;  %4838 = vmatprep.subr.bf16.mxu1 %v6034_v17  ;;  %v6054_v17 = vsub.f32 %v1484_v62, %v1580_v58  ;;  %8678 = vst [vmem:[#allocation110_spill] sm:$0xff] %v6068_v30  ;;  %v2872_v62 = vand.u32 4294901760, %v1424_v45  ;;  %v6090_v58 = vld [vmem:[#allocation5 + $0x120] sm:$0xff] }
 0x31a   : > { %4840 = vmatpush1.bf16.msra.mxu1 %v6039_v5  ;;  %8682 = vst [vmem:[#allocation114_spill] sm:$0xff] %v6085_v1  ;;  %v6088_v5 = vld [vmem:[#allocation7 + $0x130] sm:$0xff]  ;;  %8683 = vst [vmem:[#allocation115_spill] sm:$0xff] %v6094_v13  ;;  %v6182_v1 = vld [vmem:[#allocation5 + $0x178] sm:$0xff] }
 0x31b   : > { %8674 = vst [vmem:[#allocation106_spill] sm:$0xff] %v6054_v17  ;;  %4842 = vmatprep.subr.bf16.mxu1 %v6068_v30  ;;  %v6101_v41 = vpack.c.bf16 %v2872_v62, %v2868_v11  ;;  %8687 = vst [vmem:[#allocation119_spill] sm:$0xff] %v6109_v7  ;;  %v6111_v30 = vsub.f32 %v1424_v45, %v2872_v62  ;;  %v6144_v11 = vld [vmem:[#allocation5 + $0x150] sm:$0xff]  ;;  %v8696_v7 = vand.u32 4294901760, %v6088_v5  ;;  %v6162_v45 = vld [vmem:[#allocation7 + $0x168] sm:$0xff] }
 0x31c   : > { %v6205_v17 = vld [vmem:[#allocation5 + $0x160] sm:$0xff]  ;;  %8758 = vst [vmem:[#allocation147_spill] sm:$0xff] %v6389_v34 }
 0x31d   : > { %8686 = vst [vmem:[#allocation118_spill] sm:$0xff] %v6101_v41  ;;  %8688 = vst [vmem:[#allocation120_spill] sm:$0xff] %v6111_v30  ;;  %v8695_v30 = vand.u32 4294901760, %v6077_v37  ;;  %v8721_v20 = vand.u32 4294901760, %v6205_v17  ;;  %v8765_v37 = vand.u32 4294901760, %v6103_v52 }
 0x31e   : > { %4844 = vmatpush1.bf16.msra.mxu1 %v6101_v41 }
 0x31f   : > { %v6410_v8 = vsub.f32 %v6103_v52, %v8765_v37 }
 0x321   : > { %v5309_v28 = vpop.eup %5308  ;;  %8766 = vst [vmem:[#allocation151_spill] sm:$0xff] %v6410_v8 }
 0x322   : > { %v1322_v56 = vadd.f32 1.0, %v5309_v28  ;;  %v1582_v28 = vand.u32 4294901760, %v1487_v21 }
 0x324   : > { %5310 = vrcp.f32 %v1322_v56  ;;  %v6045_v56 = vsub.f32 %v1485_v27, %v1578_v14  ;;  %v6066_v27 = vpack.c.bf16 %v1586_v9, %v1582_v28  ;;  %v6072_v14 = vld [vmem:[#allocation5 + $0x138] sm:$0xff]  ;;  %v6080_v60 = vsub.f32 %v1487_v21, %v1582_v28 }
 0x325   : > { %v6097_v21 = vsub.f32 %v1486_v32, %v1584_v44  ;;  %v6099_v9 = vsub.f32 %v1488_v40, %v1588_v16  ;;  %v6105_v28 = vld [vmem:[#allocation7 + $0x158] sm:$0xff]  ;;  %v6117_v44 = vpack.c.bf16 %v8690_v4, %v8689_v53  ;;  %v8692_v16 = vand.u32 4294901760, %v6064_v22  ;;  %v6134_v53 = vld [vmem:[#allocation7 + $0x150] sm:$0xff]  ;;  %v6136_v4 = vld [vmem:[#allocation5 + $0x140] sm:$0xff] }
 0x326   : > { %8670 = vst [vmem:[#allocation102_spill] sm:$0xff] %v6045_v56  ;;  %8677 = vst [vmem:[#allocation109_spill] sm:$0xff] %v6066_v27  ;;  %4458 = vmatprep.subr.bf16.mxu0 %v6066_v27  ;;  %v8693_v40 = vand.u32 4294901760, %v6072_v14  ;;  %v6127_v27 = vld [vmem:[#allocation7 + $0x140] sm:$0xff] }
 0x327   : > { %8680 = vst [vmem:[#allocation112_spill] sm:$0xff] %v6080_v60  ;;  %4460 = vmatpush1.bf16.msra.mxu0 %v6070_v23  ;;  %8684 = vst [vmem:[#allocation116_spill] sm:$0xff] %v6097_v21  ;;  %v6125_v23 = vld [vmem:[#allocation5 + $0x158] sm:$0xff]  ;;  %v8702_v21 = vand.u32 4294901760, %v6105_v28  ;;  %v6186_v60 = vld [vmem:[#allocation7 + $0x170] sm:$0xff]  ;;  %v8707_v18 = vand.u32 4294901760, %v6127_v27 }
 0x328   : > { %8685 = vst [vmem:[#allocation117_spill] sm:$0xff] %v6099_v9  ;;  %8691 = vst [vmem:[#allocation121_spill] sm:$0xff] %v6117_v44  ;;  %v6123_v32 = vpack.c.bf16 %v8693_v40, %v8692_v16  ;;  %4462 = vmatprep.subr.bf16.mxu0 %v6117_v44  ;;  %v6153_v44 = vpack.c.bf16 %v8696_v7, %v8695_v30  ;;  %v8699_v40 = vand.u32 4294901760, %v6092_v46  ;;  %v6164_v9 = vld [vmem:[#allocation7 + $0x178] sm:$0xff]  ;;  %v8704_v7 = vand.u32 4294901760, %v6107_v54 }
 0x329   : > { %v8705_v13 = vand.u32 4294901760, %v6125_v23 }
 0x32a   : > { %8694 = vst [vmem:[#allocation122_spill] sm:$0xff] %v6123_v32  ;;  %4846 = vmatprep.subr.bf16.mxu1 %v6123_v32  ;;  %8697 = vst [vmem:[#allocation123_spill] sm:$0xff] %v6153_v44  ;;  %v8698_v32 = vand.u32 4294901760, %v6090_v58 }
 0x32b   : > { %4464 = vmatpush1.bf16.msra.mxu0 %v6153_v44  ;;  %v6243_v44 = vld [vmem:[#allocation7 + $0x190] sm:$0xff] }
 0x32c   : > { %v6159_v41 = vpack.c.bf16 %v8699_v40, %v8698_v32  ;;  %v6178_v32 = vpack.c.bf16 %v8705_v13, %v8704_v7  ;;  %v8244_v40 = vand.u32 4294901760, %v6134_v53  ;;  %v6207_v13 = vld [vmem:[#allocation5 + $0x170] sm:$0xff]  ;;  %v8709_v7 = vand.u32 4294901760, %v6136_v4 }
 0x32d   : > { %v8722_v56 = vand.u32 4294901760, %v6207_v13  ;;  %v8731_v61 = vand.u32 4294901760, %v6243_v44 }
 0x32e   : > { %v5311_v16 = vpop.eup %5310  ;;  %8700 = vst [vmem:[#allocation124_spill] sm:$0xff] %v6159_v41  ;;  %8706 = vst [vmem:[#allocation126_spill] sm:$0xff] %v6178_v32  ;;  %4848 = vmatpush1.bf16.msra.mxu1 %v6159_v41  ;;  %v6200_v36 = vpack.c.bf16 %v8244_v40, %v8707_v18  ;;  %v8710_v41 = vand.u32 4294901760, %v6144_v11  ;;  %v8712_v40 = vand.u32 4294901760, %v6162_v45 }
 0x32f   : > { %v6147_v62 = vrot.slane %v5311_v16, %v6032_v15  ;;  %v6166_v16 = vld [vmem:[#allocation5 + $0x168] sm:$0xff]  ;;  %v8701_v15 = vand.u32 4294901760, %v6103_v52  ;;  %4850 = vmatprep.subr.bf16.mxu1 %v6178_v32  ;;  %v6264_v19 = vpack.c.bf16 %v8722_v56, %v8721_v20  ;;  %v8773_v52 = vand.u32 4294901760, %v6127_v27 }
 0x330   : > { %8708 = vst [vmem:[#allocation127_spill] sm:$0xff] %v6200_v36  ;;  %v6215_v18 = vpack.c.bf16 %v8710_v41, %v8709_v7  ;;  %v6229_v32 = vld [vmem:[#allocation5 + $0x188] sm:$0xff]  ;;  %v8715_v50 = vand.u32 4294901760, %v6166_v16  ;;  %v8716_v41 = vand.u32 4294901760, %v6182_v1 }
 0x331   : > { %v6172_v30 = vpack.c.bf16 %v8702_v21, %v8701_v15  ;;  %1334 = vbcast.lane.b32.xlu1 %v6147_v62, 264  ;;  %1330 = vbcast.lane.b32.xlu0 %v6147_v62, 256  ;;  %v8713_v15 = vand.u32 4294901760, %v6164_v9  ;;  %v6241_v21 = vld [vmem:[#allocation7 + $0x180] sm:$0xff]  ;;  %8723 = vst [vmem:[#allocation132_spill] sm:$0xff] %v6264_v19  ;;  %v6431_v37 = vsub.f32 %v6127_v27, %v8773_v52  ;;  %v8781_v27 = vand.u32 4294901760, %v6162_v45 }
 0x332   : > { %8711 = vst [vmem:[#allocation128_spill] sm:$0xff] %v6215_v18  ;;  %v6235_v7 = vpack.c.bf16 %v8716_v41, %v8715_v50  ;;  %v6250_v50 = vld [vmem:[#allocation5 + $0x190] sm:$0xff]  ;;  %4852 = vmatpush1.bf16.msra.mxu1 %v6215_v18  ;;  %v8718_v41 = vand.u32 4294901760, %v6184_v51  ;;  %v8724_v18 = vand.u32 4294901760, %v6225_v42 }
 0x333   : > { %8703 = vst [vmem:[#allocation125_spill] sm:$0xff] %v6172_v30  ;;  %4466 = vmatprep.subr.bf16.mxu0 %v6172_v30  ;;  %v6221_v49 = vpack.c.bf16 %v8713_v15, %v8712_v40  ;;  %v6227_v30 = vld [vmem:[#allocation7 + $0x198] sm:$0xff]  ;;  %v8719_v40 = vand.u32 4294901760, %v6186_v60  ;;  %v8734_v56 = vand.u32 4294901760, %v6250_v50  ;;  %8774 = vst [vmem:[#allocation155_spill] sm:$0xff] %v6431_v37  ;;  %v6452_v52 = vsub.f32 %v6162_v45, %v8781_v27 }
 0x334   : > { %8717 = vst [vmem:[#allocation130_spill] sm:$0xff] %v6235_v7  ;;  %v6239_v15 = vld [vmem:[#allocation5 + $0x198] sm:$0xff]  ;;  %4468 = vmatpush1.bf16.msra.mxu0 %v6200_v36  ;;  %4854 = vmatprep.subr.bf16.mxu1 %v6235_v7  ;;  %v8725_v36 = vand.u32 4294901760, %v6227_v30  ;;  %v6288_v7 = vld [vmem:[#allocation5 + $0x1a8] sm:$0xff]  ;;  %v8787_v45 = vand.u32 4294901760, %v6184_v51 }
 0x335   : > { %8714 = vst [vmem:[#allocation129_spill] sm:$0xff] %v6221_v49  ;;  %1338 = vbcast.lane.b32.xlu1 %v6147_v62, 272  ;;  %v6258_v59 = vpack.c.bf16 %v8719_v40, %v8718_v41  ;;  %4470 = vmatprep.subr.bf16.mxu0 %v6221_v49  ;;  %v8727_v41 = vand.u32 4294901760, %v6229_v32  ;;  %v8728_v63 = vand.u32 4294901760, %v6239_v15  ;;  %v6286_v49 = vld [vmem:[#allocation7 + $0x1b8] sm:$0xff]  ;;  %8782 = vst [vmem:[#allocation159_spill] sm:$0xff] %v6452_v52 }
 0x336   : > { %v6274_v40 = vpack.c.bf16 %v8725_v36, %v8724_v18  ;;  %v6292_v18 = vld [vmem:[#allocation5 + $0x1b8] sm:$0xff]  ;;  %4856 = vmatpush1.bf16.msra.mxu1 %v6264_v19  ;;  %v8730_v36 = vand.u32 4294901760, %v6241_v21  ;;  %v8736_v19 = vand.u32 4294901760, %v6284_v6  ;;  %v6473_v27 = vsub.f32 %v6184_v51, %v8787_v45 }
 0x337   : > { %8720 = vst [vmem:[#allocation131_spill] sm:$0xff] %v6258_v59  ;;  %v6280_v20 = vpack.c.bf16 %v8728_v63, %v8727_v41  ;;  %v6296_v63 = vld [vmem:[#allocation7 + $0x1b0] sm:$0xff]  ;;  %v6322_v41 = vpack.c.bf16 %v8734_v56, %v8733_v55  ;;  %v8740_v0 = vand.u32 4294901760, %v6292_v18  ;;  %v6341_v55 = vld [vmem:[#allocation5 + $0x1c8] sm:$0xff]  ;;  %v8742_v56 = vand.u32 4294901760, %v6294_v57 }
 0x338   : > { %8726 = vst [vmem:[#allocation133_spill] sm:$0xff] %v6274_v40  ;;  %4472 = vmatpush1.bf16.msra.mxu0 %v6258_v59  ;;  %v6311_v47 = vpack.c.bf16 %v8731_v61, %v8730_v36  ;;  %v8737_v59 = vand.u32 4294901760, %v6286_v49  ;;  %v8739_v36 = vand.u32 4294901760, %v6288_v7  ;;  %v8743_v33 = vand.u32 4294901760, %v6296_v63  ;;  %8788 = vst [vmem:[#allocation161_spill] sm:$0xff] %v6473_v27 }
 0x339   : > { %8729 = vst [vmem:[#allocation134_spill] sm:$0xff] %v6280_v20  ;;  %1342 = vbcast.lane.b32.xlu1 %v6147_v62, 280  ;;  %v6313_v62 = vld [vmem:[#allocation5 + $0x1b0] sm:$0xff]  ;;  %4474 = vmatprep.subr.bf16.mxu0 %v6274_v40  ;;  %8735 = vst [vmem:[#allocation136_spill] sm:$0xff] %v6322_v41  ;;  %v6337_v40 = vld [vmem:[#allocation7 + $0x1c8] sm:$0xff]  ;;  %v8795_v51 = vand.u32 4294901760, %v6225_v42 }
 0x33a   : > { %8732 = vst [vmem:[#allocation135_spill] sm:$0xff] %v6311_v47  ;;  %4858 = vmatprep.subr.bf16.mxu1 %v6280_v20  ;;  %v6328_v61 = vpack.c.bf16 %v8737_v59, %v8736_v19  ;;  %v6334_v38 = vpack.c.bf16 %v8740_v0, %v8739_v36  ;;  %v2912_v20 = vand.u32 4294901760, %v6313_v62  ;;  %v6347_v19 = vpack.c.bf16 %v8743_v33, %v8742_v56  ;;  %v6351_v0 = vld [vmem:[#allocation5 + $0x1d8] sm:$0xff] }
 0x33b   : > { %v1630_v59 = vand.u32 4294901760, %v6337_v40  ;;  %8745 = vst [vmem:[#allocation140_spill] sm:$0xff] %v6351_v0  ;;  %v2918_v10 = vand.u32 4294901760, %v6351_v0  ;;  %v1632_v33 = vand.u32 4294901760, %v6354_v26  ;;  %v8751_v36 = vand.u32 4294901760, %v6062_v39  ;;  %4860 = vmatpush1.bf16.msra.mxu1 %v6322_v41 }
 0x33c   : > { %8738 = vst [vmem:[#allocation137_spill] sm:$0xff] %v6328_v61  ;;  %8741 = vst [vmem:[#allocation138_spill] sm:$0xff] %v6334_v38  ;;  %v6360_v12 = vpack.c.bf16 %v2912_v20, %v8747_v24  ;;  %v6378_v24 = vsub.f32 %v6064_v22, %v8753_v2  ;;  %v8755_v0 = vand.u32 4294901760, %v6072_v14  ;;  %4476 = vmatpush1.bf16.msra.mxu0 %v6311_v47  ;;  %v8761_v2 = vand.u32 4294901760, %v6090_v58 }
 0x33d   : > { %8744 = vst [vmem:[#allocation139_spill] sm:$0xff] %v6347_v19  ;;  %v6373_v43 = vsub.f32 %v6062_v39, %v8751_v36  ;;  %v8759_v39 = vand.u32 4294901760, %v6088_v5  ;;  %4478 = vmatprep.subr.bf16.mxu0 %v6328_v61  ;;  %4862 = vmatprep.subr.bf16.mxu1 %v6334_v38  ;;  %v6494_v45 = vsub.f32 %v6225_v42, %v8795_v51  ;;  %v8803_v56 = vand.u32 4294901760, %v6241_v21  ;;  %v1514_v61 = vld [vmem:[#allocation7 + $0x1e0] sm:$0xff] }
 0x33e   : > { %8748 = vst [vmem:[#allocation142_spill] sm:$0xff] %v6360_v12  ;;  %8754 = vst [vmem:[#allocation145_spill] sm:$0xff] %v6378_v24  ;;  %v6383_v26 = vsub.f32 %v6072_v14, %v8755_v0  ;;  %v6399_v22 = vsub.f32 %v6090_v58, %v8761_v2  ;;  %v8763_v14 = vand.u32 4294901760, %v6092_v46  ;;  %v8769_v58 = vand.u32 4294901760, %v6107_v54 }
 0x33f   : > { %8752 = vst [vmem:[#allocation144_spill] sm:$0xff] %v6373_v43  ;;  %v6394_v36 = vsub.f32 %v6088_v5, %v8759_v39  ;;  %v8767_v5 = vand.u32 4294901760, %v6105_v28  ;;  %4864 = vmatpush1.bf16.msra.mxu1 %v6360_v12  ;;  %8796 = vst [vmem:[#allocation165_spill] sm:$0xff] %v6494_v45  ;;  %v6514_v42 = vsub.f32 %v6241_v21, %v8803_v56  ;;  %v8805_v51 = vand.u32 4294901760, %v6243_v44  ;;  %v8871_v43 = vld [vmem:[#allocation38_spill] sm:$0xff] }
 0x340   : > { %8756 = vst [vmem:[#allocation146_spill] sm:$0xff] %v6383_v26  ;;  %8762 = vst [vmem:[#allocation149_spill] sm:$0xff] %v6399_v22  ;;  %v6404_v0 = vsub.f32 %v6092_v46, %v8763_v14  ;;  %v6420_v2 = vsub.f32 %v6107_v54, %v8769_v58  ;;  %v8771_v46 = vand.u32 4294901760, %v6125_v23  ;;  %v8777_v54 = vand.u32 4294901760, %v6136_v4  ;;  %4480 = vmatpush1.bf16.msra.mxu0 %v6347_v19  ;;  %v1517_v19 = vld [vmem:[#allocation7 + $0x1f8] sm:$0xff]  ;;  %v8860_v22 = vld [vmem:[#allocation22_spill] sm:$0xff] }
 0x341   : > { %8760 = vst [vmem:[#allocation148_spill] sm:$0xff] %v6394_v36  ;;  %v6415_v39 = vsub.f32 %v6105_v28, %v8767_v5  ;;  %v8775_v28 = vand.u32 4294901760, %v6134_v53  ;;  %8804 = vst [vmem:[#allocation169_spill] sm:$0xff] %v6514_v42  ;;  %v8812_v56 = vand.u32 4294901760, %v6286_v49  ;;  %v8818_v12 = vand.u32 4294901760, %v6294_v57  ;;  %v8869_v26 = vld [vmem:[#allocation35_spill] sm:$0xff] }
 0x342   : > { %8764 = vst [vmem:[#allocation150_spill] sm:$0xff] %v6404_v0  ;;  %8770 = vst [vmem:[#allocation153_spill] sm:$0xff] %v6420_v2  ;;  %v6425_v14 = vsub.f32 %v6125_v23, %v8771_v46  ;;  %v6441_v58 = vsub.f32 %v6136_v4, %v8777_v54  ;;  %v8779_v23 = vand.u32 4294901760, %v6144_v11  ;;  %v8785_v4 = vand.u32 4294901760, %v6166_v16  ;;  %v8830_v41 = vld [vmem:[#allocation140_spill] sm:$0xff] }
 0x343   : > { %8768 = vst [vmem:[#allocation152_spill] sm:$0xff] %v6415_v39  ;;  %v6436_v5 = vsub.f32 %v6134_v53, %v8775_v28  ;;  %v8783_v53 = vand.u32 4294901760, %v6164_v9  ;;  %v6569_v38 = vpack.c.bf16 %v1634_v31, %v1630_v59  ;;  %v6587_v47 = vsub.f32 %v8830_v41, %v2918_v10 }
 0x344   : > { %8772 = vst [vmem:[#allocation154_spill] sm:$0xff] %v6425_v14  ;;  %8778 = vst [vmem:[#allocation157_spill] sm:$0xff] %v6441_v58  ;;  %v6446_v46 = vsub.f32 %v6144_v11, %v8779_v23  ;;  %v6462_v54 = vsub.f32 %v6166_v16, %v8785_v4  ;;  %v8786_v11 = vand.u32 4294901760, %v6182_v1  ;;  %v8791_v16 = vand.u32 4294901760, %v6205_v17 }
 0x345   : > { %8776 = vst [vmem:[#allocation156_spill] sm:$0xff] %v6436_v5  ;;  %v6457_v28 = vsub.f32 %v6164_v9, %v8783_v53  ;;  %v8789_v9 = vand.u32 4294901760, %v6186_v60  ;;  %8823 = vst [vmem:[#allocation178_spill] sm:$0xff] %v6569_v38  ;;  %4482 = vmatprep.subr.bf16.mxu0 %v6569_v38  ;;  %v1642_v41 = vand.u32 4294901760, %v1517_v19 }
 0x346   : > { %8780 = vst [vmem:[#allocation158_spill] sm:$0xff] %v6446_v46  ;;  %v6467_v23 = vsub.f32 %v6182_v1, %v8786_v11  ;;  %v6483_v4 = vsub.f32 %v6205_v17, %v8791_v16  ;;  %v8793_v1 = vand.u32 4294901760, %v6207_v13  ;;  %v8799_v17 = vand.u32 4294901760, %v6229_v32  ;;  %8831 = vst [vmem:[#allocation140_spill] sm:$0xff] %v6587_v47  ;;  %v1516_v46 = vld [vmem:[#allocation7 + $0x1f0] sm:$0xff] }
 0x347   : > { %8784 = vst [vmem:[#allocation160_spill] sm:$0xff] %v6457_v28  ;;  %v6478_v53 = vsub.f32 %v6186_v60, %v8789_v9  ;;  %v8797_v60 = vand.u32 4294901760, %v6227_v30  ;;  %v6614_v37 = vsub.f32 %v1517_v19, %v1642_v41  ;;  %v1644_v39 = vand.u32 4294901760, %v1516_v46 }
 0x348   : > { %8792 = vst [vmem:[#allocation163_spill] sm:$0xff] %v6483_v4  ;;  %v6488_v11 = vsub.f32 %v6207_v13, %v8793_v1  ;;  %v6504_v16 = vsub.f32 %v6229_v32, %v8799_v17  ;;  %v8801_v13 = vand.u32 4294901760, %v6239_v15  ;;  %v8808_v17 = vand.u32 4294901760, %v6250_v50 }
 0x349   : > { %8790 = vst [vmem:[#allocation162_spill] sm:$0xff] %v6478_v53  ;;  %v6499_v9 = vsub.f32 %v6227_v30, %v8797_v60  ;;  %v6519_v30 = vsub.f32 %v6243_v44, %v8805_v51  ;;  %v8807_v60 = vand.u32 4294901760, %v6248_v29  ;;  %v6539_v44 = vsub.f32 %v6286_v49, %v8812_v56  ;;  %8843 = vst [vmem:[#allocation190_spill] sm:$0xff] %v6614_v37 }
 0x34a   : > { %8794 = vst [vmem:[#allocation164_spill] sm:$0xff] %v6488_v11  ;;  %8800 = vst [vmem:[#allocation167_spill] sm:$0xff] %v6504_v16  ;;  %v6509_v1 = vsub.f32 %v6239_v15, %v8801_v13  ;;  %v6529_v15 = vsub.f32 %v6250_v50, %v8808_v17  ;;  %v8810_v13 = vand.u32 4294901760, %v6284_v6  ;;  %v8814_v51 = vand.u32 4294901760, %v6288_v7  ;;  %v1446_v17 = vld [vmem:[#allocation5 + $0x1c0] sm:$0xff] }
 0x34b   : > { %8798 = vst [vmem:[#allocation166_spill] sm:$0xff] %v6499_v9  ;;  %8806 = vst [vmem:[#allocation170_spill] sm:$0xff] %v6519_v30  ;;  %v6524_v32 = vsub.f32 %v6248_v29, %v8807_v60  ;;  %v8816_v60 = vand.u32 4294901760, %v6292_v18  ;;  %v8820_v56 = vand.u32 4294901760, %v6303_v48 }
 0x34c   : > { %8802 = vst [vmem:[#allocation168_spill] sm:$0xff] %v6509_v1  ;;  %8809 = vst [vmem:[#allocation171_spill] sm:$0xff] %v6529_v15  ;;  %v6534_v21 = vsub.f32 %v6284_v6, %v8810_v13  ;;  %v6544_v29 = vsub.f32 %v6288_v7, %v8814_v51  ;;  %v6554_v6 = vsub.f32 %v6294_v57, %v8818_v12  ;;  %v8819_v13 = vand.u32 4294901760, %v6296_v63 }
 0x34d   : > { %8813 = vst [vmem:[#allocation173_spill] sm:$0xff] %v6539_v44  ;;  %v6549_v50 = vsub.f32 %v6292_v18, %v8816_v60  ;;  %v6564_v7 = vsub.f32 %v6303_v48, %v8820_v56  ;;  %v6567_v51 = vsub.f32 %v6313_v62, %v2912_v20  ;;  %v1448_v18 = vld [vmem:[#allocation5 + $0x1d0] sm:$0xff]  ;;  %v1515_v60 = vld [vmem:[#allocation7 + $0x1e8] sm:$0xff]  ;;  %v6572_v12 = vsub.f32 %v6337_v40, %v1630_v59  ;;  %v1453_v56 = vld [vmem:[#allocation5 + $0x1f8] sm:$0xff] }
 0x34e   : > { %8811 = vst [vmem:[#allocation172_spill] sm:$0xff] %v6534_v21  ;;  %8815 = vst [vmem:[#allocation174_spill] sm:$0xff] %v6544_v29  ;;  %v6559_v49 = vsub.f32 %v6296_v63, %v8819_v13  ;;  %v6575_v57 = vsub.f32 %v6339_v35, %v1634_v31  ;;  %v8826_v63 = vand.u32 4294901760, %v6341_v55  ;;  %v1451_v48 = vld [vmem:[#allocation5 + $0x1e8] sm:$0xff]  ;;  %v8832_v40 = vand.u32 4294901760, %v6356_v25 }
 0x34f   : > { %8817 = vst [vmem:[#allocation175_spill] sm:$0xff] %v6549_v50  ;;  %8821 = vst [vmem:[#allocation176_spill] sm:$0xff] %v6564_v7  ;;  %v8834_v31 = vld [vmem:[#allocation141_spill] sm:$0xff]  ;;  %v2926_v52 = vand.u32 4294901760, %v1453_v56 }
 0x350   : > { %8822 = vst [vmem:[#allocation177_spill] sm:$0xff] %v6567_v51  ;;  %8824 = vst [vmem:[#allocation179_spill] sm:$0xff] %v6572_v12  ;;  %v6579_v13 = vpack.c.bf16 %v2918_v10, %v8826_v63  ;;  %v8828_v20 = vmov %v8826_v63  ;;  %v6591_v59 = vpack.c.bf16 %v8832_v40, %v1632_v33  ;;  %v6594_v35 = vsub.f32 %v8834_v31, %v1632_v33  ;;  %v1450_v31 = vld [vmem:[#allocation5 + $0x1e0] sm:$0xff] }
 0x351   : > { %8825 = vst [vmem:[#allocation180_spill] sm:$0xff] %v6575_v57  ;;  %v6584_v62 = vsub.f32 %v6341_v55, %v8828_v20  ;;  %v8836_v63 = vmov %v8832_v40  ;;  %v2916_v55 = vand.u32 4294901760, %v1446_v17  ;;  %v2920_v20 = vand.u32 4294901760, %v1448_v18 }
 0x352   : > { %8827 = vst [vmem:[#allocation181_spill] sm:$0xff] %v6579_v13  ;;  %8833 = vst [vmem:[#allocation183_spill] sm:$0xff] %v6591_v59  ;;  %4866 = vmatprep.subr.bf16.mxu1 %v6579_v13  ;;  %v6601_v28 = vsub.f32 %v6356_v25, %v8836_v63  ;;  %v1638_v10 = vand.u32 4294901760, %v1515_v60  ;;  %4484 = vmatpush1.bf16.msra.mxu0 %v6591_v59  ;;  %v2922_v40 = vand.u32 4294901760, %v1451_v48  ;;  %v1640_v33 = vand.u32 4294901760, %v1514_v61  ;;  %v1452_v25 = vld [vmem:[#allocation5 + $0x1f0] sm:$0xff] }
 0x353   : > { %8829 = vst [vmem:[#allocation182_spill] sm:$0xff] %v6584_v62  ;;  %8835 = vst [vmem:[#allocation141_spill] sm:$0xff] %v6594_v35  ;;  %v6604_v58 = vpack.c.bf16 %v2920_v20, %v2916_v55  ;;  %v6606_v38 = vsub.f32 %v1446_v17, %v2916_v55  ;;  %v6608_v13 = vsub.f32 %v1448_v18, %v2920_v20  ;;  %v2924_v18 = vand.u32 4294901760, %v1450_v31  ;;  %v8848_v55 = vld [vmem:[#allocation13_spill] sm:$0xff]  ;;  %v8849_v20 = vld [vmem:[#allocation14_spill] sm:$0xff] }
 0x354   : > { %8837 = vst [vmem:[#allocation184_spill] sm:$0xff] %v6601_v28  ;;  %v6610_v5 = vsub.f32 %v1515_v60, %v1638_v10  ;;  %v6612_v63 = vpack.c.bf16 %v1642_v41, %v1638_v10  ;;  %v6616_v59 = vpack.c.bf16 %v2926_v52, %v2922_v40  ;;  %v6618_v14 = vsub.f32 %v1451_v48, %v2922_v40  ;;  %v8850_v41 = vld [vmem:[#allocation15_spill] sm:$0xff] }
 0x355   : > { %8838 = vst [vmem:[#allocation185_spill] sm:$0xff] %v6604_v58  ;;  %8839 = vst [vmem:[#allocation186_spill] sm:$0xff] %v6606_v38  ;;  %4868 = vmatpush1.bf16.msra.mxu1 %v6604_v58  ;;  %v6621_v2 = vsub.f32 %v1453_v56, %v2926_v52  ;;  %v6623_v17 = vsub.f32 %v1514_v61, %v1640_v33  ;;  %v2928_v60 = vand.u32 4294901760, %v1452_v25  ;;  %v8331_v19 = vand.u32 4294901760, %v8848_v55  ;;  %v8854_v61 = vld [vmem:[#allocation17_spill] sm:$0xff] }
 0x356   : > { %8840 = vst [vmem:[#allocation187_spill] sm:$0xff] %v6608_v13  ;;  %8841 = vst [vmem:[#allocation188_spill] sm:$0xff] %v6610_v5  ;;  %4486 = vmatprep.subr.bf16.mxu0 %v6612_v63  ;;  %4870 = vmatprep.subr.bf16.mxu1 %v6616_v59  ;;  %v8333_v10 = vand.u32 4294901760, %v8849_v20  ;;  %v6630_v40 = vpack.c.bf16 %v1644_v39, %v1640_v33  ;;  %v6632_v58 = vsub.f32 %v1516_v46, %v1644_v39 }
 0x357   : > { %8842 = vst [vmem:[#allocation189_spill] sm:$0xff] %v6612_v63  ;;  %8844 = vst [vmem:[#allocation191_spill] sm:$0xff] %v6616_v59  ;;  %v6634_v52 = vsub.f32 %v1450_v31, %v2924_v18  ;;  %v8341_v56 = vand.u32 4294901760, %v8854_v61  ;;  %v6637_v8 = vpack.c.bf16 %v2928_v60, %v2924_v18  ;;  %v6639_v63 = vsub.f32 %v1452_v25, %v2928_v60 }
 0x358   : > { %8845 = vst [vmem:[#allocation192_spill] sm:$0xff] %v6618_v14  ;;  %8846 = vst [vmem:[#allocation193_spill] sm:$0xff] %v6621_v2  ;;  %v1666_v59 = vsub.f32 %v8848_v55, %v8331_v19  ;;  %v1678_v48 = vsub.f32 %v8849_v20, %v8333_v10  ;;  %4488 = vmatpush1.bf16.msra.mxu0 %v6630_v40  ;;  %v8857_v39 = vand.u32 4294901760, %v8850_v41  ;;  %v8858_v10 = vld [vmem:[#allocation19_spill] sm:$0xff]  ;;  %v8859_v20 = vld [vmem:[#allocation20_spill] sm:$0xff] }
 0x359   : > { %8847 = vst [vmem:[#allocation194_spill] sm:$0xff] %v6623_v17  ;;  %8851 = vst [vmem:[#allocation195_spill] sm:$0xff] %v6630_v40  ;;  %v2962_v33 = vsub.f32 %v8854_v61, %v8341_v56  ;;  %4872 = vmatpush1.bf16.msra.mxu1 %v6637_v8  ;;  %v8342_v40 = vand.u32 4294901760, %v8858_v10  ;;  %v8347_v0 = vand.u32 4294901760, %v8859_v20  ;;  %v8867_v61 = vld [vmem:[#allocation32_spill] sm:$0xff]  ;;  %v8888_v2 = vld [vmem:[#allocation46_spill] sm:$0xff] }
 0x35a   : > { %8852 = vst [vmem:[#allocation196_spill] sm:$0xff] %v6632_v58  ;;  %8853 = vst [vmem:[#allocation197_spill] sm:$0xff] %v6634_v52  ;;  %v2950_v46 = vsub.f32 %v8850_v41, %v8857_v39  ;;  %v1667_v31 = vand.u32 4294901760, %v1666_v59  ;;  %v1679_v25 = vand.u32 4294901760, %v1678_v48  ;;  %v8351_v39 = vand.u32 4294901760, %v8860_v22  ;;  %v8861_v41 = vld [vmem:[#allocation23_spill] sm:$0xff] }
 0x35b   : > { %8855 = vst [vmem:[#allocation198_spill] sm:$0xff] %v6637_v8  ;;  %8856 = vst [vmem:[#allocation199_spill] sm:$0xff] %v6639_v63  ;;  %v2963_v60 = vand.u32 4294901760, %v2962_v33  ;;  %v8355_v36 = vand.u32 4294901760, %v8861_v41  ;;  %v1672_v56 = vsub.f32 %v8858_v10, %v8342_v40  ;;  %v1684_v59 = vsub.f32 %v8859_v20, %v8347_v0  ;;  %v8862_v48 = vld [vmem:[#allocation24_spill] sm:$0xff]  ;;  %v8863_v33 = vld [vmem:[#allocation26_spill] sm:$0xff] }
 0x35c   : > { %v2951_v18 = vand.u32 4294901760, %v2950_v46  ;;  %v4489_v19 = vpack.c.bf16 %v1679_v25, %v1667_v31  ;;  %v8864_v25 = vld [vmem:[#allocation28_spill] sm:$0xff]  ;;  %v8866_v8 = vld [vmem:[#allocation30_spill] sm:$0xff]  ;;  %v8868_v20 = vld [vmem:[#allocation33_spill] sm:$0xff]  ;;  %v8874_v10 = vand.u32 4294901760, %v8862_v48  ;;  %v8875_v34 = vand.u32 4294901760, %v8863_v33 }
 0x35d   : > { %v1685_v46 = vand.u32 4294901760, %v1684_v59  ;;  %v8873_v63 = vld [vmem:[#allocation41_spill] sm:$0xff]  ;;  %v8876_v24 = vand.u32 4294901760, %v8864_v25  ;;  %v8880_v31 = vand.u32 4294901760, %v8868_v20  ;;  %v8887_v58 = vld [vmem:[#allocation44_spill] sm:$0xff] }
 0x35e   : > { %v4873_v55 = vpack.c.bf16 %v2963_v60, %v2951_v18  ;;  %4490 = vmatprep.subr.bf16.mxu0 %v4489_v19  ;;  %v2968_v19 = vsub.f32 %v8861_v41, %v8355_v36  ;;  %v8865_v60 = vld [vmem:[#allocation29_spill] sm:$0xff]  ;;  %v1673_v41 = vand.u32 4294901760, %v1672_v56  ;;  %v1690_v0 = vsub.f32 %v8862_v48, %v8874_v10 }
 0x35f   : > { %v2974_v36 = vsub.f32 %v8864_v25, %v8876_v24  ;;  %v8877_v56 = vand.u32 4294901760, %v8865_v60  ;;  %v8878_v18 = vand.u32 4294901760, %v8866_v8 }
 0x360   : > { %4874 = vmatprep.subr.bf16.mxu1 %v4873_v55  ;;  %v2956_v55 = vsub.f32 %v8860_v22, %v8351_v39  ;;  %v8870_v22 = vld [vmem:[#allocation37_spill] sm:$0xff]  ;;  %v2969_v40 = vand.u32 4294901760, %v2968_v19  ;;  %v1702_v39 = vsub.f32 %v8863_v33, %v8875_v34  ;;  %v8879_v19 = vand.u32 4294901760, %v8867_v61 }
 0x361   : > { %v2986_v59 = vsub.f32 %v8865_v60, %v8877_v56  ;;  %v2980_v34 = vsub.f32 %v8868_v20, %v8880_v31  ;;  %v8881_v33 = vand.u32 4294901760, %v8869_v26  ;;  %v8882_v25 = vand.u32 4294901760, %v8870_v22  ;;  %v8886_v20 = vld [vmem:[#allocation43_spill] sm:$0xff] }
 0x362   : > { %v2957_v52 = vand.u32 4294901760, %v2956_v55  ;;  %v1696_v55 = vsub.f32 %v8866_v8, %v8878_v18  ;;  %v1708_v10 = vsub.f32 %v8867_v61, %v8879_v19  ;;  %v8883_v60 = vand.u32 4294901760, %v8871_v43 }
 0x363   : > { %v2992_v24 = vsub.f32 %v8869_v26, %v8881_v33  ;;  %v1714_v56 = vsub.f32 %v8870_v22, %v8882_v25  ;;  %v8884_v8 = vand.u32 4294901760, %v8872_v3  ;;  %v8885_v61 = vand.u32 4294901760, %v8873_v63  ;;  %v8889_v22 = vld [vmem:[#allocation47_spill] sm:$0xff] }
 0x364   : > { %v1726_v18 = vsub.f32 %v8871_v43, %v8883_v60  ;;  %v8381_v48 = vand.u32 4294901760, %v8886_v20  ;;  %v1691_v26 = vand.u32 4294901760, %v1690_v0  ;;  %v1703_v17 = vand.u32 4294901760, %v1702_v39 }
 0x365   : > { %v2998_v19 = vsub.f32 %v8872_v3, %v8884_v8  ;;  %v3010_v31 = vsub.f32 %v8873_v63, %v8885_v61  ;;  %v8380_v25 = vand.u32 4294901760, %v8888_v2  ;;  %v8383_v14 = vand.u32 4294901760, %v8889_v22 }
 0x366   : > { %v2975_v37 = vand.u32 4294901760, %v2974_v36  ;;  %v2987_v60 = vand.u32 4294901760, %v2986_v59  ;;  %v1697_v43 = vand.u32 4294901760, %v1696_v55  ;;  %v1709_v5 = vand.u32 4294901760, %v1708_v10  ;;  %v8891_v55 = vld [vmem:[#allocation49_spill] sm:$0xff] }
 0x367   : > { %v2981_v13 = vand.u32 4294901760, %v2980_v34  ;;  %v2993_v8 = vand.u32 4294901760, %v2992_v24  ;;  %v1715_v3 = vand.u32 4294901760, %v1714_v56  ;;  %v1727_v38 = vand.u32 4294901760, %v1726_v18  ;;  %v8892_v34 = vld [vmem:[#allocation50_spill] sm:$0xff] }
 0x368   : > { %v2999_v28 = vand.u32 4294901760, %v2998_v19  ;;  %v3011_v61 = vand.u32 4294901760, %v3010_v31  ;;  %v6726_v33 = vsub.f32 %v8886_v20, %v8381_v48  ;;  %v8890_v0 = vand.u32 4294901760, %v8887_v58  ;;  %v8899_v48 = vld [vmem:[#allocation52_spill] sm:$0xff] }
 0x369   : > { %v6736_v36 = vsub.f32 %v8888_v2, %v8380_v25  ;;  %v6741_v59 = vsub.f32 %v8889_v22, %v8383_v14  ;;  %v8386_v24 = vand.u32 4294901760, %v8892_v34  ;;  %v6745_v56 = vpack.c.bf16 %v1685_v46, %v1673_v41  ;;  %v8900_v14 = vld [vmem:[#allocation53_spill] sm:$0xff]  ;;  %v8913_v20 = vld [vmem:[#allocation68_spill] sm:$0xff] }
 0x36a   : > { %v6731_v39 = vsub.f32 %v8887_v58, %v8890_v0  ;;  %v6747_v18 = vpack.c.bf16 %v2969_v40, %v2957_v52  ;;  %v6749_v19 = vpack.c.bf16 %v1703_v17, %v1691_v26  ;;  %v6751_v31 = vpack.c.bf16 %v2987_v60, %v2975_v37  ;;  %v8906_v52 = vld [vmem:[#allocation58_spill] sm:$0xff] }
 0x36b   : > { %8893 = vst [vmem:[#allocation200_spill] sm:$0xff] %v6745_v56  ;;  %v6753_v0 = vpack.c.bf16 %v1709_v5, %v1697_v43  ;;  %v6755_v25 = vpack.c.bf16 %v2993_v8, %v2981_v13  ;;  %v8391_v2 = vand.u32 4294901760, %v8899_v48  ;;  %v8393_v22 = vand.u32 4294901760, %v8900_v14  ;;  %v8930_v56 = vld [vmem:[#allocation75_spill] sm:$0xff] }
 0x36c   : > { %8894 = vst [vmem:[#allocation201_spill] sm:$0xff] %v6747_v18  ;;  %8895 = vst [vmem:[#allocation202_spill] sm:$0xff] %v6749_v19  ;;  %v6759_v58 = vpack.c.bf16 %v1727_v38, %v1715_v3  ;;  %v6761_v10 = vpack.c.bf16 %v3011_v61, %v2999_v28  ;;  %v1721_v41 = vand.u32 4294901760, %v6726_v33  ;;  %v1733_v40 = vand.u32 4294901760, %v6731_v39  ;;  %v8904_v3 = vld [vmem:[#allocation54_spill] sm:$0xff]  ;;  %v8905_v28 = vld [vmem:[#allocation56_spill] sm:$0xff] }
 0x36d   : > { %8896 = vst [vmem:[#allocation203_spill] sm:$0xff] %v6751_v31  ;;  %8897 = vst [vmem:[#allocation204_spill] sm:$0xff] %v6753_v0  ;;  %v3005_v26 = vand.u32 4294901760, %v6736_v36  ;;  %v3017_v37 = vand.u32 4294901760, %v6741_v59  ;;  %v8903_v43 = vand.u32 4294901760, %v8891_v55  ;;  %v1750_v13 = vsub.f32 %v8892_v34, %v8386_v24  ;;  %v8907_v33 = vld [vmem:[#allocation59_spill] sm:$0xff] }
 0x36e   : > { %8898 = vst [vmem:[#allocation205_spill] sm:$0xff] %v6755_v25  ;;  %8901 = vst [vmem:[#allocation206_spill] sm:$0xff] %v6759_v58  ;;  %v3022_v8 = vsub.f32 %v8899_v48, %v8391_v2  ;;  %v3034_v61 = vsub.f32 %v8900_v14, %v8393_v22  ;;  %v8908_v39 = vld [vmem:[#allocation61_spill] sm:$0xff]  ;;  %v8909_v59 = vld [vmem:[#allocation62_spill] sm:$0xff]  ;;  %v8916_v22 = vand.u32 4294901760, %v8904_v3  ;;  %v8918_v17 = vand.u32 4294901760, %v8906_v52 }
 0x36f   : > { %8902 = vst [vmem:[#allocation207_spill] sm:$0xff] %v6761_v10  ;;  %v1738_v5 = vsub.f32 %v8891_v55, %v8903_v43  ;;  %v8910_v24 = vld [vmem:[#allocation63_spill] sm:$0xff]  ;;  %v8911_v34 = vld [vmem:[#allocation65_spill] sm:$0xff]  ;;  %v1751_v10 = vand.u32 4294901760, %v1750_v13  ;;  %v8914_v58 = vld [vmem:[#allocation70_spill] sm:$0xff]  ;;  %v8917_v43 = vand.u32 4294901760, %v8905_v28 }
 0x370   : > { %v8912_v55 = vld [vmem:[#allocation67_spill] sm:$0xff]  ;;  %v1744_v36 = vsub.f32 %v8904_v3, %v8916_v22  ;;  %v3028_v46 = vsub.f32 %v8906_v52, %v8918_v17  ;;  %v8919_v60 = vand.u32 4294901760, %v8907_v33  ;;  %v3023_v13 = vand.u32 4294901760, %v3022_v8  ;;  %v8929_v0 = vld [vmem:[#allocation74_spill] sm:$0xff] }
 0x371   : > { %v1739_v63 = vand.u32 4294901760, %v1738_v5  ;;  %v8915_v48 = vld [vmem:[#allocation71_spill] sm:$0xff]  ;;  %v1756_v38 = vsub.f32 %v8905_v28, %v8917_v43  ;;  %v3035_v2 = vand.u32 4294901760, %v3034_v61  ;;  %v8920_v25 = vand.u32 4294901760, %v8908_v39 }
 0x372   : > { %v3040_v5 = vsub.f32 %v8907_v33, %v8919_v60  ;;  %v8921_v22 = vand.u32 4294901760, %v8909_v59  ;;  %v8922_v43 = vand.u32 4294901760, %v8910_v24  ;;  %v8923_v17 = vand.u32 4294901760, %v8911_v34 }
 0x373   : > { %v1762_v14 = vsub.f32 %v8908_v39, %v8920_v25  ;;  %v8924_v60 = vand.u32 4294901760, %v8912_v55  ;;  %v8925_v61 = vand.u32 4294901760, %v8913_v20  ;;  %v8926_v39 = vand.u32 4294901760, %v8914_v58 }
 0x374   : > { %v1774_v3 = vsub.f32 %v8909_v59, %v8921_v22  ;;  %v3046_v28 = vsub.f32 %v8910_v24, %v8922_v43  ;;  %v3058_v52 = vsub.f32 %v8911_v34, %v8923_v17  ;;  %v8927_v59 = vand.u32 4294901760, %v8915_v48  ;;  %v8928_v24 = vld [vmem:[#allocation73_spill] sm:$0xff] }
 0x375   : > { %v1768_v8 = vsub.f32 %v8912_v55, %v8924_v60  ;;  %v1780_v25 = vsub.f32 %v8913_v20, %v8925_v61  ;;  %v3052_v22 = vsub.f32 %v8914_v58, %v8926_v39  ;;  %v8413_v33 = vand.u32 4294901760, %v8928_v24  ;;  %v8931_v20 = vld [vmem:[#allocation77_spill] sm:$0xff] }
 0x376   : > { %v3064_v43 = vsub.f32 %v8915_v48, %v8927_v59  ;;  %v1745_v34 = vand.u32 4294901760, %v1744_v36  ;;  %v1757_v31 = vand.u32 4294901760, %v1756_v38  ;;  %v3029_v19 = vand.u32 4294901760, %v3028_v46  ;;  %v8934_v36 = vld [vmem:[#allocation80_spill] sm:$0xff] }
 0x377   : > { %v3041_v60 = vand.u32 4294901760, %v3040_v5  ;;  %v1763_v55 = vand.u32 4294901760, %v1762_v14  ;;  %v1775_v18 = vand.u32 4294901760, %v1774_v3  ;;  %v8412_v61 = vand.u32 4294901760, %v8930_v56 }
 0x378   : > { %v8411_v35 = vand.u32 4294901760, %v8931_v20  ;;  %v3047_v47 = vand.u32 4294901760, %v3046_v28  ;;  %v3059_v39 = vand.u32 4294901760, %v3058_v52  ;;  %v1769_v58 = vand.u32 4294901760, %v1768_v8  ;;  %v8933_v28 = vld [vmem:[#allocation79_spill] sm:$0xff] }
 0x379   : > { %v1781_v62 = vand.u32 4294901760, %v1780_v25  ;;  %v3053_v57 = vand.u32 4294901760, %v3052_v22  ;;  %v3065_v59 = vand.u32 4294901760, %v3064_v43  ;;  %v6834_v17 = vsub.f32 %v8928_v24, %v8413_v33  ;;  %v8948_v33 = vld [vmem:[#allocation92_spill] sm:$0xff]  ;;  %v8957_v24 = vld [vmem:[#allocation103_spill] sm:$0xff] }
 0x37a   : > { %v8932_v38 = vand.u32 4294901760, %v8929_v0  ;;  %v6841_v3 = vpack.c.bf16 %v1733_v40, %v1721_v41  ;;  %v6843_v46 = vpack.c.bf16 %v3017_v37, %v3005_v26  ;;  %v8410_v52 = vand.u32 4294901760, %v8933_v28 }
 0x37b   : > { %v8414_v5 = vand.u32 4294901760, %v8934_v36  ;;  %v6847_v8 = vpack.c.bf16 %v1751_v10, %v1739_v63  ;;  %v6849_v25 = vpack.c.bf16 %v3035_v2, %v3023_v13  ;;  %v6854_v22 = vsub.f32 %v8930_v56, %v8412_v61  ;;  %v8952_v56 = vld [vmem:[#allocation102_spill] sm:$0xff] }
 0x37c   : > { %v6839_v14 = vsub.f32 %v8929_v0, %v8932_v38  ;;  %v6859_v41 = vsub.f32 %v8931_v20, %v8411_v35  ;;  %v6861_v40 = vpack.c.bf16 %v1757_v31, %v1745_v34  ;;  %v6863_v26 = vpack.c.bf16 %v3041_v60, %v3029_v19  ;;  %v8947_v35 = vld [vmem:[#allocation91_spill] sm:$0xff]  ;;  %v8951_v20 = vld [vmem:[#allocation101_spill] sm:$0xff] }
 0x37d   : > { %v6865_v37 = vpack.c.bf16 %v1775_v18, %v1763_v55  ;;  %v6867_v63 = vpack.c.bf16 %v3059_v39, %v3047_v47  ;;  %v6869_v2 = vpack.c.bf16 %v1781_v62, %v1769_v58  ;;  %v6871_v10 = vpack.c.bf16 %v3065_v59, %v3053_v57  ;;  %v8941_v55 = vld [vmem:[#allocation82_spill] sm:$0xff]  ;;  %v8942_v47 = vld [vmem:[#allocation83_spill] sm:$0xff]  ;;  %v8943_v62 = vld [vmem:[#allocation85_spill] sm:$0xff] }
 0x37e   : > { %8935 = vst [vmem:[#allocation208_spill] sm:$0xff] %v6861_v40  ;;  %8936 = vst [vmem:[#allocation209_spill] sm:$0xff] %v6863_v26  ;;  %v1787_v13 = vand.u32 4294901760, %v6834_v17  ;;  %v1799_v43 = vand.u32 4294901760, %v6839_v14  ;;  %v1792_v38 = vsub.f32 %v8933_v28, %v8410_v52  ;;  %v1804_v34 = vsub.f32 %v8934_v36, %v8414_v5  ;;  %v8944_v17 = vld [vmem:[#allocation86_spill] sm:$0xff]  ;;  %v8945_v39 = vld [vmem:[#allocation87_spill] sm:$0xff] }
 0x37f   : > { %8937 = vst [vmem:[#allocation210_spill] sm:$0xff] %v6865_v37  ;;  %8938 = vst [vmem:[#allocation211_spill] sm:$0xff] %v6867_v63  ;;  %v3071_v58 = vand.u32 4294901760, %v6854_v22  ;;  %v3083_v57 = vand.u32 4294901760, %v6859_v41  ;;  %v8946_v14 = vld [vmem:[#allocation89_spill] sm:$0xff]  ;;  %v8949_v36 = vld [vmem:[#allocation94_spill] sm:$0xff] }
 0x380   : > { %8939 = vst [vmem:[#allocation212_spill] sm:$0xff] %v6869_v2  ;;  %8940 = vst [vmem:[#allocation213_spill] sm:$0xff] %v6871_v10  ;;  %v8950_v28 = vld [vmem:[#allocation95_spill] sm:$0xff]  ;;  %v1793_v0 = vand.u32 4294901760, %v1792_v38  ;;  %v1805_v31 = vand.u32 4294901760, %v1804_v34  ;;  %v8953_v60 = vand.u32 4294901760, %v8941_v55 }
 0x381   : > { %v8954_v52 = vand.u32 4294901760, %v8942_v47  ;;  %v8955_v5 = vand.u32 4294901760, %v8943_v62  ;;  %v8956_v19 = vand.u32 4294901760, %v8944_v17  ;;  %v8958_v38 = vld [vmem:[#allocation104_spill] sm:$0xff]  ;;  %v8959_v48 = vand.u32 4294901760, %v8945_v39  ;;  %v8967_v2 = vld [vmem:[#allocation105_spill] sm:$0xff] }
 0x382   : > { %v3076_v59 = vsub.f32 %v8941_v55, %v8953_v60  ;;  %v8960_v55 = vand.u32 4294901760, %v8946_v14  ;;  %v8963_v41 = vand.u32 4294901760, %v8949_v36  ;;  %v8971_v63 = vand.u32 4294901760, %v8967_v2 }
 0x383   : > { %v3088_v61 = vsub.f32 %v8942_v47, %v8954_v52  ;;  %v1810_v18 = vsub.f32 %v8943_v62, %v8955_v5  ;;  %v1822_v22 = vsub.f32 %v8944_v17, %v8956_v19  ;;  %v3094_v60 = vsub.f32 %v8945_v39, %v8959_v48 }
 0x384   : > { %v3106_v52 = vsub.f32 %v8946_v14, %v8960_v55  ;;  %v8961_v47 = vand.u32 4294901760, %v8947_v35  ;;  %v8962_v62 = vand.u32 4294901760, %v8948_v33  ;;  %v3100_v34 = vsub.f32 %v8949_v36, %v8963_v41 }
 0x385   : > { %v8964_v17 = vand.u32 4294901760, %v8950_v28  ;;  %v8965_v39 = vand.u32 4294901760, %v8951_v20  ;;  %v8966_v14 = vand.u32 4294901760, %v8952_v56  ;;  %v3089_v10 = vand.u32 4294901760, %v3088_v61 }
 0x386   : > { %v1816_v5 = vsub.f32 %v8947_v35, %v8961_v47  ;;  %v1828_v19 = vsub.f32 %v8948_v33, %v8962_v62  ;;  %v3077_v35 = vand.u32 4294901760, %v3076_v59  ;;  %v8968_v33 = vld [vmem:[#allocation106_spill] sm:$0xff]  ;;  %v1811_v37 = vand.u32 4294901760, %v1810_v18 }
 0x387   : > { %v3112_v48 = vsub.f32 %v8950_v28, %v8964_v17  ;;  %v1834_v55 = vsub.f32 %v8951_v20, %v8965_v39  ;;  %v1846_v47 = vsub.f32 %v8952_v56, %v8966_v14  ;;  %v1823_v41 = vand.u32 4294901760, %v1822_v22 }
 0x388   : > { %v8969_v36 = vand.u32 4294901760, %v8957_v24  ;;  %v8970_v28 = vand.u32 4294901760, %v8958_v38  ;;  %v3095_v20 = vand.u32 4294901760, %v3094_v60  ;;  %v3107_v26 = vand.u32 4294901760, %v3106_v52  ;;  %v8974_v60 = vld [vmem:[#allocation108_spill] sm:$0xff] }
 0x389   : > { %v1817_v40 = vand.u32 4294901760, %v1816_v5  ;;  %v1829_v14 = vand.u32 4294901760, %v1828_v19  ;;  %v3101_v59 = vand.u32 4294901760, %v3100_v34  ;;  %v3113_v61 = vand.u32 4294901760, %v3112_v48  ;;  %v8975_v48 = vld [vmem:[#allocation112_spill] sm:$0xff] }
 0x38a   : > { %v3118_v17 = vsub.f32 %v8957_v24, %v8969_v36  ;;  %v3130_v39 = vsub.f32 %v8958_v38, %v8970_v28  ;;  %v1835_v56 = vand.u32 4294901760, %v1834_v55  ;;  %v1847_v62 = vand.u32 4294901760, %v1846_v47  ;;  %v8973_v24 = vld [vmem:[#allocation107_spill] sm:$0xff] }
 0x38b   : > { %v6944_v18 = vsub.f32 %v8967_v2, %v8971_v63  ;;  %v8972_v22 = vand.u32 4294901760, %v8968_v33  ;;  %v8439_v52 = vand.u32 4294901760, %v8974_v60  ;;  %v6953_v5 = vpack.c.bf16 %v1799_v43, %v1787_v13 }
 0x38c   : > { %v3119_v34 = vand.u32 4294901760, %v3118_v17  ;;  %v3131_v19 = vand.u32 4294901760, %v3130_v39  ;;  %v8438_v55 = vand.u32 4294901760, %v8975_v48  ;;  %v6956_v47 = vpack.c.bf16 %v3083_v57, %v3071_v58  ;;  %v8989_v57 = vld [vmem:[#allocation120_spill] sm:$0xff] }
 0x38d   : > { %v6949_v36 = vsub.f32 %v8968_v33, %v8972_v22  ;;  %v6958_v38 = vpack.c.bf16 %v1805_v31, %v1793_v0  ;;  %v6960_v63 = vpack.c.bf16 %v3089_v10, %v3077_v35  ;;  %v6962_v2 = vpack.c.bf16 %v1823_v41, %v1811_v37  ;;  %v8984_v10 = vld [vmem:[#allocation114_spill] sm:$0xff]  ;;  %v8985_v31 = vld [vmem:[#allocation115_spill] sm:$0xff] }
 0x38e   : > { %v6964_v22 = vpack.c.bf16 %v3107_v26, %v3095_v20  ;;  %v6966_v33 = vpack.c.bf16 %v1829_v14, %v1817_v40  ;;  %v6968_v28 = vpack.c.bf16 %v3113_v61, %v3101_v59  ;;  %v6970_v13 = vpack.c.bf16 %v1847_v62, %v1835_v56  ;;  %v8983_v40 = vld [vmem:[#allocation113_spill] sm:$0xff]  ;;  %v8986_v14 = vld [vmem:[#allocation116_spill] sm:$0xff] }
 0x38f   : > { %8976 = vst [vmem:[#allocation214_spill] sm:$0xff] %v6962_v2  ;;  %v8981_v58 = vand.u32 4294901760, %v8973_v24  ;;  %v6982_v35 = vsub.f32 %v8974_v60, %v8439_v52  ;;  %v6984_v20 = vpack.c.bf16 %v3131_v19, %v3119_v34  ;;  %v6989_v56 = vsub.f32 %v8975_v48, %v8438_v55  ;;  %v8987_v61 = vld [vmem:[#allocation117_spill] sm:$0xff]  ;;  %v8988_v55 = vld [vmem:[#allocation119_spill] sm:$0xff] }
 0x390   : > { %8977 = vst [vmem:[#allocation215_spill] sm:$0xff] %v6964_v22  ;;  %8978 = vst [vmem:[#allocation216_spill] sm:$0xff] %v6966_v33  ;;  %v8440_v37 = vand.u32 4294901760, %v6462_v54  ;;  %v8441_v41 = vand.u32 4294901760, %v6467_v23  ;;  %v8443_v39 = vand.u32 4294901760, %v6473_v27  ;;  %v8447_v59 = vand.u32 4294901760, %v6483_v4 }
 0x391   : > { %8979 = vst [vmem:[#allocation217_spill] sm:$0xff] %v6968_v28  ;;  %8980 = vst [vmem:[#allocation218_spill] sm:$0xff] %v6970_v13  ;;  %v6977_v0 = vsub.f32 %v8973_v24, %v8981_v58  ;;  %v8446_v58 = vand.u32 4294901760, %v6478_v53  ;;  %v8448_v62 = vand.u32 4294901760, %v6488_v11  ;;  %v8449_v52 = vand.u32 4294901760, %v6494_v45  ;;  %v5320_v13 = vld [vmem:[%s5714_s12 + $0x10] sm:$0xff] }
 0x392   : > { %8982 = vst [vmem:[#allocation219_spill] sm:$0xff] %v6984_v20  ;;  %v3214_v19 = vsub.f32 %v6462_v54, %v8440_v37  ;;  %v3226_v17 = vsub.f32 %v6467_v23, %v8441_v41  ;;  %v1936_v43 = vsub.f32 %v6473_v27, %v8443_v39  ;;  %v3220_v39 = vsub.f32 %v6483_v4, %v8447_v59  ;;  %v5322_v59 = vld [vmem:[%s5714_s12] sm:$0xff]  ;;  %v9103_v27 = vld [vmem:[#allocation182_spill] sm:$0xff] }
 0x393   : > { %v1948_v37 = vsub.f32 %v6478_v53, %v8446_v58  ;;  %v3232_v58 = vsub.f32 %v6488_v11, %v8448_v62  ;;  %v1954_v20 = vsub.f32 %v6494_v45, %v8449_v52 }
 0x394   : > { %v3215_v34 = vand.u32 4294901760, %v3214_v19  ;;  %v3227_v26 = vand.u32 4294901760, %v3226_v17  ;;  %v1937_v48 = vand.u32 4294901760, %v1936_v43  ;;  %v5321_v43 = vld [vmem:[%s5714_s12 + $0x18] sm:$0xff]  ;;  %v3221_v52 = vand.u32 4294901760, %v3220_v39  ;;  %v5324_v39 = vld [vmem:[%s5714_s12 + $0x20] sm:$0xff] }
 0x395   : > { %v1949_v24 = vand.u32 4294901760, %v1948_v37  ;;  %v5323_v37 = vld [vmem:[%s5714_s12 + $0x8] sm:$0xff]  ;;  %v3233_v41 = vand.u32 4294901760, %v3232_v58 }
 0x396   : > { %v7039_v62 = vpack.c.bf16 %v3227_v26, %v3215_v34  ;;  %v8452_v26 = vand.u32 4294901760, %v6504_v16  ;;  %v5325_v58 = vld [vmem:[%s5714_s12 + $0x28] sm:$0xff] }
 0x397   : > { %v7041_v2 = vpack.c.bf16 %v1949_v24, %v1937_v48  ;;  %v8453_v24 = vand.u32 4294901760, %v6509_v1  ;;  %v8460_v48 = vand.u32 4294901760, %v6514_v42 }
 0x398   : > { %8994 = vst [vmem:[#allocation224_spill] sm:$0xff] %v7039_v62 }
 0x399   : > { %8995 = vst [vmem:[#allocation225_spill] sm:$0xff] %v7041_v2 }
 0x3a3   : > { %v1335_v19 = vpop.permute.xlu1 %1334  ;;  %v1331_v60 = vpop.permute.xlu0 %1330 }
 0x3a4   : > { %v7028_v17 = vmul.f32 %v5320_v13, %v1335_v19  ;;  %v7031_v28 = vmul.f32 %v5321_v43, %v1335_v19  ;;  %v7034_v33 = vmul.f32 %v5322_v59, %v1331_v60  ;;  %v7037_v22 = vmul.f32 %v5323_v37, %v1331_v60 }
 0x3a5   : > { %v1955_v43 = vand.u32 4294901760, %v1954_v20  ;;  %v8996_v59 = vand.u32 4294901760, %v6499_v9  ;;  %v7050_v37 = vpack.c.bf16 %v3233_v41, %v3221_v52  ;;  %v3238_v52 = vsub.f32 %v6504_v16, %v8452_v26 }
 0x3a6   : > { %8990 = vst [vmem:[#allocation220_spill] sm:$0xff] %v7028_v17  ;;  %8991 = vst [vmem:[#allocation221_spill] sm:$0xff] %v7031_v28  ;;  %v1352_v13 = vadd.f32 %v7028_v17, %v7034_v33  ;;  %v1361_v19 = vadd.f32 %v7031_v28, %v7037_v22  ;;  %v3250_v41 = vsub.f32 %v6509_v1, %v8453_v24 }
 0x3a7   : > { %8992 = vst [vmem:[#allocation222_spill] sm:$0xff] %v7034_v33  ;;  %8993 = vst [vmem:[#allocation223_spill] sm:$0xff] %v7037_v22  ;;  %v1966_v45 = vsub.f32 %v6499_v9, %v8996_v59  ;;  %v1339_v60 = vpop.permute.xlu1 %1338  ;;  %v1960_v59 = vsub.f32 %v6514_v42, %v8460_v48  ;;  %v3239_v24 = vand.u32 4294901760, %v3238_v52  ;;  %v5326_v9 = vld [vmem:[%s5714_s12 + $0x30] sm:$0xff] }
 0x3a8   : > { %8997 = vst [vmem:[#allocation226_spill] sm:$0xff] %v7050_v37  ;;  %v7056_v34 = vmul.f32 %v5324_v39, %v1339_v60  ;;  %v7059_v2 = vmul.f32 %v5325_v58, %v1339_v60  ;;  %v3251_v1 = vand.u32 4294901760, %v3250_v41  ;;  %v5327_v60 = vld [vmem:[%s5714_s12 + $0x38] sm:$0xff] }
 0x3a9   : > { %v1967_v20 = vand.u32 4294901760, %v1966_v45  ;;  %v1961_v16 = vand.u32 4294901760, %v1960_v59 }
 0x3aa   : > { %8998 = vst [vmem:[#allocation227_spill] sm:$0xff] %v7056_v34  ;;  %8999 = vst [vmem:[#allocation228_spill] sm:$0xff] %v7059_v2  ;;  %v1353_v39 = vadd.f32 %v1352_v13, %v7056_v34  ;;  %v1362_v45 = vadd.f32 %v1361_v19, %v7059_v2  ;;  %v1372_v58 = vmax.f32 %v7034_v33, %v7056_v34  ;;  %v9003_v13 = vand.u32 4294901760, %v6519_v30 }
 0x3ab   : > { %v1381_v26 = vmax.f32 %v7037_v22, %v7059_v2  ;;  %v1343_v62 = vpop.permute.xlu1 %1342  ;;  %v7078_v37 = vpack.c.bf16 %v1967_v20, %v1955_v43  ;;  %v9004_v34 = vand.u32 4294901760, %v6524_v32  ;;  %v7092_v22 = vpack.c.bf16 %v3251_v1, %v3239_v24 }
 0x3ac   : > { %v7081_v48 = vmul.f32 %v5326_v9, %v1343_v62  ;;  %v7084_v42 = vmul.f32 %v5327_v60, %v1343_v62  ;;  %v1972_v19 = vsub.f32 %v6519_v30, %v9003_v13  ;;  %v8471_v43 = vand.u32 4294901760, %v6529_v15 }
 0x3ad   : > { %9000 = vst [vmem:[#allocation229_spill] sm:$0xff] %v7078_v37  ;;  %v3244_v2 = vsub.f32 %v6524_v32, %v9004_v34  ;;  %9005 = vst [vmem:[#allocation232_spill] sm:$0xff] %v7092_v22  ;;  %v8474_v20 = vand.u32 4294901760, %v6534_v21 }
 0x3ae   : > { %9001 = vst [vmem:[#allocation230_spill] sm:$0xff] %v7081_v48  ;;  %9002 = vst [vmem:[#allocation231_spill] sm:$0xff] %v7084_v42  ;;  %v1354_v52 = vadd.f32 %v1353_v39, %v7081_v48  ;;  %v1363_v62 = vadd.f32 %v1362_v45, %v7084_v42  ;;  %v1373_v41 = vmax.f32 %v7028_v17, %v7081_v48  ;;  %v1973_v60 = vand.u32 4294901760, %v1972_v19 }
 0x3af   : > { %v1382_v59 = vmax.f32 %v7031_v28, %v7084_v42  ;;  %v3245_v34 = vand.u32 4294901760, %v3244_v2  ;;  %v3256_v1 = vsub.f32 %v6529_v15, %v8471_v43  ;;  %v1978_v24 = vsub.f32 %v6534_v21, %v8474_v20  ;;  %v9114_v21 = vld [vmem:[#allocation219_spill] sm:$0xff] }
 0x3b0   : > { %v1355_v13 = vrot.slane %v1354_v52, 4  ;;  %v1364_v39 = vrot.slane %v1363_v62, 4  ;;  %v1374_v9 = vmax.f32 %v1372_v58, %v1373_v41  ;;  %v7109_v33 = vpack.c.bf16 %v1973_v60, %v1961_v16 }
 0x3b1   : > { %v1383_v45 = vmax.f32 %v1381_v26, %v1382_v59  ;;  %v3257_v48 = vand.u32 4294901760, %v3256_v1  ;;  %v1979_v17 = vand.u32 4294901760, %v1978_v24  ;;  %v9007_v42 = vand.u32 4294901760, %v6539_v44 }
 0x3b2   : > { %9006 = vst [vmem:[#allocation233_spill] sm:$0xff] %v7109_v33  ;;  %v1356_v19 = vadd.f32 %v1355_v13, %v1354_v52  ;;  %v1365_v28 = vadd.f32 %v1364_v39, %v1363_v62  ;;  %v1375_v22 = vrot.slane %v1374_v9, 4  ;;  %v8477_v20 = vand.u32 4294901760, %v6544_v29 }
 0x3b3   : > { %v1990_v2 = vsub.f32 %v6539_v44, %v9007_v42  ;;  %v1384_v43 = vrot.slane %v1383_v45, 4  ;;  %v7114_v37 = vpack.c.bf16 %v3257_v48, %v3245_v34  ;;  %v8475_v58 = vand.u32 4294901760, %v6549_v50  ;;  %v9117_v44 = vld [vmem:[#allocation159_spill] sm:$0xff] }
 0x3b4   : > { %v1357_v26 = vrot.slane %v1356_v19, 2  ;;  %v1366_v16 = vrot.slane %v1365_v28, 2  ;;  %v1376_v41 = vmax.f32 %v1374_v9, %v1375_v22  ;;  %v3262_v42 = vsub.f32 %v6544_v29, %v8477_v20 }
 0x3b5   : > { %9008 = vst [vmem:[#allocation234_spill] sm:$0xff] %v7114_v37  ;;  %v1991_v15 = vand.u32 4294901760, %v1990_v2  ;;  %v1385_v59 = vmax.f32 %v1383_v45, %v1384_v43  ;;  %v3274_v48 = vsub.f32 %v6549_v50, %v8475_v58  ;;  %v8476_v52 = vand.u32 4294901760, %v6554_v6  ;;  %v9108_v50 = vld [vmem:[#allocation216_spill] sm:$0xff] }
 0x3b6   : > { %v1358_v62 = vadd.f32 %v1357_v26, %v1356_v19  ;;  %v1367_v34 = vadd.f32 %v1366_v16, %v1365_v28  ;;  %v1377_v1 = vrot.slane %v1376_v41, 2  ;;  %v3263_v13 = vand.u32 4294901760, %v3262_v42 }
 0x3b7   : > { %v7118_v60 = vpack.c.bf16 %v1991_v15, %v1979_v17  ;;  %v1386_v24 = vrot.slane %v1385_v59, 2  ;;  %v3275_v39 = vand.u32 4294901760, %v3274_v48  ;;  %v1984_v15 = vsub.f32 %v6554_v6, %v8476_v52 }
 0x3b8   : > { %v8478_v22 = vand.u32 4294901760, %v6559_v49  ;;  %v1359_v17 = vrot.slane %v1358_v62, 1  ;;  %v1368_v43 = vrot.slane %v1367_v34, 1  ;;  %v1378_v9 = vmax.f32 %v1376_v41, %v1377_v1 }
 0x3b9   : > { %9009 = vst [vmem:[#allocation235_spill] sm:$0xff] %v7118_v60  ;;  %v1387_v45 = vmax.f32 %v1385_v59, %v1386_v24  ;;  %v7131_v2 = vpack.c.bf16 %v3275_v39, %v3263_v13  ;;  %v1985_v58 = vand.u32 4294901760, %v1984_v15  ;;  %v8481_v19 = vand.u32 4294901760, %v6564_v7 }
 0x3ba   : > { %v1996_v28 = vsub.f32 %v6559_v49, %v8478_v22  ;;  %v1360_v26 = vadd.f32 %v1359_v17, %v1358_v62  ;;  %v1369_v16 = vadd.f32 %v1368_v43, %v1367_v34  ;;  %v1379_v42 = vrot.slane %v1378_v9, 1 }
 0x3bb   : > { %9010 = vst [vmem:[#allocation236_spill] sm:$0xff] %v7131_v2  ;;  %v1388_v48 = vrot.slane %v1387_v45, 1  ;;  %v3268_v20 = vsub.f32 %v6564_v7, %v8481_v19  ;;  %v8480_v41 = vand.u32 4294901760, %v6567_v51  ;;  %v8479_v59 = vand.u32 4294901760, %v6572_v12 }
 0x3bc   : > { %v1997_v52 = vand.u32 4294901760, %v1996_v28  ;;  %v1370_v1 = vmul.f32 0.03125, %v1360_v26  ;;  %v1380_v24 = vmax.f32 %v1378_v9, %v1379_v42  ;;  %v1371_v39 = vmul.f32 0.03125, %v1369_v16  ;;  %v9017_v26 = vld [vmem:[#allocation182_spill] sm:$0xff] }
 0x3bd   : > { %v1389_v13 = vmax.f32 %v1387_v45, %v1388_v48  ;;  %v3269_v22 = vand.u32 4294901760, %v3268_v20  ;;  %v3280_v62 = vsub.f32 %v6567_v51, %v8480_v41  ;;  %v2002_v34 = vsub.f32 %v6572_v12, %v8479_v59  ;;  %v9118_v51 = vld [vmem:[#allocation160_spill] sm:$0xff] }
 0x3be   : > { %v7142_v15 = vpack.c.bf16 %v1997_v52, %v1985_v58  ;;  %v7150_v17 = vand.u32 4294901760, %v1380_v24  ;;  %v7152_v43 = vand.u32 4294901760, %v1370_v1  ;;  %v7156_v9 = vand.u32 4294901760, %v1371_v39  ;;  %v9016_v52 = vld [vmem:[#allocation180_spill] sm:$0xff] }
 0x3bf   : > { %v7154_v28 = vand.u32 4294901760, %v1389_v13  ;;  %v3281_v45 = vand.u32 4294901760, %v3280_v62  ;;  %v2003_v58 = vand.u32 4294901760, %v2002_v34  ;;  %v8484_v20 = vand.u32 4294901760, %v9016_v52  ;;  %v9023_v34 = vld [vmem:[#allocation140_spill] sm:$0xff] }
 0x3c0   : > { %9011 = vst [vmem:[#allocation237_spill] sm:$0xff] %v7142_v15  ;;  %9012 = vst [vmem:[#allocation238_spill] sm:$0xff] %v7150_v17  ;;  %v8487_v16 = vand.u32 4294901760, %v9017_v26  ;;  %v7164_v48 = vsub.f32 %v1371_v39, %v7156_v9  ;;  %v7167_v59 = vsub.f32 %v1380_v24, %v7150_v17  ;;  %v7170_v41 = vsub.f32 %v1370_v1, %v7152_v43 }
 0x3c1   : > { %9013 = vst [vmem:[#allocation239_spill] sm:$0xff] %v7152_v43  ;;  %9014 = vst [vmem:[#allocation240_spill] sm:$0xff] %v7154_v28  ;;  %v7161_v42 = vsub.f32 %v1389_v13, %v7154_v28  ;;  %v7172_v19 = vpack.c.bf16 %v3281_v45, %v3269_v22  ;;  %v2014_v62 = vsub.f32 %v9016_v52, %v8484_v20  ;;  %v8488_v15 = vand.u32 4294901760, %v9023_v34  ;;  %v9024_v43 = vld [vmem:[#allocation141_spill] sm:$0xff] }
 0x3c2   : > { %9015 = vst [vmem:[#allocation241_spill] sm:$0xff] %v7156_v9  ;;  %9019 = vst [vmem:[#allocation243_spill] sm:$0xff] %v7164_v48  ;;  %v3286_v13 = vsub.f32 %v9017_v26, %v8487_v16  ;;  %v8493_v24 = vand.u32 4294901760, %v7164_v48  ;;  %v8497_v17 = vand.u32 4294901760, %v7167_v59  ;;  %v8555_v12 = vand.u32 4294901760, %v9117_v44 }
 0x3c3   : > { %9018 = vst [vmem:[#allocation242_spill] sm:$0xff] %v7161_v42  ;;  %9020 = vst [vmem:[#allocation244_spill] sm:$0xff] %v7167_v59  ;;  %v8489_v39 = vand.u32 4294901760, %v7161_v42  ;;  %v2015_v22 = vand.u32 4294901760, %v2014_v62  ;;  %v3298_v20 = vsub.f32 %v9023_v34, %v8488_v15  ;;  %v9025_v62 = vand.u32 4294901760, %v7170_v41 }
 0x3c4   : > { %9021 = vst [vmem:[#allocation245_spill] sm:$0xff] %v7170_v41  ;;  %9022 = vst [vmem:[#allocation246_spill] sm:$0xff] %v7172_v19  ;;  %v3287_v45 = vand.u32 4294901760, %v3286_v13  ;;  %v8500_v19 = vand.u32 4294901760, %v9024_v43  ;;  %v2933_v2 = vsub.f32 %v7164_v48, %v8493_v24  ;;  %v1655_v1 = vsub.f32 %v7167_v59, %v8497_v17 }
 0x3c5   : > { %v1649_v16 = vsub.f32 %v7161_v42, %v8489_v39  ;;  %v2939_v13 = vsub.f32 %v7170_v41, %v9025_v62  ;;  %v7201_v60 = vpack.c.bf16 %v2015_v22, %v2003_v58  ;;  %v3299_v15 = vand.u32 4294901760, %v3298_v20  ;;  %v9027_v39 = vld [vmem:[#allocation184_spill] sm:$0xff]  ;;  %v9029_v58 = vld [vmem:[#allocation186_spill] sm:$0xff]  ;;  %v9030_v20 = vld [vmem:[#allocation187_spill] sm:$0xff] }
 0x3c6   : > { %v2008_v37 = vsub.f32 %v9024_v43, %v8500_v19  ;;  %v8503_v42 = vand.u32 4294901760, %v9027_v39  ;;  %v2934_v34 = vand.u32 4294901760, %v2933_v2  ;;  %v1656_v24 = vand.u32 4294901760, %v1655_v1  ;;  %v9031_v19 = vld [vmem:[#allocation188_spill] sm:$0xff]  ;;  %v9037_v41 = vld [vmem:[#allocation201_spill] sm:$0xff]  ;;  %v9113_v43 = vld [vmem:[#allocation218_spill] sm:$0xff] }
 0x3c7   : > { %9026 = vst [vmem:[#allocation247_spill] sm:$0xff] %v7201_v60  ;;  %v1650_v33 = vand.u32 4294901760, %v1649_v16  ;;  %v2940_v48 = vand.u32 4294901760, %v2939_v13  ;;  %v7207_v26 = vpack.c.bf16 %v3299_v15, %v3287_v45  ;;  %v8504_v22 = vand.u32 4294901760, %v9029_v58  ;;  %v9032_v60 = vld [vmem:[#allocation190_spill] sm:$0xff]  ;;  %v9033_v2 = vld [vmem:[#allocation192_spill] sm:$0xff] }
 0x3c8   : > { %v2009_v17 = vand.u32 4294901760, %v2008_v37  ;;  %v2020_v62 = vsub.f32 %v9027_v39, %v8503_v42  ;;  %2935 = vmatprep.mubr.f32.mxu1 %v2934_v34  ;;  %v9034_v45 = vld [vmem:[#allocation193_spill] sm:$0xff]  ;;  %v9035_v42 = vld [vmem:[#allocation194_spill] sm:$0xff]  ;;  %v9036_v34 = vld [vmem:[#allocation200_spill] sm:$0xff]  ;;  %v9038_v59 = vand.u32 4294901760, %v9030_v20 }
 0x3c9   : > { %9028 = vst [vmem:[#allocation248_spill] sm:$0xff] %v7207_v26  ;;  %1651 = vmatprep.mubr.f32.mxu0 %v1650_v33  ;;  %2941 = vmatmul.mubr.f32.vlgmr.msra.gmra.mrb[4].mxu1 %v2940_v48  ;;  %v3292_v37 = vsub.f32 %v9029_v58, %v8504_v22  ;;  %v9041_v1 = vld [vmem:[#allocation196_spill] sm:$0xff]  ;;  %v9043_v33 = vand.u32 4294901760, %v9033_v2  ;;  %v9044_v26 = vand.u32 4294901760, %v9034_v45 }
 0x3ca   : > { %1657 = vmatmul.mubr.f32.vlgmr.msra.gmra.mrb[2].mxu0 %v1656_v24  ;;  %v2021_v15 = vand.u32 4294901760, %v2020_v62  ;;  %4876 = vmatpush1.bf16.msra.mxu1 %v9037_v41  ;;  %v3304_v16 = vsub.f32 %v9030_v20, %v9038_v59  ;;  %v9039_v24 = vand.u32 4294901760, %v9031_v19  ;;  %v9040_v62 = vand.u32 4294901760, %v9032_v60 }
 0x3cb   : > { %4492 = vmatpush1.bf16.msra.mxu0 %v9036_v34  ;;  %2048 = vmatprep.mubr.f32.mxu0 %v7154_v28  ;;  %v3293_v41 = vand.u32 4294901760, %v3292_v37  ;;  %v3310_v59 = vsub.f32 %v9033_v2, %v9043_v33  ;;  %v9049_v2 = vld [vmem:[#allocation197_spill] sm:$0xff] }
 0x3cc   : > { %v2026_v48 = vsub.f32 %v9031_v19, %v9039_v24  ;;  %v2038_v22 = vsub.f32 %v9032_v60, %v9040_v62  ;;  %3332 = vmatprep.mubr.f32.mxu1 %v7156_v9  ;;  %v7236_v34 = vpack.c.bf16 %v2021_v15, %v2009_v17  ;;  %v3322_v24 = vsub.f32 %v9034_v45, %v9044_v26  ;;  %v9045_v19 = vld [vmem:[#allocation202_spill] sm:$0xff]  ;;  %v9046_v62 = vld [vmem:[#allocation203_spill] sm:$0xff]  ;;  %v9050_v26 = vld [vmem:[#allocation204_spill] sm:$0xff] }
 0x3cd   : > { %4494 = vmatprep.subr.bf16.mxu0 %v9045_v19  ;;  %4878 = vmatprep.subr.bf16.mxu1 %v9046_v62  ;;  %v3305_v13 = vand.u32 4294901760, %v3304_v16  ;;  %v9047_v9 = vand.u32 4294901760, %v9035_v42  ;;  %v3311_v15 = vand.u32 4294901760, %v3310_v59  ;;  %v9051_v19 = vld [vmem:[#allocation205_spill] sm:$0xff]  ;;  %v9054_v59 = vld [vmem:[#allocation207_spill] sm:$0xff] }
 0x3ce   : > { %9042 = vst [vmem:[#allocation186_spill] sm:$0xff] %v7236_v34  ;;  %v2027_v60 = vand.u32 4294901760, %v2026_v48  ;;  %v2039_v28 = vand.u32 4294901760, %v2038_v22  ;;  %v3323_v37 = vand.u32 4294901760, %v3322_v24  ;;  %v9048_v34 = vand.u32 4294901760, %v9041_v1  ;;  %4880 = vmatpush1.bf16.msra.mxu1 %v9051_v19  ;;  %v9052_v48 = vld [vmem:[#allocation199_spill] sm:$0xff] }
 0x3cf   : > { %v2032_v17 = vsub.f32 %v9035_v42, %v9047_v9  ;;  %4496 = vmatpush1.bf16.msra.mxu0 %v9050_v26  ;;  %v7255_v62 = vpack.c.bf16 %v3305_v13, %v3293_v41  ;;  %v8515_v45 = vand.u32 4294901760, %v9052_v48  ;;  %v9053_v9 = vld [vmem:[#allocation206_spill] sm:$0xff]  ;;  %4882 = vmatprep.subr.bf16.mxu1 %v9054_v59  ;;  %v9055_v24 = vand.u32 4294901760, %v8983_v40 }
 0x3d0   : > { %v2044_v33 = vsub.f32 %v9041_v1, %v9048_v34  ;;  %v7257_v16 = vpack.c.bf16 %v2039_v28, %v2027_v60  ;;  %4498 = vmatprep.subr.bf16.mxu0 %v9053_v9  ;;  %v7265_v20 = vpack.c.bf16 %v3323_v37, %v3311_v15  ;;  %v9057_v19 = vand.u32 4294901760, %v9049_v2 }
 0x3d1   : > { %v2033_v22 = vand.u32 4294901760, %v2032_v17  ;;  %v1870_v34 = vsub.f32 %v8983_v40, %v9055_v24  ;;  %v9058_v60 = vand.u32 4294901760, %v8984_v10  ;;  %v9059_v41 = vand.u32 4294901760, %v8985_v31 }
 0x3d2   : > { %9056 = vst [vmem:[#allocation200_spill] sm:$0xff] %v7265_v20  ;;  %v2045_v26 = vand.u32 4294901760, %v2044_v33  ;;  %v3316_v13 = vsub.f32 %v9049_v2, %v9057_v19  ;;  %v9060_v9 = vand.u32 4294901760, %v8986_v14  ;;  %v3328_v15 = vsub.f32 %v9052_v48, %v8515_v45  ;;  %4884 = vmatpush1.bf16.msra.mxu1 %v6843_v46  ;;  %v9065_v45 = vld [vmem:[#allocation143_spill] sm:$0xff]  ;;  %v9068_v46 = vld [vmem:[#allocation146_spill] sm:$0xff]  ;;  %v9085_v20 = vld [vmem:[#allocation212_spill] sm:$0xff] }
 0x3d3   : > { %v3142_v28 = vsub.f32 %v8984_v10, %v9058_v60  ;;  %v3154_v17 = vsub.f32 %v8985_v31, %v9059_v41  ;;  %v9061_v37 = vand.u32 4294901760, %v8987_v61  ;;  %v9062_v24 = vand.u32 4294901760, %v8988_v55  ;;  %4500 = vmatpush1.bf16.msra.mxu0 %v6841_v3  ;;  %v9066_v31 = vld [vmem:[#allocation144_spill] sm:$0xff]  ;;  %4886 = vmatprep.subr.bf16.mxu1 %v6849_v25  ;;  %v9067_v3 = vld [vmem:[#allocation145_spill] sm:$0xff] }
 0x3d4   : > { %v1864_v59 = vsub.f32 %v8986_v14, %v9060_v9  ;;  %v7288_v60 = vpack.c.bf16 %v2045_v26, %v2033_v22  ;;  %v3317_v10 = vand.u32 4294901760, %v3316_v13  ;;  %v9064_v41 = vand.u32 4294901760, %v8989_v57  ;;  %4502 = vmatprep.subr.bf16.mxu0 %v6847_v8  ;;  %v9071_v25 = vld [vmem:[#allocation209_spill] sm:$0xff] }
 0x3d5   : > { %v1876_v33 = vsub.f32 %v8987_v61, %v9061_v37  ;;  %v3148_v19 = vsub.f32 %v8988_v55, %v9062_v24  ;;  %v3329_v37 = vand.u32 4294901760, %v3328_v15  ;;  %v3125_v22 = vand.u32 4294901760, %v6977_v0 }
 0x3d6   : > { %9063 = vst [vmem:[#allocation201_spill] sm:$0xff] %v7288_v60  ;;  %v3160_v9 = vsub.f32 %v8989_v57, %v9064_v41  ;;  %v3137_v26 = vand.u32 4294901760, %v6982_v35  ;;  %v8525_v24 = vand.u32 4294901760, %v9068_v46  ;;  %v1859_v55 = vand.u32 4294901760, %v6989_v56  ;;  %v9070_v60 = vld [vmem:[#allocation208_spill] sm:$0xff]  ;;  %4888 = vmatpush1.bf16.msra.mxu1 %v9071_v25  ;;  %v9079_v25 = vld [vmem:[#allocation149_spill] sm:$0xff] }
 0x3d7   : > { %v1871_v41 = vand.u32 4294901760, %v1870_v34  ;;  %v3143_v57 = vand.u32 4294901760, %v3142_v28  ;;  %v7304_v14 = vpack.c.bf16 %v3329_v37, %v3317_v10  ;;  %v3155_v40 = vand.u32 4294901760, %v3154_v17  ;;  %4504 = vmatpush1.bf16.msra.mxu0 %v9070_v60  ;;  %v9074_v10 = vld [vmem:[#allocation147_spill] sm:$0xff]  ;;  %v9075_v17 = vld [vmem:[#allocation210_spill] sm:$0xff]  ;;  %v9084_v37 = vld [vmem:[#allocation152_spill] sm:$0xff] }
 0x3d8   : > { %v1865_v15 = vand.u32 4294901760, %v1864_v59  ;;  %v1877_v61 = vand.u32 4294901760, %v1876_v33  ;;  %v3149_v8 = vand.u32 4294901760, %v3148_v19  ;;  %v3161_v0 = vand.u32 4294901760, %v3160_v9  ;;  %4506 = vmatprep.subr.bf16.mxu0 %v9075_v17  ;;  %v9076_v59 = vld [vmem:[#allocation211_spill] sm:$0xff]  ;;  %v9078_v9 = vld [vmem:[#allocation148_spill] sm:$0xff] }
 0x3d9   : > { %9069 = vst [vmem:[#allocation202_spill] sm:$0xff] %v7304_v14  ;;  %v9072_v35 = vand.u32 4294901760, %v9065_v45  ;;  %v9073_v56 = vand.u32 4294901760, %v9066_v31  ;;  %4890 = vmatprep.subr.bf16.mxu1 %v9076_v59  ;;  %v9077_v33 = vand.u32 4294901760, %v9067_v3  ;;  %v7329_v60 = vsub.f32 %v9068_v46, %v8525_v24 }
 0x3da   : > { %v9081_v17 = vand.u32 4294901760, %v6949_v36  ;;  %v7339_v59 = vpack.c.bf16 %v3137_v26, %v3125_v22  ;;  %v7343_v14 = vpack.c.bf16 %v1871_v41, %v1859_v55  ;;  %v7345_v24 = vpack.c.bf16 %v3155_v40, %v3143_v57 }
 0x3db   : > { %v7311_v13 = vsub.f32 %v9065_v45, %v9072_v35  ;;  %v7316_v34 = vsub.f32 %v9066_v31, %v9073_v56  ;;  %v7324_v19 = vsub.f32 %v9067_v3, %v9077_v33  ;;  %v9080_v56 = vand.u32 4294901760, %v6944_v18  ;;  %v9082_v31 = vld [vmem:[#allocation150_spill] sm:$0xff]  ;;  %v9083_v3 = vld [vmem:[#allocation151_spill] sm:$0xff]  ;;  %4508 = vmatpush1.bf16.msra.mxu0 %v9085_v20  ;;  %v9086_v18 = vld [vmem:[#allocation213_spill] sm:$0xff] }
 0x3dc   : > { %v8528_v33 = vand.u32 4294901760, %v9082_v31  ;;  %v8527_v45 = vand.u32 4294901760, %v9083_v3  ;;  %v7347_v46 = vpack.c.bf16 %v1877_v61, %v1865_v15  ;;  %v8529_v35 = vand.u32 4294901760, %v9084_v37  ;;  %4892 = vmatpush1.bf16.msra.mxu1 %v9086_v18  ;;  %4510 = vmatprep.subr.bf16.mxu0 %v6953_v5  ;;  %v9090_v15 = vld [vmem:[#allocation153_spill] sm:$0xff]  ;;  %v9099_v18 = vld [vmem:[#allocation215_spill] sm:$0xff] }
 0x3dd   : > { %v7337_v28 = vpack.c.bf16 %v9081_v17, %v9080_v56  ;;  %v7352_v36 = vpack.c.bf16 %v3161_v0, %v3149_v8  ;;  %v1883_v22 = vand.u32 4294901760, %v7311_v13  ;;  %v1895_v26 = vand.u32 4294901760, %v7316_v34  ;;  %4894 = vmatprep.subr.bf16.mxu1 %v6956_v47  ;;  %v9091_v0 = vld [vmem:[#allocation154_spill] sm:$0xff]  ;;  %v9096_v8 = vld [vmem:[#allocation167_spill] sm:$0xff]  ;;  %v9097_v17 = vld [vmem:[#allocation168_spill] sm:$0xff] }
 0x3de   : > { %v9087_v56 = vand.u32 4294901760, %v9074_v10  ;;  %v3167_v40 = vand.u32 4294901760, %v7324_v19  ;;  %v3179_v57 = vand.u32 4294901760, %v7329_v60  ;;  %v9088_v61 = vand.u32 4294901760, %v9078_v9  ;;  %v9092_v60 = vld [vmem:[#allocation155_spill] sm:$0xff]  ;;  %v9107_v34 = vld [vmem:[#allocation190_spill] sm:$0xff] }
 0x3df   : > { %v9089_v13 = vand.u32 4294901760, %v9079_v25  ;;  %v3184_v5 = vsub.f32 %v9082_v31, %v8528_v33  ;;  %v7381_v47 = vsub.f32 %v9083_v3, %v8527_v45  ;;  %v7388_v19 = vsub.f32 %v9084_v37, %v8529_v35  ;;  %4512 = vmatpush1.bf16.msra.mxu0 %v6958_v38  ;;  %v9094_v33 = vld [vmem:[#allocation165_spill] sm:$0xff]  ;;  %v9095_v35 = vld [vmem:[#allocation166_spill] sm:$0xff]  ;;  %v9105_v45 = vld [vmem:[#allocation187_spill] sm:$0xff] }
 0x3e0   : > { %v7359_v55 = vsub.f32 %v9074_v10, %v9087_v56  ;;  %v7368_v20 = vsub.f32 %v9078_v9, %v9088_v61  ;;  %4896 = vmatpush1.bf16.msra.mxu1 %v6960_v63  ;;  %v9093_v61 = vld [vmem:[#allocation156_spill] sm:$0xff]  ;;  %v9098_v3 = vld [vmem:[#allocation214_spill] sm:$0xff]  ;;  %v9100_v56 = vld [vmem:[#allocation157_spill] sm:$0xff]  ;;  %v9115_v29 = vand.u32 4294901760, %v9090_v15  ;;  %v4525_v38 = vpack.c.bf16 %v1895_v26, %v1883_v22 }
 0x3e1   : > { %v7373_v41 = vsub.f32 %v9079_v25, %v9089_v13  ;;  %4514 = vmatprep.subr.bf16.mxu0 %v9098_v3  ;;  %4898 = vmatprep.subr.bf16.mxu1 %v9099_v18  ;;  %v9102_v13 = vld [vmem:[#allocation171_spill] sm:$0xff]  ;;  %v9104_v63 = vld [vmem:[#allocation140_spill] sm:$0xff]  ;;  %v9109_v37 = vld [vmem:[#allocation217_spill] sm:$0xff]  ;;  %v8556_v18 = vand.u32 4294901760, %v9118_v51  ;;  %v4909_v42 = vpack.c.bf16 %v3179_v57, %v3167_v40  ;;  %v3185_v2 = vand.u32 4294901760, %v3184_v5 }
 0x3e2   : > { %v9110_v3 = vld [vmem:[#allocation158_spill] sm:$0xff]  ;;  %v1889_v53 = vand.u32 4294901760, %v7359_v55  ;;  %v1907_v48 = vand.u32 4294901760, %v7381_v47  ;;  %v1919_v22 = vand.u32 4294901760, %v7388_v19  ;;  %v9120_v26 = vand.u32 4294901760, %v9093_v61 }
 0x3e3   : > { %4516 = vmatpush1.bf16.msra.mxu0 %v9108_v50  ;;  %v3190_v50 = vsub.f32 %v9090_v15, %v9115_v29  ;;  %v9119_v29 = vand.u32 4294901760, %v9092_v60  ;;  %v9121_v40 = vand.u32 4294901760, %v9100_v56  ;;  %v1930_v5 = vsub.f32 %v9117_v44, %v8555_v12 }
 0x3e4   : > { %4900 = vmatpush1.bf16.msra.mxu1 %v9109_v37  ;;  %4518 = vmatprep.subr.bf16.mxu0 %v9113_v43  ;;  %v9116_v37 = vand.u32 4294901760, %v9091_v0  ;;  %v1901_v43 = vand.u32 4294901760, %v7368_v20  ;;  %v1924_v55 = vsub.f32 %v9093_v61, %v9120_v26  ;;  %v9122_v20 = vand.u32 4294901760, %v9110_v3 }
 0x3e5   : > { %4902 = vmatprep.subr.bf16.mxu1 %v9114_v21  ;;  %v3173_v21 = vand.u32 4294901760, %v7373_v41  ;;  %v1912_v1 = vsub.f32 %v9092_v60, %v9119_v29  ;;  %v3196_v57 = vsub.f32 %v9100_v56, %v9121_v40  ;;  %v1942_v47 = vsub.f32 %v9118_v51, %v8556_v18 }
 0x3e6   : > { %v3202_v7 = vsub.f32 %v9091_v0, %v9116_v37  ;;  %v3208_v41 = vsub.f32 %v9110_v3, %v9122_v20  ;;  %v4527_v19 = vpack.c.bf16 %v1901_v43, %v1889_v53  ;;  %v1931_v40 = vand.u32 4294901760, %v1930_v5  ;;  %v9130_v43 = vld [vmem:[#allocation235_spill] sm:$0xff] }
 0x3e7   : > { %4520 = vmatpush1.bf16.msra.mxu0 %v7337_v28  ;;  %v3191_v28 = vand.u32 4294901760, %v3190_v50  ;;  %v4911_v37 = vpack.c.bf16 %v3185_v2, %v3173_v21  ;;  %v1913_v29 = vand.u32 4294901760, %v1912_v1  ;;  %v3197_v26 = vand.u32 4294901760, %v3196_v57  ;;  %v9123_v2 = vld [vmem:[#allocation224_spill] sm:$0xff]  ;;  %v9124_v1 = vld [vmem:[#allocation225_spill] sm:$0xff]  ;;  %v9136_v57 = vld [vmem:[#allocation186_spill] sm:$0xff] }
 0x3e8   : > { %4904 = vmatpush1.bf16.msra.mxu1 %v7339_v59  ;;  %4522 = vmatprep.subr.bf16.mxu0 %v7343_v14  ;;  %v3203_v59 = vand.u32 4294901760, %v3202_v7  ;;  %v1925_v14 = vand.u32 4294901760, %v1924_v55  ;;  %v4529_v7 = vpack.c.bf16 %v1919_v22, %v1907_v48  ;;  %v1943_v20 = vand.u32 4294901760, %v1942_v47  ;;  %v9127_v48 = vld [vmem:[#allocation232_spill] sm:$0xff]  ;;  %v9134_v22 = vld [vmem:[#allocation247_spill] sm:$0xff] }
 0x3e9   : > { %4906 = vmatprep.subr.bf16.mxu1 %v7345_v24  ;;  %v3209_v24 = vand.u32 4294901760, %v3208_v41  ;;  %v9131_v21 = vld [vmem:[#allocation236_spill] sm:$0xff]  ;;  %v9140_v47 = vld [vmem:[#allocation15_spill] sm:$0xff] }
 0x3ea   : > { %v4913_v50 = vpack.c.bf16 %v3203_v59, %v3191_v28  ;;  %v4531_v12 = vpack.c.bf16 %v1925_v14, %v1913_v29  ;;  %v4533_v53 = vpack.c.bf16 %v1943_v20, %v1931_v40  ;;  %v9135_v55 = vld [vmem:[#allocation248_spill] sm:$0xff]  ;;  %v9138_v28 = vld [vmem:[#allocation13_spill] sm:$0xff]  ;;  %v9139_v59 = vld [vmem:[#allocation14_spill] sm:$0xff] }
 0x3eb   : > { %4524 = vmatpush1.bf16.msra.mxu0 %v7347_v46  ;;  %v4915_v18 = vpack.c.bf16 %v3209_v24, %v3197_v26  ;;  %v9125_v46 = vld [vmem:[#allocation226_spill] sm:$0xff]  ;;  %v9137_v41 = vld [vmem:[#allocation200_spill] sm:$0xff]  ;;  %v4553_v5 = vpack.c.bf16 %v9139_v59, %v9138_v28  ;;  %v9142_v29 = vld [vmem:[#allocation201_spill] sm:$0xff] }
 0x3ec   : > { %4908 = vmatpush1.bf16.msra.mxu1 %v7352_v36  ;;  %4526 = vmatprep.subr.bf16.mxu0 %v4525_v38  ;;  %v9128_v36 = vld [vmem:[#allocation233_spill] sm:$0xff]  ;;  %v9129_v38 = vld [vmem:[#allocation234_spill] sm:$0xff]  ;;  %v9144_v26 = vld [vmem:[#allocation19_spill] sm:$0xff] }
 0x3ed   : > { %4910 = vmatprep.subr.bf16.mxu1 %v4909_v42  ;;  %v9126_v42 = vld [vmem:[#allocation229_spill] sm:$0xff]  ;;  %v9143_v14 = vld [vmem:[#allocation202_spill] sm:$0xff]  ;;  %v9145_v24 = vld [vmem:[#allocation20_spill] sm:$0xff] }
 0x3ee   : > { %v9148_v40 = vld [vmem:[#allocation24_spill] sm:$0xff]  ;;  %v9149_v20 = vld [vmem:[#allocation26_spill] sm:$0xff] }
 0x3ef   : > { %4528 = vmatpush1.bf16.msra.mxu0 %v4527_v19  ;;  %v9141_v19 = vld [vmem:[#allocation17_spill] sm:$0xff] }
 0x3f0   : > { %4912 = vmatpush1.bf16.msra.mxu1 %v4911_v37  ;;  %4530 = vmatprep.subr.bf16.mxu0 %v4529_v7  ;;  %v4937_v37 = vpack.c.bf16 %v9141_v19, %v9140_v47  ;;  %v4555_v7 = vpack.c.bf16 %v9145_v24, %v9144_v26 }
 0x3f1   : > { %4914 = vmatprep.subr.bf16.mxu1 %v4913_v50  ;;  %v9147_v50 = vld [vmem:[#allocation23_spill] sm:$0xff] }
 0x3f3   : > { %4532 = vmatpush1.bf16.msra.mxu0 %v4531_v12  ;;  %v9132_v12 = vld [vmem:[#allocation237_spill] sm:$0xff] }
 0x3f4   : > { %4916 = vmatpush1.bf16.msra.mxu1 %v4915_v18  ;;  %4534 = vmatprep.subr.bf16.mxu0 %v4533_v53  ;;  %v9133_v18 = vld [vmem:[#allocation246_spill] sm:$0xff]  ;;  %v4557_v53 = vpack.c.bf16 %v9149_v20, %v9148_v40 }
 0x3f5   : > { %4918 = vmatprep.subr.bf16.mxu1 %v9123_v2  ;;  %v9150_v2 = vld [vmem:[#allocation28_spill] sm:$0xff] }
 0x3f7   : > { %4536 = vmatpush1.bf16.msra.mxu0 %v9124_v1  ;;  %v9151_v1 = vld [vmem:[#allocation29_spill] sm:$0xff] }
 0x3f8   : > { %4920 = vmatpush1.bf16.msra.mxu1 %v9125_v46  ;;  %4538 = vmatprep.subr.bf16.mxu0 %v9126_v42  ;;  %v4941_v46 = vpack.c.bf16 %v9151_v1, %v9150_v2  ;;  %v9152_v42 = vld [vmem:[#allocation238_spill] sm:$0xff]  ;;  %v9168_v1 = vld [vmem:[#allocation49_spill] sm:$0xff] }
 0x3f9   : > { %4922 = vmatprep.subr.bf16.mxu1 %v9127_v48  ;;  %v9153_v48 = vld [vmem:[#allocation239_spill] sm:$0xff]  ;;  %v9169_v2 = vld [vmem:[#allocation50_spill] sm:$0xff] }
 0x3fb   : > { %4540 = vmatpush1.bf16.msra.mxu0 %v9128_v36  ;;  %v9154_v36 = vld [vmem:[#allocation242_spill] sm:$0xff] }
 0x3fc   : > { %4924 = vmatpush1.bf16.msra.mxu1 %v9129_v38  ;;  %4542 = vmatprep.subr.bf16.mxu0 %v9130_v43  ;;  %v9155_v38 = vld [vmem:[#allocation30_spill] sm:$0xff]  ;;  %v9156_v43 = vld [vmem:[#allocation32_spill] sm:$0xff] }
 0x3fd   : > { %4926 = vmatprep.subr.bf16.mxu1 %v9131_v21  ;;  %v4559_v21 = vpack.c.bf16 %v9156_v43, %v9155_v38  ;;  %v9167_v43 = vld [vmem:[#allocation47_spill] sm:$0xff] }
 0x3ff   : > { %4544 = vmatpush1.bf16.msra.mxu0 %v9132_v12  ;;  %v9157_v12 = vld [vmem:[#allocation243_spill] sm:$0xff] }
 0x400   : > { %4928 = vmatpush1.bf16.msra.mxu1 %v9133_v18  ;;  %4546 = vmatprep.subr.bf16.mxu0 %v9134_v22  ;;  %v9158_v18 = vld [vmem:[#allocation33_spill] sm:$0xff]  ;;  %v9159_v22 = vld [vmem:[#allocation35_spill] sm:$0xff] }
 0x401   : > { %4930 = vmatprep.subr.bf16.mxu1 %v9135_v55  ;;  %v4943_v55 = vpack.c.bf16 %v9159_v22, %v9158_v18  ;;  %v4565_v22 = vpack.c.bf16 %v9169_v2, %v9168_v1  ;;  %v9170_v18 = vld [vmem:[#allocation52_spill] sm:$0xff] }
 0x402   : > { %v9181_v1 = vld [vmem:[#allocation68_spill] sm:$0xff] }
 0x403   : > { %4548 = vmatpush1.bf16.msra.mxu0 %v9136_v57  ;;  %v9160_v57 = vld [vmem:[#allocation37_spill] sm:$0xff] }
 0x404   : > { %4932 = vmatpush1.bf16.msra.mxu1 %v7255_v62  ;;  %4550 = vmatprep.subr.bf16.mxu0 %v7257_v16  ;;  %v9146_v62 = vld [vmem:[#allocation22_spill] sm:$0xff] }
 0x405   : > { %4934 = vmatprep.subr.bf16.mxu1 %v9137_v41  ;;  %v4939_v16 = vpack.c.bf16 %v9147_v50, %v9146_v62  ;;  %v9161_v41 = vld [vmem:[#allocation38_spill] sm:$0xff] }
 0x407   : > { %4552 = vmatpush1.bf16.msra.mxu0 %v9142_v29  ;;  %v9163_v29 = vld [vmem:[#allocation41_spill] sm:$0xff] }
 0x408   : > { %4936 = vmatpush1.bf16.msra.mxu1 %v9143_v14  ;;  %4554 = vmatprep.subr.bf16.mxu0 %v4553_v5  ;;  %v4561_v5 = vpack.c.bf16 %v9161_v41, %v9160_v57  ;;  %v9171_v41 = vld [vmem:[#allocation53_spill] sm:$0xff]  ;;  %v9173_v57 = vld [vmem:[#allocation56_spill] sm:$0xff] }
 0x409   : > { %4938 = vmatprep.subr.bf16.mxu1 %v4937_v37  ;;  %v9162_v37 = vld [vmem:[#allocation40_spill] sm:$0xff] }
 0x40a   : > { %2050 = vmatmul.mubr.f32.vlgmr.msra.gmra.mrb[2].mxu0 %v9152_v42  ;;  %v4945_v14 = vpack.c.bf16 %v9163_v29, %v9162_v37 }
 0x40b   : > { %3334 = vmatmul.mubr.f32.vlgmr.msra.gmra.mrb[4].mxu1 %v9153_v48  ;;  %4556 = vmatpush1.bf16.msra.mxu0 %v4555_v7  ;;  %v9164_v7 = vld [vmem:[#allocation43_spill] sm:$0xff]  ;;  %v9165_v48 = vld [vmem:[#allocation44_spill] sm:$0xff] }
 0x40c   : > { %2250 = vmatprep.mubr.f32.mxu0 %v9154_v36  ;;  %4940 = vmatpush1.bf16.msra.mxu1 %v4939_v16  ;;  %v4563_v42 = vpack.c.bf16 %v9165_v48, %v9164_v7  ;;  %v9166_v16 = vld [vmem:[#allocation46_spill] sm:$0xff]  ;;  %v9175_v48 = vld [vmem:[#allocation59_spill] sm:$0xff] }
 0x40d   : > { %3534 = vmatprep.mubr.f32.mxu1 %v9157_v12  ;;  %4558 = vmatprep.subr.bf16.mxu0 %v4557_v53  ;;  %v4947_v38 = vpack.c.bf16 %v9167_v43, %v9166_v16  ;;  %v4949_v53 = vpack.c.bf16 %v9171_v41, %v9170_v18  ;;  %v9177_v7 = vld [vmem:[#allocation62_spill] sm:$0xff]  ;;  %v9178_v43 = vld [vmem:[#allocation63_spill] sm:$0xff]  ;;  %v9179_v16 = vld [vmem:[#allocation65_spill] sm:$0xff] }
 0x40e   : > { %4942 = vmatprep.subr.bf16.mxu1 %v4941_v46  ;;  %v9172_v46 = vld [vmem:[#allocation54_spill] sm:$0xff]  ;;  %v4953_v2 = vpack.c.bf16 %v9179_v16, %v9178_v43 }
 0x40f   : > { %4560 = vmatpush1.bf16.msra.mxu0 %v4559_v21  ;;  %v4567_v29 = vpack.c.bf16 %v9173_v57, %v9172_v46  ;;  %v9174_v21 = vld [vmem:[#allocation58_spill] sm:$0xff]  ;;  %v9183_v57 = vld [vmem:[#allocation71_spill] sm:$0xff] }
 0x410   : > { %4944 = vmatpush1.bf16.msra.mxu1 %v4943_v55  ;;  %4562 = vmatprep.subr.bf16.mxu0 %v4561_v5  ;;  %v4951_v55 = vpack.c.bf16 %v9175_v48, %v9174_v21  ;;  %v9176_v5 = vld [vmem:[#allocation61_spill] sm:$0xff]  ;;  %v9185_v46 = vld [vmem:[#allocation74_spill] sm:$0xff]  ;;  %v9186_v48 = vld [vmem:[#allocation75_spill] sm:$0xff] }
 0x411   : > { %4946 = vmatprep.subr.bf16.mxu1 %v4945_v14  ;;  %v4569_v37 = vpack.c.bf16 %v9177_v7, %v9176_v5  ;;  %v9180_v14 = vld [vmem:[#allocation67_spill] sm:$0xff]  ;;  %v9187_v21 = vld [vmem:[#allocation77_spill] sm:$0xff]  ;;  %v9189_v5 = vld [vmem:[#allocation80_spill] sm:$0xff] }
 0x412   : > { %v4571_v41 = vpack.c.bf16 %v9181_v1, %v9180_v14  ;;  %v4957_v7 = vpack.c.bf16 %v9187_v21, %v9186_v48  ;;  %v9191_v1 = vld [vmem:[#allocation83_spill] sm:$0xff]  ;;  %v9193_v14 = vld [vmem:[#allocation86_spill] sm:$0xff] }
 0x413   : > { %4564 = vmatpush1.bf16.msra.mxu0 %v4563_v42  ;;  %v9182_v42 = vld [vmem:[#allocation70_spill] sm:$0xff] }
 0x414   : > { %4948 = vmatpush1.bf16.msra.mxu1 %v4947_v38  ;;  %4566 = vmatprep.subr.bf16.mxu0 %v4565_v22  ;;  %v4955_v38 = vpack.c.bf16 %v9183_v57, %v9182_v42  ;;  %v9184_v22 = vld [vmem:[#allocation73_spill] sm:$0xff]  ;;  %v9194_v57 = vld [vmem:[#allocation87_spill] sm:$0xff] }
 0x415   : > { %4950 = vmatprep.subr.bf16.mxu1 %v4949_v53  ;;  %v4573_v18 = vpack.c.bf16 %v9185_v46, %v9184_v22  ;;  %v9188_v53 = vld [vmem:[#allocation79_spill] sm:$0xff]  ;;  %v9195_v42 = vld [vmem:[#allocation89_spill] sm:$0xff]  ;;  %v9197_v22 = vld [vmem:[#allocation92_spill] sm:$0xff] }
 0x416   : > { %v4575_v16 = vpack.c.bf16 %v9189_v5, %v9188_v53  ;;  %v4961_v46 = vpack.c.bf16 %v9195_v42, %v9194_v57  ;;  %v9199_v5 = vld [vmem:[#allocation95_spill] sm:$0xff]  ;;  %v9201_v53 = vld [vmem:[#allocation102_spill] sm:$0xff] }
 0x417   : > { %4568 = vmatpush1.bf16.msra.mxu0 %v4567_v29  ;;  %v9190_v29 = vld [vmem:[#allocation82_spill] sm:$0xff] }
 0x418   : > { %4952 = vmatpush1.bf16.msra.mxu1 %v4951_v55  ;;  %4570 = vmatprep.subr.bf16.mxu0 %v4569_v37  ;;  %v4959_v55 = vpack.c.bf16 %v9191_v1, %v9190_v29  ;;  %v9192_v37 = vld [vmem:[#allocation85_spill] sm:$0xff]  ;;  %v9202_v1 = vld [vmem:[#allocation103_spill] sm:$0xff]  ;;  %v9203_v29 = vld [vmem:[#allocation104_spill] sm:$0xff] }
 0x419   : > { %4954 = vmatprep.subr.bf16.mxu1 %v4953_v2  ;;  %v4577_v43 = vpack.c.bf16 %v9193_v14, %v9192_v37  ;;  %v9196_v2 = vld [vmem:[#allocation91_spill] sm:$0xff]  ;;  %v4965_v14 = vpack.c.bf16 %v9203_v29, %v9202_v1  ;;  %v9205_v37 = vld [vmem:[#allocation106_spill] sm:$0xff] }
 0x41a   : > { %v4579_v21 = vpack.c.bf16 %v9197_v22, %v9196_v2  ;;  %v9207_v22 = vld [vmem:[#allocation108_spill] sm:$0xff]  ;;  %v9209_v2 = vld [vmem:[#allocation113_spill] sm:$0xff] }
 0x41b   : > { %4572 = vmatpush1.bf16.msra.mxu0 %v4571_v41  ;;  %v9198_v41 = vld [vmem:[#allocation94_spill] sm:$0xff] }
 0x41c   : > { %4956 = vmatpush1.bf16.msra.mxu1 %v4955_v38  ;;  %4574 = vmatprep.subr.bf16.mxu0 %v4573_v18  ;;  %v4963_v38 = vpack.c.bf16 %v9199_v5, %v9198_v41  ;;  %v9200_v18 = vld [vmem:[#allocation101_spill] sm:$0xff]  ;;  %v9210_v5 = vld [vmem:[#allocation114_spill] sm:$0xff]  ;;  %v9211_v41 = vld [vmem:[#allocation115_spill] sm:$0xff] }
 0x41d   : > { %4958 = vmatprep.subr.bf16.mxu1 %v4957_v7  ;;  %v4581_v48 = vpack.c.bf16 %v9201_v53, %v9200_v18  ;;  %v9204_v7 = vld [vmem:[#allocation105_spill] sm:$0xff]  ;;  %v4969_v53 = vpack.c.bf16 %v9211_v41, %v9210_v5 }
 0x41e   : > { %v4583_v42 = vpack.c.bf16 %v9205_v37, %v9204_v7  ;;  %v9213_v18 = vld [vmem:[#allocation117_spill] sm:$0xff]  ;;  %v9215_v37 = vld [vmem:[#allocation120_spill] sm:$0xff] }
 0x41f   : > { %4576 = vmatpush1.bf16.msra.mxu0 %v4575_v16  ;;  %v9206_v16 = vld [vmem:[#allocation107_spill] sm:$0xff]  ;;  %v9217_v7 = vld [vmem:[#allocation144_spill] sm:$0xff] }
 0x420   : > { %4960 = vmatpush1.bf16.msra.mxu1 %v4959_v55  ;;  %4578 = vmatprep.subr.bf16.mxu0 %v4577_v43  ;;  %v4967_v55 = vpack.c.bf16 %v9207_v22, %v9206_v16  ;;  %v9208_v43 = vld [vmem:[#allocation112_spill] sm:$0xff]  ;;  %v9218_v22 = vld [vmem:[#allocation145_spill] sm:$0xff]  ;;  %v9219_v16 = vld [vmem:[#allocation146_spill] sm:$0xff] }
 0x421   : > { %4962 = vmatprep.subr.bf16.mxu1 %v4961_v46  ;;  %v4585_v57 = vpack.c.bf16 %v9209_v2, %v9208_v43  ;;  %v9212_v46 = vld [vmem:[#allocation116_spill] sm:$0xff]  ;;  %v4973_v2 = vpack.c.bf16 %v9219_v16, %v9218_v22 }
 0x422   : > { %v4587_v29 = vpack.c.bf16 %v9213_v18, %v9212_v46 }
 0x423   : > { %4580 = vmatpush1.bf16.msra.mxu0 %v4579_v21  ;;  %v9214_v21 = vld [vmem:[#allocation119_spill] sm:$0xff] }
 0x424   : > { %4964 = vmatpush1.bf16.msra.mxu1 %v4963_v38  ;;  %4582 = vmatprep.subr.bf16.mxu0 %v4581_v48  ;;  %v4971_v38 = vpack.c.bf16 %v9215_v37, %v9214_v21  ;;  %v9216_v48 = vld [vmem:[#allocation143_spill] sm:$0xff] }
 0x425   : > { %4966 = vmatprep.subr.bf16.mxu1 %v4965_v14  ;;  %v4589_v1 = vpack.c.bf16 %v9217_v7, %v9216_v48  ;;  %v4591_v14 = vpack.c.bf16 %v9078_v9, %v9074_v10  ;;  %v4977_v7 = vpack.c.bf16 %v9091_v0, %v9090_v15 }
 0x427   : > { %4584 = vmatpush1.bf16.msra.mxu0 %v4583_v42  ;;  %v4975_v42 = vpack.c.bf16 %v9082_v31, %v9079_v25 }
 0x428   : > { %4968 = vmatpush1.bf16.msra.mxu1 %v4967_v55  ;;  %4586 = vmatprep.subr.bf16.mxu0 %v4585_v57  ;;  %v9220_v57 = vld [vmem:[#allocation151_spill] sm:$0xff]  ;;  %v9221_v55 = vld [vmem:[#allocation152_spill] sm:$0xff] }
 0x429   : > { %4970 = vmatprep.subr.bf16.mxu1 %v4969_v53  ;;  %v4593_v18 = vpack.c.bf16 %v9221_v55, %v9220_v57  ;;  %v4595_v53 = vpack.c.bf16 %v9093_v61, %v9092_v60 }
 0x42b   : > { %4588 = vmatpush1.bf16.msra.mxu0 %v4587_v29  ;;  %v4979_v29 = vpack.c.bf16 %v9110_v3, %v9100_v56 }
 0x42c   : > { %4972 = vmatpush1.bf16.msra.mxu1 %v4971_v38  ;;  %4590 = vmatprep.subr.bf16.mxu0 %v4589_v1  ;;  %v4597_v1 = vpack.c.bf16 %v9118_v51, %v9117_v44  ;;  %v9223_v38 = vld [vmem:[#allocation162_spill] sm:$0xff] }
 0x42d   : > { %4974 = vmatprep.subr.bf16.mxu1 %v4973_v2  ;;  %v9222_v2 = vpack.c.bf16 %v6467_v23, %v6462_v54 }
 0x42f   : > { %4592 = vmatpush1.bf16.msra.mxu0 %v4591_v14  ;;  %v9224_v14 = vld [vmem:[#allocation161_spill] sm:$0xff] }
 0x430   : > { %4976 = vmatpush1.bf16.msra.mxu1 %v4975_v42  ;;  %4594 = vmatprep.subr.bf16.mxu0 %v4593_v18  ;;  %v9225_v0 = vpack.c.bf16 %v9223_v38, %v9224_v14  ;;  %v9226_v18 = vpack.c.bf16 %v6488_v11, %v6483_v4  ;;  %v9227_v42 = vpack.c.bf16 %v9095_v35, %v9094_v33  ;;  %v9236_v4 = vld [vmem:[#allocation174_spill] sm:$0xff] }
 0x431   : > { %4978 = vmatprep.subr.bf16.mxu1 %v4977_v7  ;;  %v9228_v7 = vpack.c.bf16 %v9097_v17, %v9096_v8  ;;  %v9240_v17 = vld [vmem:[#allocation176_spill] sm:$0xff] }
 0x433   : > { %4596 = vmatpush1.bf16.msra.mxu0 %v4595_v53  ;;  %v9229_v53 = vld [vmem:[#allocation169_spill] sm:$0xff] }
 0x434   : > { %4980 = vmatpush1.bf16.msra.mxu1 %v4979_v29  ;;  %4598 = vmatprep.subr.bf16.mxu0 %v4597_v1  ;;  %v9230_v29 = vpack.c.bf16 %v6519_v30, %v9229_v53  ;;  %v9231_v1 = vpack.c.bf16 %v9102_v13, %v6524_v32 }
 0x435   : > { %4982 = vmatprep.subr.bf16.mxu1 %v9222_v2  ;;  %v9233_v2 = vld [vmem:[#allocation172_spill] sm:$0xff] }
 0x437   : > { %4600 = vmatpush1.bf16.msra.mxu0 %v9225_v0  ;;  %v9232_v0 = vld [vmem:[#allocation173_spill] sm:$0xff] }
 0x438   : > { %4984 = vmatpush1.bf16.msra.mxu1 %v9226_v18  ;;  %4602 = vmatprep.subr.bf16.mxu0 %v9227_v42  ;;  %v9234_v11 = vpack.c.bf16 %v9232_v0, %v9233_v2  ;;  %v9235_v18 = vld [vmem:[#allocation175_spill] sm:$0xff]  ;;  %v9238_v42 = vpack.c.bf16 %v6559_v49, %v6554_v6 }
 0x439   : > { %4986 = vmatprep.subr.bf16.mxu1 %v9228_v7  ;;  %v9237_v35 = vpack.c.bf16 %v9235_v18, %v9236_v4  ;;  %v9239_v7 = vld [vmem:[#allocation177_spill] sm:$0xff] }
 0x43a   : > { %v9241_v30 = vpack.c.bf16 %v9239_v7, %v9240_v17  ;;  %v9251_v17 = vld [vmem:[#allocation192_spill] sm:$0xff] }
 0x43b   : > { %4604 = vmatpush1.bf16.msra.mxu0 %v9230_v29  ;;  %v9242_v29 = vld [vmem:[#allocation179_spill] sm:$0xff] }
 0x43c   : > { %4988 = vmatpush1.bf16.msra.mxu1 %v9231_v1  ;;  %4606 = vmatprep.subr.bf16.mxu0 %v9234_v11  ;;  %v9243_v13 = vpack.c.bf16 %v9016_v52, %v9242_v29  ;;  %v9244_v1 = vpack.c.bf16 %v9104_v63, %v9103_v27  ;;  %v9245_v11 = vld [vmem:[#allocation141_spill] sm:$0xff]  ;;  %v9254_v29 = vld [vmem:[#allocation194_spill] sm:$0xff] }
 0x43d   : > { %4990 = vmatprep.subr.bf16.mxu1 %v9237_v35  ;;  %v9246_v18 = vpack.c.bf16 %v9027_v39, %v9245_v11  ;;  %v9247_v35 = vpack.c.bf16 %v9105_v45, %v9029_v58  ;;  %v9257_v27 = vld [vmem:[#allocation197_spill] sm:$0xff]  ;;  %v9260_v45 = vld [vmem:[#allocation16_spill] sm:$0xff] }
 0x43f   : > { %4608 = vmatpush1.bf16.msra.mxu0 %v9238_v42  ;;  %v9248_v42 = vld [vmem:[#allocation188_spill] sm:$0xff] }
 0x440   : > { %4992 = vmatpush1.bf16.msra.mxu1 %v9241_v30  ;;  %4610 = vmatprep.subr.bf16.mxu0 %v9243_v13  ;;  %v9249_v7 = vpack.c.bf16 %v9107_v34, %v9248_v42  ;;  %v9250_v30 = vld [vmem:[#allocation193_spill] sm:$0xff]  ;;  %v9253_v13 = vld [vmem:[#allocation196_spill] sm:$0xff] }
 0x441   : > { %4994 = vmatprep.subr.bf16.mxu1 %v9244_v1  ;;  %v9252_v52 = vpack.c.bf16 %v9250_v30, %v9251_v17  ;;  %v9255_v63 = vpack.c.bf16 %v9253_v13, %v9254_v29  ;;  %v9256_v1 = vld [vmem:[#allocation199_spill] sm:$0xff]  ;;  %v9262_v34 = vld [vmem:[#allocation245_spill] sm:$0xff] }
 0x442   : > { %v9258_v39 = vpack.c.bf16 %v9256_v1, %v9257_v27  ;;  %v9265_v30 = vld [vmem:[#allocation21_spill] sm:$0xff]  ;;  %v9271_v27 = vld [vmem:[#allocation36_spill] sm:$0xff]  ;;  %v9272_v13 = vld [vmem:[#allocation39_spill] sm:$0xff] }
 0x443   : > { %4612 = vmatpush1.bf16.msra.mxu0 %v9246_v18  ;;  %v9259_v18 = vld [vmem:[#allocation12_spill] sm:$0xff]  ;;  %v9267_v1 = vld [vmem:[#allocation25_spill] sm:$0xff] }
 0x444   : > { %4996 = vmatpush1.bf16.msra.mxu1 %v9247_v35  ;;  %4614 = vmatprep.subr.bf16.mxu0 %v9249_v7  ;;  %v9261_v35 = vld [vmem:[#allocation244_spill] sm:$0xff]  ;;  %v9263_v7 = vld [vmem:[#allocation18_spill] sm:$0xff] }
 0x445   : > { %4998 = vmatprep.subr.bf16.mxu1 %v9252_v52  ;;  %v9264_v52 = vand.u32 4294901760, %v9154_v36  ;;  %v9274_v36 = vld [vmem:[#allocation45_spill] sm:$0xff] }
 0x447   : > { %4616 = vmatpush1.bf16.msra.mxu0 %v9255_v63  ;;  %v9266_v63 = vand.u32 4294901760, %v9157_v12  ;;  %v9276_v12 = vld [vmem:[#allocation51_spill] sm:$0xff] }
 0x448   : > { %5000 = vmatpush1.bf16.msra.mxu1 %v9258_v39  ;;  %4618 = vmatprep.subr.bf16.mxu0 %v9259_v18  ;;  %v9268_v39 = vld [vmem:[#allocation27_spill] sm:$0xff] }
 0x449   : > { %5002 = vmatprep.subr.bf16.mxu1 %v9260_v45  ;;  %v9269_v18 = vld [vmem:[#allocation31_spill] sm:$0xff]  ;;  %v9270_v45 = vld [vmem:[#allocation34_spill] sm:$0xff] }
 0x44a   : > { %2253 = vmatmul.mubr.f32.vlgmr.msra.gmra.mrb[2].mxu0 %v9261_v35 }
 0x44b   : > { %3537 = vmatmul.mubr.f32.vlgmr.msra.gmra.mrb[4].mxu1 %v9262_v34  ;;  %4620 = vmatpush1.bf16.msra.mxu0 %v9263_v7  ;;  %v9273_v7 = vld [vmem:[#allocation42_spill] sm:$0xff] }
 0x44c   : > { %2390 = vmatprep.mubr.f32.mxu0 %v9264_v52  ;;  %5004 = vmatpush1.bf16.msra.mxu1 %v9265_v30  ;;  %v9275_v52 = vld [vmem:[#allocation48_spill] sm:$0xff]  ;;  %v9329_v30 = vld [vmem:[#allocation195_spill] sm:$0xff] }
 0x44d   : > { %3674 = vmatprep.mubr.f32.mxu1 %v9266_v63  ;;  %4622 = vmatprep.subr.bf16.mxu0 %v9267_v1  ;;  %v9277_v63 = vld [vmem:[#allocation55_spill] sm:$0xff]  ;;  %v9278_v1 = vld [vmem:[#allocation57_spill] sm:$0xff] }
 0x44e   : > { %5006 = vmatprep.subr.bf16.mxu1 %v9268_v39  ;;  %v9279_v39 = vld [vmem:[#allocation60_spill] sm:$0xff] }
 0x44f   : > { %4624 = vmatpush1.bf16.msra.mxu0 %v9269_v18  ;;  %v9280_v18 = vld [vmem:[#allocation64_spill] sm:$0xff] }
 0x450   : > { %5008 = vmatpush1.bf16.msra.mxu1 %v9270_v45  ;;  %4626 = vmatprep.subr.bf16.mxu0 %v9271_v27  ;;  %v9281_v45 = vld [vmem:[#allocation66_spill] sm:$0xff]  ;;  %v9282_v27 = vld [vmem:[#allocation69_spill] sm:$0xff] }
 0x451   : > { %5010 = vmatprep.subr.bf16.mxu1 %v9272_v13  ;;  %v9283_v13 = vld [vmem:[#allocation72_spill] sm:$0xff] }
 0x453   : > { %4628 = vmatpush1.bf16.msra.mxu0 %v9273_v7  ;;  %v9284_v7 = vld [vmem:[#allocation76_spill] sm:$0xff] }
 0x454   : > { %5012 = vmatpush1.bf16.msra.mxu1 %v9274_v36  ;;  %4630 = vmatprep.subr.bf16.mxu0 %v9275_v52  ;;  %v9285_v36 = vld [vmem:[#allocation78_spill] sm:$0xff]  ;;  %v9286_v52 = vld [vmem:[#allocation81_spill] sm:$0xff] }
 0x455   : > { %5014 = vmatprep.subr.bf16.mxu1 %v9276_v12  ;;  %v9287_v12 = vld [vmem:[#allocation84_spill] sm:$0xff] }
 0x457   : > { %4632 = vmatpush1.bf16.msra.mxu0 %v9277_v63  ;;  %v9288_v63 = vld [vmem:[#allocation88_spill] sm:$0xff] }
 0x458   : > { %5016 = vmatpush1.bf16.msra.mxu1 %v9278_v1  ;;  %4634 = vmatprep.subr.bf16.mxu0 %v9279_v39  ;;  %v9289_v1 = vld [vmem:[#allocation90_spill] sm:$0xff]  ;;  %v9290_v39 = vld [vmem:[#allocation93_spill] sm:$0xff] }
 0x459   : > { %5018 = vmatprep.subr.bf16.mxu1 %v9280_v18  ;;  %v9291_v18 = vld [vmem:[#allocation96_spill] sm:$0xff] }
 0x45b   : > { %4636 = vmatpush1.bf16.msra.mxu0 %v9281_v45  ;;  %v9292_v45 = vld [vmem:[#allocation98_spill] sm:$0xff] }
 0x45c   : > { %5020 = vmatpush1.bf16.msra.mxu1 %v9282_v27  ;;  %4638 = vmatprep.subr.bf16.mxu0 %v9283_v13  ;;  %v9293_v27 = vld [vmem:[#allocation99_spill] sm:$0xff]  ;;  %v9294_v13 = vld [vmem:[#allocation100_spill] sm:$0xff] }
 0x45d   : > { %5022 = vmatprep.subr.bf16.mxu1 %v9284_v7  ;;  %v9295_v7 = vld [vmem:[#allocation109_spill] sm:$0xff] }
 0x45f   : > { %4640 = vmatpush1.bf16.msra.mxu0 %v9285_v36  ;;  %v9296_v36 = vld [vmem:[#allocation110_spill] sm:$0xff] }
 0x460   : > { %5024 = vmatpush1.bf16.msra.mxu1 %v9286_v52  ;;  %4642 = vmatprep.subr.bf16.mxu0 %v9287_v12  ;;  %v9297_v52 = vld [vmem:[#allocation111_spill] sm:$0xff]  ;;  %v9298_v12 = vld [vmem:[#allocation118_spill] sm:$0xff] }
 0x461   : > { %5026 = vmatprep.subr.bf16.mxu1 %v9288_v63  ;;  %v9299_v63 = vld [vmem:[#allocation121_spill] sm:$0xff] }
 0x463   : > { %4644 = vmatpush1.bf16.msra.mxu0 %v9289_v1  ;;  %v9300_v1 = vld [vmem:[#allocation122_spill] sm:$0xff] }
 0x464   : > { %5028 = vmatpush1.bf16.msra.mxu1 %v9290_v39  ;;  %4646 = vmatprep.subr.bf16.mxu0 %v9291_v18  ;;  %v9301_v39 = vld [vmem:[#allocation123_spill] sm:$0xff]  ;;  %v9302_v18 = vld [vmem:[#allocation124_spill] sm:$0xff] }
 0x465   : > { %5030 = vmatprep.subr.bf16.mxu1 %v9292_v45  ;;  %v9303_v45 = vld [vmem:[#allocation125_spill] sm:$0xff] }
 0x467   : > { %4648 = vmatpush1.bf16.msra.mxu0 %v9293_v27  ;;  %v9304_v27 = vld [vmem:[#allocation126_spill] sm:$0xff] }
 0x468   : > { %5032 = vmatpush1.bf16.msra.mxu1 %v9294_v13  ;;  %4650 = vmatprep.subr.bf16.mxu0 %v9295_v7  ;;  %v9305_v13 = vld [vmem:[#allocation127_spill] sm:$0xff]  ;;  %v9306_v7 = vld [vmem:[#allocation128_spill] sm:$0xff] }
 0x469   : > { %5034 = vmatprep.subr.bf16.mxu1 %v9296_v36  ;;  %v9307_v36 = vld [vmem:[#allocation129_spill] sm:$0xff] }
 0x46b   : > { %4652 = vmatpush1.bf16.msra.mxu0 %v9297_v52  ;;  %v9308_v52 = vld [vmem:[#allocation130_spill] sm:$0xff] }
 0x46c   : > { %5036 = vmatpush1.bf16.msra.mxu1 %v9298_v12  ;;  %4654 = vmatprep.subr.bf16.mxu0 %v9299_v63  ;;  %v9309_v12 = vld [vmem:[#allocation131_spill] sm:$0xff]  ;;  %v9310_v63 = vld [vmem:[#allocation132_spill] sm:$0xff] }
 0x46d   : > { %5038 = vmatprep.subr.bf16.mxu1 %v9300_v1  ;;  %v9311_v1 = vld [vmem:[#allocation133_spill] sm:$0xff] }
 0x46f   : > { %4656 = vmatpush1.bf16.msra.mxu0 %v9301_v39  ;;  %v9312_v39 = vld [vmem:[#allocation134_spill] sm:$0xff] }
 0x470   : > { %5040 = vmatpush1.bf16.msra.mxu1 %v9302_v18  ;;  %4658 = vmatprep.subr.bf16.mxu0 %v9303_v45  ;;  %v9313_v18 = vld [vmem:[#allocation135_spill] sm:$0xff]  ;;  %v9314_v45 = vld [vmem:[#allocation136_spill] sm:$0xff] }
 0x471   : > { %5042 = vmatprep.subr.bf16.mxu1 %v9304_v27  ;;  %v9315_v27 = vld [vmem:[#allocation137_spill] sm:$0xff] }
 0x473   : > { %4660 = vmatpush1.bf16.msra.mxu0 %v9305_v13  ;;  %v9316_v13 = vld [vmem:[#allocation138_spill] sm:$0xff] }
 0x474   : > { %5044 = vmatpush1.bf16.msra.mxu1 %v9306_v7  ;;  %4662 = vmatprep.subr.bf16.mxu0 %v9307_v36  ;;  %v9317_v7 = vld [vmem:[#allocation139_spill] sm:$0xff]  ;;  %v9318_v36 = vld [vmem:[#allocation142_spill] sm:$0xff] }
 0x475   : > { %5046 = vmatprep.subr.bf16.mxu1 %v9308_v52  ;;  %v9319_v52 = vld [vmem:[#allocation178_spill] sm:$0xff] }
 0x477   : > { %4664 = vmatpush1.bf16.msra.mxu0 %v9309_v12  ;;  %v9320_v12 = vld [vmem:[#allocation181_spill] sm:$0xff] }
 0x478   : > { %5048 = vmatpush1.bf16.msra.mxu1 %v9310_v63  ;;  %4666 = vmatprep.subr.bf16.mxu0 %v9311_v1  ;;  %v9321_v63 = vld [vmem:[#allocation183_spill] sm:$0xff]  ;;  %v9322_v1 = vld [vmem:[#allocation185_spill] sm:$0xff] }
 0x479   : > { %5050 = vmatprep.subr.bf16.mxu1 %v9312_v39  ;;  %v9323_v39 = vld [vmem:[#allocation189_spill] sm:$0xff] }
 0x47b   : > { %4668 = vmatpush1.bf16.msra.mxu0 %v9313_v18 }
 0x47c   : > { %5052 = vmatpush1.bf16.msra.mxu1 %v9314_v45  ;;  %4670 = vmatprep.subr.bf16.mxu0 %v9315_v27  ;;  %v9324_v45 = vand.u32 4294901760, %v9138_v28  ;;  %v9325_v27 = vand.u32 4294901760, %v9139_v59  ;;  %v9333_v28 = vand.u32 4294901760, %v9146_v62  ;;  %v9335_v59 = vand.u32 4294901760, %v9148_v40  ;;  %v9343_v62 = vld [vmem:[#allocation30_spill] sm:$0xff] }
 0x47d   : > { %5054 = vmatprep.subr.bf16.mxu1 %v9316_v13  ;;  %v9326_v13 = vld [vmem:[#allocation191_spill] sm:$0xff] }
 0x47e   : > { %v4681_v18 = vpack.c.bf16 %v9325_v27, %v9324_v45  ;;  %v9334_v27 = vand.u32 4294901760, %v9147_v50  ;;  %v9344_v50 = vand.u32 4294901760, %v9343_v62 }
 0x47f   : > { %4672 = vmatpush1.bf16.msra.mxu0 %v9317_v7  ;;  %v9327_v7 = vand.u32 4294901760, %v9140_v47  ;;  %v9336_v47 = vand.u32 4294901760, %v9149_v20  ;;  %v9348_v20 = vld [vmem:[#allocation33_spill] sm:$0xff] }
 0x480   : > { %5056 = vmatpush1.bf16.msra.mxu1 %v9318_v36  ;;  %4674 = vmatprep.subr.bf16.mxu0 %v9319_v52  ;;  %v9328_v36 = vand.u32 4294901760, %v9141_v19  ;;  %v5067_v45 = vpack.c.bf16 %v9334_v27, %v9333_v28  ;;  %v9347_v27 = vld [vmem:[#allocation240_spill] sm:$0xff] }
 0x481   : > { %5058 = vmatprep.subr.bf16.mxu1 %v9320_v12  ;;  %v4685_v19 = vpack.c.bf16 %v9336_v47, %v9335_v59  ;;  %v9350_v59 = vld [vmem:[#allocation35_spill] sm:$0xff] }
 0x482   : > { %v5065_v52 = vpack.c.bf16 %v9328_v36, %v9327_v7  ;;  %v9337_v7 = vand.u32 4294901760, %v9261_v35  ;;  %v9349_v35 = vand.u32 4294901760, %v9348_v20  ;;  %v9351_v47 = vand.u32 4294901760, %v9350_v59 }
 0x483   : > { %4676 = vmatpush1.bf16.msra.mxu0 %v9321_v63  ;;  %v9330_v63 = vand.u32 4294901760, %v9144_v26  ;;  %v9338_v26 = vld [vmem:[#allocation28_spill] sm:$0xff] }
 0x484   : > { %5060 = vmatpush1.bf16.msra.mxu1 %v9322_v1  ;;  %4678 = vmatprep.subr.bf16.mxu0 %v9323_v39  ;;  %v9331_v1 = vand.u32 4294901760, %v9145_v24  ;;  %v9332_v39 = vld [vmem:[#allocation198_spill] sm:$0xff]  ;;  %v9339_v24 = vand.u32 4294901760, %v9338_v26  ;;  %v9352_v26 = vld [vmem:[#allocation37_spill] sm:$0xff] }
 0x485   : > { %5062 = vmatprep.subr.bf16.mxu1 %v9326_v13 }
 0x486   : > { %v4683_v12 = vpack.c.bf16 %v9331_v1, %v9330_v63  ;;  %v9340_v1 = vld [vmem:[#allocation29_spill] sm:$0xff] }
 0x487   : > { %4680 = vmatpush1.bf16.msra.mxu0 %v9329_v30  ;;  %v9341_v36 = vand.u32 4294901760, %v9340_v1  ;;  %v9353_v1 = vand.u32 4294901760, %v9352_v26 }
 0x488   : > { %5064 = vmatpush1.bf16.msra.mxu1 %v9332_v39  ;;  %4682 = vmatprep.subr.bf16.mxu0 %v4681_v18  ;;  %v9342_v18 = vand.u32 4294901760, %v9262_v34  ;;  %v9363_v39 = vld [vmem:[#allocation44_spill] sm:$0xff] }
 0x489   : > { %5066 = vmatprep.subr.bf16.mxu1 %v5065_v52  ;;  %v5069_v63 = vpack.c.bf16 %v9341_v36, %v9339_v24  ;;  %v9345_v52 = vld [vmem:[#allocation32_spill] sm:$0xff]  ;;  %v9354_v24 = vld [vmem:[#allocation38_spill] sm:$0xff]  ;;  %v9364_v59 = vand.u32 4294901760, %v9363_v39 }
 0x48a   : > { %2394 = vmatmul.mubr.f32.vlgmr.msra.gmra.mrb[2].mxu0 %v9337_v7  ;;  %v9346_v28 = vand.u32 4294901760, %v9345_v52  ;;  %v5071_v7 = vpack.c.bf16 %v9351_v47, %v9349_v35  ;;  %v9355_v36 = vand.u32 4294901760, %v9354_v24  ;;  %v9359_v52 = vld [vmem:[#allocation41_spill] sm:$0xff]  ;;  %v9365_v47 = vld [vmem:[#allocation46_spill] sm:$0xff] }
 0x48b   : > { %3678 = vmatmul.mubr.f32.vlgmr.msra.gmra.mrb[4].mxu1 %v9342_v18  ;;  %4684 = vmatpush1.bf16.msra.mxu0 %v4683_v12  ;;  %v9356_v18 = vld [vmem:[#allocation241_spill] sm:$0xff]  ;;  %v9357_v12 = vld [vmem:[#allocation40_spill] sm:$0xff]  ;;  %v9366_v26 = vand.u32 4294901760, %v9365_v47  ;;  %v9377_v39 = vld [vmem:[#allocation54_spill] sm:$0xff] }
 0x48c   : > { %v4687_v40 = vpack.c.bf16 %v9346_v28, %v9344_v50  ;;  %2657 = vmatprep.mubr.f32.mxu0 %v9347_v27  ;;  %5068 = vmatpush1.bf16.msra.mxu1 %v5067_v45  ;;  %v4689_v34 = vpack.c.bf16 %v9355_v36, %v9353_v1  ;;  %v9358_v62 = vand.u32 4294901760, %v9357_v12  ;;  %v9360_v50 = vand.u32 4294901760, %v9359_v52  ;;  %v9361_v45 = vld [vmem:[#allocation43_spill] sm:$0xff]  ;;  %v9371_v12 = vld [vmem:[#allocation50_spill] sm:$0xff] }
 0x48d   : > { %3941 = vmatprep.mubr.f32.mxu1 %v9356_v18  ;;  %4686 = vmatprep.subr.bf16.mxu0 %v4685_v19  ;;  %v9362_v20 = vand.u32 4294901760, %v9361_v45  ;;  %v9367_v1 = vld [vmem:[#allocation47_spill] sm:$0xff]  ;;  %v9369_v19 = vld [vmem:[#allocation49_spill] sm:$0xff]  ;;  %v9372_v13 = vand.u32 4294901760, %v9371_v12  ;;  %v9381_v47 = vld [vmem:[#allocation58_spill] sm:$0xff] }
 0x48e   : > { %v5073_v28 = vpack.c.bf16 %v9360_v50, %v9358_v62  ;;  %5070 = vmatprep.subr.bf16.mxu1 %v5069_v63  ;;  %v9368_v24 = vand.u32 4294901760, %v9367_v1  ;;  %v9370_v30 = vand.u32 4294901760, %v9369_v19  ;;  %v9373_v63 = vld [vmem:[#allocation52_spill] sm:$0xff]  ;;  %v9375_v62 = vld [vmem:[#allocation53_spill] sm:$0xff]  ;;  %v9383_v1 = vld [vmem:[#allocation59_spill] sm:$0xff] }
 0x48f   : > { %4688 = vmatpush1.bf16.msra.mxu0 %v4687_v40  ;;  %v4691_v35 = vpack.c.bf16 %v9364_v59, %v9362_v20  ;;  %v9374_v40 = vand.u32 4294901760, %v9373_v63  ;;  %v9376_v50 = vand.u32 4294901760, %v9375_v62  ;;  %v9391_v62 = vld [vmem:[#allocation65_spill] sm:$0xff] }
 0x490   : > { %5072 = vmatpush1.bf16.msra.mxu1 %v5071_v7  ;;  %4690 = vmatprep.subr.bf16.mxu0 %v4689_v34  ;;  %v5075_v36 = vpack.c.bf16 %v9368_v24, %v9366_v26  ;;  %v4693_v52 = vpack.c.bf16 %v9372_v13, %v9370_v30  ;;  %v9378_v7 = vand.u32 4294901760, %v9377_v39  ;;  %v9379_v34 = vld [vmem:[#allocation56_spill] sm:$0xff]  ;;  %v9382_v26 = vand.u32 4294901760, %v9381_v47  ;;  %v9385_v30 = vld [vmem:[#allocation61_spill] sm:$0xff]  ;;  %v9397_v47 = vld [vmem:[#allocation70_spill] sm:$0xff] }
 0x491   : > { %5074 = vmatprep.subr.bf16.mxu1 %v5073_v28  ;;  %v5077_v45 = vpack.c.bf16 %v9376_v50, %v9374_v40  ;;  %v9380_v20 = vand.u32 4294901760, %v9379_v34  ;;  %v9384_v24 = vand.u32 4294901760, %v9383_v1  ;;  %v9386_v13 = vand.u32 4294901760, %v9385_v30  ;;  %v9387_v28 = vld [vmem:[#allocation62_spill] sm:$0xff]  ;;  %v9389_v40 = vld [vmem:[#allocation63_spill] sm:$0xff] }
 0x492   : > { %v9388_v12 = vand.u32 4294901760, %v9387_v28  ;;  %v9392_v50 = vand.u32 4294901760, %v9391_v62  ;;  %v9399_v1 = vld [vmem:[#allocation71_spill] sm:$0xff]  ;;  %v9403_v28 = vld [vmem:[#allocation74_spill] sm:$0xff]  ;;  %v9407_v62 = vld [vmem:[#allocation77_spill] sm:$0xff] }
 0x493   : > { %4692 = vmatpush1.bf16.msra.mxu0 %v4691_v35  ;;  %v4695_v59 = vpack.c.bf16 %v9380_v20, %v9378_v7  ;;  %v5079_v19 = vpack.c.bf16 %v9384_v24, %v9382_v26  ;;  %v9390_v35 = vand.u32 4294901760, %v9389_v40  ;;  %v9393_v7 = vld [vmem:[#allocation67_spill] sm:$0xff]  ;;  %v9398_v26 = vand.u32 4294901760, %v9397_v47  ;;  %v9413_v47 = vld [vmem:[#allocation82_spill] sm:$0xff] }
 0x494   : > { %5076 = vmatpush1.bf16.msra.mxu1 %v5075_v36  ;;  %4694 = vmatprep.subr.bf16.mxu0 %v4693_v52  ;;  %v4697_v63 = vpack.c.bf16 %v9388_v12, %v9386_v13  ;;  %v9394_v36 = vand.u32 4294901760, %v9393_v7  ;;  %v9395_v52 = vld [vmem:[#allocation68_spill] sm:$0xff]  ;;  %v9400_v24 = vand.u32 4294901760, %v9399_v1  ;;  %v9401_v13 = vld [vmem:[#allocation73_spill] sm:$0xff]  ;;  %v9404_v12 = vand.u32 4294901760, %v9403_v28  ;;  %v9415_v1 = vld [vmem:[#allocation83_spill] sm:$0xff] }
 0x495   : > { %5078 = vmatprep.subr.bf16.mxu1 %v5077_v45  ;;  %v5081_v39 = vpack.c.bf16 %v9392_v50, %v9390_v35  ;;  %v9396_v34 = vand.u32 4294901760, %v9395_v52  ;;  %v9402_v45 = vand.u32 4294901760, %v9401_v13  ;;  %v9405_v35 = vld [vmem:[#allocation75_spill] sm:$0xff]  ;;  %v9408_v50 = vand.u32 4294901760, %v9407_v62  ;;  %v9419_v28 = vld [vmem:[#allocation86_spill] sm:$0xff]  ;;  %v9423_v62 = vld [vmem:[#allocation89_spill] sm:$0xff] }
 0x496   : > { %v5083_v30 = vpack.c.bf16 %v9400_v24, %v9398_v26  ;;  %v9414_v26 = vand.u32 4294901760, %v9413_v47  ;;  %v9416_v24 = vand.u32 4294901760, %v9415_v1  ;;  %v9429_v47 = vld [vmem:[#allocation94_spill] sm:$0xff]  ;;  %v9431_v1 = vld [vmem:[#allocation95_spill] sm:$0xff] }
 0x497   : > { %4696 = vmatpush1.bf16.msra.mxu0 %v4695_v59  ;;  %v4699_v20 = vpack.c.bf16 %v9396_v34, %v9394_v36  ;;  %v4701_v40 = vpack.c.bf16 %v9404_v12, %v9402_v45  ;;  %v9406_v59 = vand.u32 4294901760, %v9405_v35  ;;  %v9409_v36 = vld [vmem:[#allocation79_spill] sm:$0xff]  ;;  %v9417_v45 = vld [vmem:[#allocation85_spill] sm:$0xff]  ;;  %v9420_v12 = vand.u32 4294901760, %v9419_v28  ;;  %v9435_v28 = vld [vmem:[#allocation102_spill] sm:$0xff] }
 0x498   : > { %5080 = vmatpush1.bf16.msra.mxu1 %v5079_v19  ;;  %4698 = vmatprep.subr.bf16.mxu0 %v4697_v63  ;;  %v9410_v19 = vand.u32 4294901760, %v9409_v36  ;;  %v9411_v63 = vld [vmem:[#allocation80_spill] sm:$0xff]  ;;  %v5087_v13 = vpack.c.bf16 %v9416_v24, %v9414_v26  ;;  %v9430_v26 = vand.u32 4294901760, %v9429_v47  ;;  %v9432_v24 = vand.u32 4294901760, %v9431_v1  ;;  %v9445_v47 = vld [vmem:[#allocation107_spill] sm:$0xff] }
 0x499   : > { %5082 = vmatprep.subr.bf16.mxu1 %v5081_v39  ;;  %v5085_v7 = vpack.c.bf16 %v9408_v50, %v9406_v59  ;;  %v9412_v52 = vand.u32 4294901760, %v9411_v63  ;;  %v9418_v39 = vand.u32 4294901760, %v9417_v45  ;;  %v9421_v59 = vld [vmem:[#allocation87_spill] sm:$0xff]  ;;  %v9424_v50 = vand.u32 4294901760, %v9423_v62  ;;  %v9439_v62 = vld [vmem:[#allocation104_spill] sm:$0xff] }
 0x49a   : > { %v5091_v45 = vpack.c.bf16 %v9432_v24, %v9430_v26  ;;  %v9446_v26 = vand.u32 4294901760, %v9445_v47  ;;  %v9447_v1 = vld [vmem:[#allocation108_spill] sm:$0xff]  ;;  %v9464_v47 = vand.u32 4294901760, %v9074_v10 }
 0x49b   : > { %4700 = vmatpush1.bf16.msra.mxu0 %v4699_v20  ;;  %v4703_v34 = vpack.c.bf16 %v9412_v52, %v9410_v19  ;;  %v4705_v35 = vpack.c.bf16 %v9420_v12, %v9418_v39  ;;  %v9422_v20 = vand.u32 4294901760, %v9421_v59  ;;  %v9425_v19 = vld [vmem:[#allocation91_spill] sm:$0xff]  ;;  %v9433_v39 = vld [vmem:[#allocation101_spill] sm:$0xff]  ;;  %v9436_v12 = vand.u32 4294901760, %v9435_v28 }
 0x49c   : > { %5084 = vmatpush1.bf16.msra.mxu1 %v5083_v30  ;;  %4702 = vmatprep.subr.bf16.mxu0 %v4701_v40  ;;  %v9426_v30 = vand.u32 4294901760, %v9425_v19  ;;  %v9427_v40 = vld [vmem:[#allocation92_spill] sm:$0xff]  ;;  %v9448_v24 = vand.u32 4294901760, %v9447_v1 }
 0x49d   : > { %5086 = vmatprep.subr.bf16.mxu1 %v5085_v7  ;;  %v5089_v36 = vpack.c.bf16 %v9424_v50, %v9422_v20  ;;  %v9428_v63 = vand.u32 4294901760, %v9427_v40  ;;  %v9434_v7 = vand.u32 4294901760, %v9433_v39  ;;  %v9437_v20 = vld [vmem:[#allocation103_spill] sm:$0xff]  ;;  %v9440_v50 = vand.u32 4294901760, %v9439_v62 }
 0x49e   : > { %v5095_v39 = vpack.c.bf16 %v9448_v24, %v9446_v26  ;;  %v9465_v26 = vand.u32 4294901760, %v9078_v9  ;;  %v9468_v24 = vand.u32 4294901760, %v9220_v57  ;;  %v9473_v9 = vand.u32 4294901760, %v9092_v60 }
 0x49f   : > { %4704 = vmatpush1.bf16.msra.mxu0 %v4703_v34  ;;  %v4707_v52 = vpack.c.bf16 %v9428_v63, %v9426_v30  ;;  %v4709_v59 = vpack.c.bf16 %v9436_v12, %v9434_v7  ;;  %v9438_v34 = vand.u32 4294901760, %v9437_v20  ;;  %v9441_v30 = vld [vmem:[#allocation105_spill] sm:$0xff]  ;;  %v9453_v20 = vand.u32 4294901760, %v9211_v41 }
 0x4a0   : > { %5088 = vmatpush1.bf16.msra.mxu1 %v5087_v13  ;;  %4706 = vmatprep.subr.bf16.mxu0 %v4705_v35  ;;  %v9442_v13 = vand.u32 4294901760, %v9441_v30  ;;  %v9443_v35 = vld [vmem:[#allocation106_spill] sm:$0xff]  ;;  %v9450_v7 = vld [vmem:[#allocation113_spill] sm:$0xff]  ;;  %v9457_v30 = vand.u32 4294901760, %v9214_v21  ;;  %v9462_v41 = vand.u32 4294901760, %v9218_v22  ;;  %v4719_v21 = vpack.c.bf16 %v9465_v26, %v9464_v47 }
 0x4a1   : > { %5090 = vmatprep.subr.bf16.mxu1 %v5089_v36  ;;  %v5093_v19 = vpack.c.bf16 %v9440_v50, %v9438_v34  ;;  %v9444_v40 = vand.u32 4294901760, %v9443_v35  ;;  %v9449_v36 = vand.u32 4294901760, %v9208_v43  ;;  %v9451_v28 = vand.u32 4294901760, %v9450_v7  ;;  %v9460_v35 = vld [vmem:[#allocation144_spill] sm:$0xff] }
 0x4a2   : > { %v9458_v43 = vand.u32 4294901760, %v9215_v37  ;;  %v9466_v37 = vand.u32 4294901760, %v9079_v25  ;;  %v9469_v22 = vand.u32 4294901760, %v9221_v55  ;;  %v9476_v57 = vand.u32 4294901760, %v9110_v3  ;;  %v9483_v3 = vld [vmem:[#allocation163_spill] sm:$0xff] }
 0x4a3   : > { %4708 = vmatpush1.bf16.msra.mxu0 %v4707_v52  ;;  %v4711_v63 = vpack.c.bf16 %v9444_v40, %v9442_v13  ;;  %v4713_v12 = vpack.c.bf16 %v9451_v28, %v9449_v36  ;;  %v9452_v52 = vand.u32 4294901760, %v9210_v5  ;;  %v9461_v5 = vand.u32 4294901760, %v9460_v35  ;;  %v9471_v36 = vld [vmem:[#allocation154_spill] sm:$0xff] }
 0x4a4   : > { %5092 = vmatpush1.bf16.msra.mxu1 %v5091_v45  ;;  %4710 = vmatprep.subr.bf16.mxu0 %v4709_v59  ;;  %v9454_v45 = vand.u32 4294901760, %v9212_v46  ;;  %v9455_v59 = vld [vmem:[#allocation117_spill] sm:$0xff]  ;;  %v5099_v13 = vpack.c.bf16 %v9458_v43, %v9457_v30  ;;  %v9463_v46 = vand.u32 4294901760, %v9219_v16  ;;  %v9470_v16 = vand.u32 4294901760, %v9090_v15  ;;  %v9488_v30 = vld [vmem:[#allocation166_spill] sm:$0xff] }
 0x4a5   : > { %5094 = vmatprep.subr.bf16.mxu1 %v5093_v19  ;;  %v5097_v34 = vpack.c.bf16 %v9453_v20, %v9452_v52  ;;  %v9456_v62 = vand.u32 4294901760, %v9455_v59  ;;  %v9459_v19 = vand.u32 4294901760, %v9216_v48  ;;  %v9467_v48 = vand.u32 4294901760, %v9082_v31  ;;  %v9494_v35 = vld [vmem:[#allocation170_spill] sm:$0xff] }
 0x4a6   : > { %v9472_v10 = vand.u32 4294901760, %v9471_v36  ;;  %v9474_v28 = vand.u32 4294901760, %v9093_v61  ;;  %v9475_v31 = vand.u32 4294901760, %v9100_v56  ;;  %v9478_v15 = vand.u32 4294901760, %v9118_v51  ;;  %v9510_v36 = vld [vmem:[#allocation179_spill] sm:$0xff] }
 0x4a7   : > { %4712 = vmatpush1.bf16.msra.mxu0 %v4711_v63  ;;  %v4715_v50 = vpack.c.bf16 %v9456_v62, %v9454_v45  ;;  %v4717_v40 = vpack.c.bf16 %v9461_v5, %v9459_v19  ;;  %v5101_v63 = vpack.c.bf16 %v9463_v46, %v9462_v41  ;;  %v5103_v1 = vpack.c.bf16 %v9467_v48, %v9466_v37  ;;  %v9502_v37 = vld [vmem:[#allocation175_spill] sm:$0xff] }
 0x4a8   : > { %5096 = vmatpush1.bf16.msra.mxu1 %v5095_v39  ;;  %4714 = vmatprep.subr.bf16.mxu0 %v4713_v12  ;;  %v4721_v39 = vpack.c.bf16 %v9469_v22, %v9468_v24  ;;  %v5105_v7 = vpack.c.bf16 %v9472_v10, %v9470_v16  ;;  %v4723_v25 = vpack.c.bf16 %v9474_v28, %v9473_v9  ;;  %v9477_v12 = vand.u32 4294901760, %v9117_v44  ;;  %v9485_v44 = vld [vmem:[#allocation164_spill] sm:$0xff]  ;;  %v9514_v28 = vld [vmem:[#allocation182_spill] sm:$0xff] }
 0x4a9   : > { %5098 = vmatprep.subr.bf16.mxu1 %v5097_v34  ;;  %v5107_v55 = vpack.c.bf16 %v9476_v57, %v9475_v31  ;;  %v9479_v20 = vand.u32 4294901760, %v6462_v54  ;;  %v9480_v60 = vand.u32 4294901760, %v6467_v23  ;;  %v9481_v61 = vand.u32 4294901760, %v9224_v14  ;;  %v9506_v22 = vld [vmem:[#allocation176_spill] sm:$0xff] }
 0x4aa   : > { %v4725_v52 = vpack.c.bf16 %v9478_v15, %v9477_v12  ;;  %v9482_v45 = vand.u32 4294901760, %v9223_v38  ;;  %v9484_v59 = vand.u32 4294901760, %v9483_v3  ;;  %v9486_v62 = vand.u32 4294901760, %v9485_v44  ;;  %v9516_v31 = vld [vmem:[#allocation140_spill] sm:$0xff]  ;;  %v9528_v44 = vld [vmem:[#allocation193_spill] sm:$0xff] }
 0x4ab   : > { %4716 = vmatpush1.bf16.msra.mxu0 %v4715_v50  ;;  %v5109_v34 = vpack.c.bf16 %v9480_v60, %v9479_v20  ;;  %v9487_v50 = vand.u32 4294901760, %v9094_v33  ;;  %v9489_v54 = vand.u32 4294901760, %v9488_v30  ;;  %v9490_v23 = vand.u32 4294901760, %v9096_v8  ;;  %v9497_v33 = vld [vmem:[#allocation171_spill] sm:$0xff] }
 0x4ac   : > { %5100 = vmatpush1.bf16.msra.mxu1 %v5099_v13  ;;  %4718 = vmatprep.subr.bf16.mxu0 %v4717_v40  ;;  %v4727_v56 = vpack.c.bf16 %v9482_v45, %v9481_v61  ;;  %v5111_v51 = vpack.c.bf16 %v9486_v62, %v9484_v59  ;;  %v9491_v13 = vld [vmem:[#allocation168_spill] sm:$0xff]  ;;  %v9493_v38 = vand.u32 4294901760, %v9229_v53  ;;  %v9495_v5 = vand.u32 4294901760, %v9494_v35  ;;  %v9522_v20 = vld [vmem:[#allocation187_spill] sm:$0xff]  ;;  %v9525_v45 = vld [vmem:[#allocation190_spill] sm:$0xff] }
 0x4ad   : > { %5102 = vmatprep.subr.bf16.mxu1 %v5101_v63  ;;  %v4729_v43 = vpack.c.bf16 %v9489_v54, %v9487_v50  ;;  %v9492_v14 = vand.u32 4294901760, %v9491_v13  ;;  %v9496_v41 = vand.u32 4294901760, %v6524_v32  ;;  %v9498_v46 = vand.u32 4294901760, %v9497_v33  ;;  %v9531_v50 = vld [vmem:[#allocation196_spill] sm:$0xff]  ;;  %v9533_v54 = vld [vmem:[#allocation197_spill] sm:$0xff]  ;;  %v9546_v33 = vld [vmem:[#allocation34_spill] sm:$0xff] }
 0x4ae   : > { %v4731_v40 = vpack.c.bf16 %v9495_v5, %v9493_v38  ;;  %v9499_v47 = vand.u32 4294901760, %v9233_v2  ;;  %v9500_v8 = vand.u32 4294901760, %v9232_v0  ;;  %v9503_v53 = vand.u32 4294901760, %v9502_v37  ;;  %v9508_v2 = vld [vmem:[#allocation177_spill] sm:$0xff]  ;;  %v9541_v38 = vld [vmem:[#allocation18_spill] sm:$0xff]  ;;  %v9555_v37 = vld [vmem:[#allocation60_spill] sm:$0xff] }
 0x4af   : > { %4720 = vmatpush1.bf16.msra.mxu0 %v4719_v21  ;;  %v5113_v19 = vpack.c.bf16 %v9492_v14, %v9490_v23  ;;  %v5115_v63 = vpack.c.bf16 %v9498_v46, %v9496_v41  ;;  %v9501_v21 = vand.u32 4294901760, %v9236_v4  ;;  %v9505_v24 = vand.u32 4294901760, %v6559_v49  ;;  %v9538_v14 = vld [vmem:[#allocation16_spill] sm:$0xff]  ;;  %v9542_v35 = vld [vmem:[#allocation21_spill] sm:$0xff]  ;;  %v9545_v41 = vld [vmem:[#allocation31_spill] sm:$0xff] }
 0x4b0   : > { %5104 = vmatpush1.bf16.msra.mxu1 %v5103_v1  ;;  %4722 = vmatprep.subr.bf16.mxu0 %v4721_v39  ;;  %v4733_v26 = vpack.c.bf16 %v9500_v8, %v9499_v47  ;;  %v9504_v1 = vand.u32 4294901760, %v6554_v6  ;;  %v9507_v39 = vand.u32 4294901760, %v9506_v22  ;;  %v9509_v16 = vand.u32 4294901760, %v9508_v2  ;;  %v9543_v5 = vld [vmem:[#allocation25_spill] sm:$0xff]  ;;  %v9547_v46 = vld [vmem:[#allocation36_spill] sm:$0xff]  ;;  %v9549_v47 = vld [vmem:[#allocation42_spill] sm:$0xff] }
 0x4b1   : > { %5106 = vmatprep.subr.bf16.mxu1 %v5105_v7  ;;  %v5117_v48 = vpack.c.bf16 %v9503_v53, %v9501_v21  ;;  %v9511_v10 = vand.u32 4294901760, %v9510_v36  ;;  %v9512_v7 = vld [vmem:[#allocation180_spill] sm:$0xff]  ;;  %v9517_v6 = vand.u32 4294901760, %v9516_v31  ;;  %v9518_v49 = vand.u32 4294901760, %v9245_v11  ;;  %v9550_v8 = vld [vmem:[#allocation45_spill] sm:$0xff]  ;;  %v9561_v22 = vld [vmem:[#allocation78_spill] sm:$0xff] }
 0x4b2   : > { %v4735_v32 = vpack.c.bf16 %v9505_v24, %v9504_v1  ;;  %v5119_v0 = vpack.c.bf16 %v9509_v16, %v9507_v39  ;;  %v9513_v4 = vand.u32 4294901760, %v9512_v7  ;;  %v9523_v60 = vand.u32 4294901760, %v9522_v20  ;;  %v9554_v21 = vld [vmem:[#allocation57_spill] sm:$0xff]  ;;  %v9556_v53 = vld [vmem:[#allocation64_spill] sm:$0xff]  ;;  %v9568_v7 = vld [vmem:[#allocation98_spill] sm:$0xff] }
 0x4b3   : > { %4724 = vmatpush1.bf16.msra.mxu0 %v4723_v25  ;;  %v9515_v25 = vand.u32 4294901760, %v9514_v28  ;;  %v9524_v61 = vand.u32 4294901760, %v9248_v42  ;;  %v9527_v59 = vand.u32 4294901760, %v9251_v17  ;;  %v9529_v11 = vand.u32 4294901760, %v9528_v44  ;;  %v9535_v42 = vld [vmem:[#allocation199_spill] sm:$0xff]  ;;  %v9537_v17 = vld [vmem:[#allocation12_spill] sm:$0xff] }
 0x4b4   : > { %5108 = vmatpush1.bf16.msra.mxu1 %v5107_v55  ;;  %4726 = vmatprep.subr.bf16.mxu0 %v4725_v52  ;;  %v4737_v9 = vpack.c.bf16 %v9513_v4, %v9511_v10  ;;  %v9519_v55 = vld [vmem:[#allocation184_spill] sm:$0xff]  ;;  %v9521_v52 = vand.u32 4294901760, %v9029_v58  ;;  %v9532_v30 = vand.u32 4294901760, %v9531_v50  ;;  %v9536_v23 = vand.u32 4294901760, %v9535_v42  ;;  %v9558_v1 = vld [vmem:[#allocation69_spill] sm:$0xff]  ;;  %v9569_v4 = vld [vmem:[#allocation99_spill] sm:$0xff] }
 0x4b5   : > { %5110 = vmatprep.subr.bf16.mxu1 %v5109_v34  ;;  %v5121_v57 = vpack.c.bf16 %v9517_v6, %v9515_v25  ;;  %v9520_v12 = vand.u32 4294901760, %v9519_v55  ;;  %v5125_v62 = vpack.c.bf16 %v9529_v11, %v9527_v59  ;;  %v9559_v24 = vld [vmem:[#allocation72_spill] sm:$0xff]  ;;  %v9562_v39 = vld [vmem:[#allocation81_spill] sm:$0xff]  ;;  %v9572_v25 = vld [vmem:[#allocation110_spill] sm:$0xff] }
 0x4b6   : > { %v5123_v34 = vpack.c.bf16 %v9523_v60, %v9521_v52  ;;  %v9563_v2 = vld [vmem:[#allocation84_spill] sm:$0xff]  ;;  %v9566_v36 = vld [vmem:[#allocation93_spill] sm:$0xff]  ;;  %v9573_v31 = vld [vmem:[#allocation111_spill] sm:$0xff] }
 0x4b7   : > { %4728 = vmatpush1.bf16.msra.mxu0 %v4727_v56  ;;  %v4739_v15 = vpack.c.bf16 %v9520_v12, %v9518_v49  ;;  %v9526_v56 = vand.u32 4294901760, %v9525_v45  ;;  %v9564_v16 = vld [vmem:[#allocation88_spill] sm:$0xff]  ;;  %v9571_v28 = vld [vmem:[#allocation109_spill] sm:$0xff]  ;;  %v9574_v6 = vld [vmem:[#allocation118_spill] sm:$0xff] }
 0x4b8   : > { %5112 = vmatpush1.bf16.msra.mxu1 %v5111_v51  ;;  %4730 = vmatprep.subr.bf16.mxu0 %v4729_v43  ;;  %v9530_v51 = vand.u32 4294901760, %v9254_v29  ;;  %v9534_v43 = vand.u32 4294901760, %v9533_v54  ;;  %v9540_v29 = vld [vmem:[#allocation239_spill] sm:$0xff]  ;;  %v9567_v10 = vld [vmem:[#allocation96_spill] sm:$0xff]  ;;  %v9576_v49 = vld [vmem:[#allocation122_spill] sm:$0xff] }
 0x4b9   : > { %5114 = vmatprep.subr.bf16.mxu1 %v5113_v19  ;;  %v4741_v3 = vpack.c.bf16 %v9526_v56, %v9524_v61  ;;  %v9539_v19 = vld [vmem:[#allocation238_spill] sm:$0xff]  ;;  %v9577_v55 = vld [vmem:[#allocation123_spill] sm:$0xff]  ;;  %v9578_v12 = vld [vmem:[#allocation124_spill] sm:$0xff] }
 0x4ba   : > { %v4743_v58 = vpack.c.bf16 %v9532_v30, %v9530_v51  ;;  %v5127_v13 = vpack.c.bf16 %v9536_v23, %v9534_v43  ;;  %v9580_v52 = vld [vmem:[#allocation126_spill] sm:$0xff]  ;;  %v9581_v20 = vld [vmem:[#allocation127_spill] sm:$0xff]  ;;  %v9582_v60 = vld [vmem:[#allocation128_spill] sm:$0xff] }
 0x4bb   : > { %4732 = vmatpush1.bf16.msra.mxu0 %v4731_v40  ;;  %v9544_v40 = vld [vmem:[#allocation27_spill] sm:$0xff]  ;;  %v9584_v61 = vld [vmem:[#allocation130_spill] sm:$0xff]  ;;  %v9586_v56 = vld [vmem:[#allocation132_spill] sm:$0xff] }
 0x4bc   : > { %5116 = vmatpush1.bf16.msra.mxu1 %v5115_v63  ;;  %4734 = vmatprep.subr.bf16.mxu0 %v4733_v26  ;;  %v9548_v63 = vld [vmem:[#allocation39_spill] sm:$0xff]  ;;  %v9588_v59 = vld [vmem:[#allocation134_spill] sm:$0xff]  ;;  %v9590_v11 = vld [vmem:[#allocation136_spill] sm:$0xff] }
 0x4bd   : > { %5118 = vmatprep.subr.bf16.mxu1 %v5117_v48  ;;  %v9552_v26 = vld [vmem:[#allocation51_spill] sm:$0xff]  ;;  %v9557_v48 = vld [vmem:[#allocation66_spill] sm:$0xff]  ;;  %v9596_v54 = vld [vmem:[#allocation181_spill] sm:$0xff] }
 0x4be   : > { %v9585_v45 = vld [vmem:[#allocation131_spill] sm:$0xff]  ;;  %v9592_v51 = vld [vmem:[#allocation138_spill] sm:$0xff]  ;;  %v9598_v42 = vld [vmem:[#allocation185_spill] sm:$0xff] }
 0x4bf   : > { %4736 = vmatpush1.bf16.msra.mxu0 %v4735_v32  ;;  %v9560_v32 = vld [vmem:[#allocation76_spill] sm:$0xff]  ;;  %v9589_v44 = vld [vmem:[#allocation135_spill] sm:$0xff]  ;;  %v9594_v30 = vld [vmem:[#allocation142_spill] sm:$0xff] }
 0x4c0   : > { %5120 = vmatpush1.bf16.msra.mxu1 %v5119_v0  ;;  %4738 = vmatprep.subr.bf16.mxu0 %v4737_v9  ;;  %v9565_v0 = vld [vmem:[#allocation90_spill] sm:$0xff]  ;;  %v9570_v9 = vld [vmem:[#allocation100_spill] sm:$0xff]  ;;  %v9593_v50 = vld [vmem:[#allocation139_spill] sm:$0xff] }
 0x4c1   : > { %5122 = vmatprep.subr.bf16.mxu1 %v5121_v57  ;;  %v9575_v57 = vld [vmem:[#allocation121_spill] sm:$0xff]  ;;  %v9597_v43 = vld [vmem:[#allocation183_spill] sm:$0xff] }
 0x4c2   : > { %v9599_v23 = vld [vmem:[#allocation189_spill] sm:$0xff] }
 0x4c3   : > { %4740 = vmatpush1.bf16.msra.mxu0 %v4739_v15  ;;  %v9579_v15 = vld [vmem:[#allocation125_spill] sm:$0xff] }
 0x4c4   : > { %5124 = vmatpush1.bf16.msra.mxu1 %v5123_v34  ;;  %4742 = vmatprep.subr.bf16.mxu0 %v4741_v3  ;;  %v9583_v34 = vld [vmem:[#allocation129_spill] sm:$0xff] }
 0x4c5   : > { %5126 = vmatprep.subr.bf16.mxu1 %v5125_v62  ;;  %v9587_v3 = vld [vmem:[#allocation133_spill] sm:$0xff] }
 0x4c6   : > { %v9591_v62 = vld [vmem:[#allocation137_spill] sm:$0xff] }
 0x4c7   : > { %4744 = vmatpush1.bf16.msra.mxu0 %v4743_v58  ;;  %v9595_v58 = vld [vmem:[#allocation178_spill] sm:$0xff] }
 0x4c8   : > { %5128 = vmatpush1.bf16.msra.mxu1 %v5127_v13  ;;  %4746 = vmatprep.subr.bf16.mxu0 %v9537_v17  ;;  %v9600_v13 = vld [vmem:[#allocation191_spill] sm:$0xff] }
 0x4c9   : > { %5130 = vmatprep.subr.bf16.mxu1 %v9538_v14  ;;  %v9601_v17 = vld [vmem:[#allocation195_spill] sm:$0xff]  ;;  %v9602_v14 = vld [vmem:[#allocation198_spill] sm:$0xff] }
 0x4ca   : > { %2659 = vmatmul.mubr.f32.vlgmr.msra.gmra.mrb[2].mxu0 %v9539_v19 }
 0x4cb   : > { %3943 = vmatmul.mubr.f32.vlgmr.msra.gmra.mrb[4].mxu1 %v9540_v29  ;;  %4748 = vmatpush1.bf16.msra.mxu0 %v9541_v38 }
 0x4cc   : > { %2794 = vmatprep.mubr.f32.mxu0 %v9347_v27  ;;  %5132 = vmatpush1.bf16.msra.mxu1 %v9542_v35  ;;  %v9551_v27 = vld [vmem:[#allocation48_spill] sm:$0xff] }
 0x4cd   : > { %4078 = vmatprep.mubr.f32.mxu1 %v9356_v18  ;;  %4750 = vmatprep.subr.bf16.mxu0 %v9543_v5  ;;  %v9553_v18 = vld [vmem:[#allocation55_spill] sm:$0xff] }
 0x4ce   : > { %5134 = vmatprep.subr.bf16.mxu1 %v9544_v40 }
 0x4cf   : > { %4752 = vmatpush1.bf16.msra.mxu0 %v9545_v41 }
 0x4d0   : > { %5136 = vmatpush1.bf16.msra.mxu1 %v9546_v33  ;;  %4754 = vmatprep.subr.bf16.mxu0 %v9547_v46 }
 0x4d1   : > { %5138 = vmatprep.subr.bf16.mxu1 %v9548_v63 }
 0x4d3   : > { %4756 = vmatpush1.bf16.msra.mxu0 %v9549_v47 }
 0x4d4   : > { %5140 = vmatpush1.bf16.msra.mxu1 %v9550_v8  ;;  %4758 = vmatprep.subr.bf16.mxu0 %v9551_v27 }
 0x4d5   : > { %5142 = vmatprep.subr.bf16.mxu1 %v9552_v26 }
 0x4d7   : > { %4760 = vmatpush1.bf16.msra.mxu0 %v9553_v18  ;;  %v9603_v18 = vld [vmem:[#allocation97_spill] sm:$0xff] }
 0x4d8   : > { %5144 = vmatpush1.bf16.msra.mxu1 %v9554_v21  ;;  %4762 = vmatprep.subr.bf16.mxu0 %v9555_v37 }
 0x4d9   : > { %5146 = vmatprep.subr.bf16.mxu1 %v9556_v53  ;;  %v9604_v53 = vld [vmem:[#allocation222_spill] sm:$0xff] }
 0x4db   : > { %4764 = vmatpush1.bf16.msra.mxu0 %v9557_v48 }
 0x4dc   : > { %5148 = vmatpush1.bf16.msra.mxu1 %v9558_v1  ;;  %4766 = vmatprep.subr.bf16.mxu0 %v9559_v24  ;;  %v9605_v1 = vld [vmem:[#allocation220_spill] sm:$0xff] }
 0x4dd   : > { %5150 = vmatprep.subr.bf16.mxu1 %v9560_v32  ;;  %v9606_v32 = vld [vmem:[#allocation227_spill] sm:$0xff] }
 0x4df   : > { %4768 = vmatpush1.bf16.msra.mxu0 %v9561_v22 }
 0x4e0   : > { %5152 = vmatpush1.bf16.msra.mxu1 %v9562_v39  ;;  %4770 = vmatprep.subr.bf16.mxu0 %v9563_v2  ;;  %v9607_v39 = vld [vmem:[#allocation230_spill] sm:$0xff] }
 0x4e1   : > { %5154 = vmatprep.subr.bf16.mxu1 %v9564_v16  ;;  %v9608_v16 = vld [vmem:[#allocation223_spill] sm:$0xff] }
 0x4e3   : > { %4772 = vmatpush1.bf16.msra.mxu0 %v9565_v0 }
 0x4e4   : > { %5156 = vmatpush1.bf16.msra.mxu1 %v9566_v36  ;;  %4774 = vmatprep.subr.bf16.mxu0 %v9567_v10  ;;  %v9609_v36 = vld [vmem:[#allocation221_spill] sm:$0xff] }
 0x4e5   : > { %5158 = vmatprep.subr.bf16.mxu1 %v9568_v7  ;;  %v9610_v7 = vld [vmem:[#allocation228_spill] sm:$0xff] }
 0x4e7   : > { %4776 = vmatpush1.bf16.msra.mxu0 %v9569_v4 }
 0x4e8   : > { %5160 = vmatpush1.bf16.msra.mxu1 %v9570_v9  ;;  %4778 = vmatprep.subr.bf16.mxu0 %v9571_v28  ;;  %v9611_v9 = vld [vmem:[#allocation231_spill] sm:$0xff] }
 0x4e9   : > { %5162 = vmatprep.subr.bf16.mxu1 %v9572_v25 }
 0x4eb   : > { %4780 = vmatpush1.bf16.msra.mxu0 %v9573_v31 }
 0x4ec   : > { %5164 = vmatpush1.bf16.msra.mxu1 %v9574_v6  ;;  %4782 = vmatprep.subr.bf16.mxu0 %v9575_v57 }
 0x4ed   : > { %5166 = vmatprep.subr.bf16.mxu1 %v9576_v49 }
 0x4ef   : > { %4784 = vmatpush1.bf16.msra.mxu0 %v9577_v55 }
 0x4f0   : > { %5168 = vmatpush1.bf16.msra.mxu1 %v9578_v12  ;;  %4786 = vmatprep.subr.bf16.mxu0 %v9579_v15 }
 0x4f1   : > { %5170 = vmatprep.subr.bf16.mxu1 %v9580_v52 }
 0x4f3   : > { %4788 = vmatpush1.bf16.msra.mxu0 %v9581_v20 }
 0x4f4   : > { %5172 = vmatpush1.bf16.msra.mxu1 %v9582_v60  ;;  %4790 = vmatprep.subr.bf16.mxu0 %v9583_v34 }
 0x4f5   : > { %5174 = vmatprep.subr.bf16.mxu1 %v9584_v61 }
 0x4f7   : > { %4792 = vmatpush1.bf16.msra.mxu0 %v9585_v45 }
 0x4f8   : > { %5176 = vmatpush1.bf16.msra.mxu1 %v9586_v56  ;;  %4794 = vmatprep.subr.bf16.mxu0 %v9587_v3 }
 0x4f9   : > { %5178 = vmatprep.subr.bf16.mxu1 %v9588_v59 }
 0x4fb   : > { %4796 = vmatpush1.bf16.msra.mxu0 %v9589_v44 }
 0x4fc   : > { %5180 = vmatpush1.bf16.msra.mxu1 %v9590_v11  ;;  %4798 = vmatprep.subr.bf16.mxu0 %v9591_v62 }
 0x4fd   : > { %5182 = vmatprep.subr.bf16.mxu1 %v9592_v51 }
 0x4ff   : > { %4800 = vmatpush1.bf16.msra.mxu0 %v9593_v50 }
 0x500   : > { %5184 = vmatpush1.bf16.msra.mxu1 %v9594_v30  ;;  %4802 = vmatprep.subr.bf16.mxu0 %v9595_v58 }
 0x501   : > { %5186 = vmatprep.subr.bf16.mxu1 %v9596_v54 }
 0x503   : > { %4804 = vmatpush1.bf16.msra.mxu0 %v9597_v43 }
 0x504   : > { %5188 = vmatpush1.bf16.msra.mxu1 %v9598_v42  ;;  %4806 = vmatprep.subr.bf16.mxu0 %v9599_v23 }
 0x505   : > { %5190 = vmatprep.subr.bf16.mxu1 %v9600_v13 }
 0x507   : > { %4808 = vmatpush1.bf16.msra.mxu0 %v9601_v17 }
 0x508   : > { %5192 = vmatpush1.bf16.msra.mxu1 %v9602_v14 }
 0x50a   : > { %2796 = vmatmul.mubr.f32.vlgmr.msra.gmra.mrb[2].mxu0 %v9539_v19 }
 0x50b   : > { %4080 = vmatmul.mubr.f32.vlgmr.msra.gmra.mrb[4].mxu1 %v9540_v29 }
 0x5dd   : > { %v2797_v38 = vpop.f32.mrb[2].mxu0 }
 0x5de   : > { %v4081_v35 = vpop.f32.mrb[4].mxu1  ;;  %v2799_v5 = vpop.f32.mrb[3].mxu0 }
 0x5df   : > { %v5194_v40 = vadd.f32 %v4081_v35, %v2797_v38  ;;  %v4083_v41 = vpop.f32.mrb[5].mxu1 }
 0x5e0   : > { %v5195_v33 = vadd.f32 %v4083_v41, %v2799_v5 }
 0x5e1   : > { %v4242_v46 = vmul.f32 -1.442695, %v5194_v40 }
 0x5e2   : > { %v4243_v63 = vmul.f32 -1.442695, %v5195_v33 }
 0x5e3   : > { %5312 = vpow2.f32 %v4242_v46 }
 0x5e4   : > { %5314 = vpow2.f32 %v4243_v63 }
 0x5ed   : > { %v5313_v47 = vpop.eup %5312 }
 0x5ee   : > { %v5315_v8 = vpop.eup %5314  ;;  %v4092_v27 = vadd.f32 1.0, %v5313_v47 }
 0x5ef   : > { %v4093_v26 = vadd.f32 1.0, %v5315_v8 }
 0x5f0   : > { %5316 = vrcp.f32 %v4092_v27 }
 0x5f1   : > { %5318 = vrcp.f32 %v4093_v26 }
 0x5fa   : > { %v5317_v19 = vpop.eup %5316 }
 0x5fb   : > { %v5319_v29 = vpop.eup %5318  ;;  %v4101_v21 = vrot.slane %v5317_v19, %v9603_v18 }
 0x5fc   : > { %v4105_v37 = vrot.slane %v5319_v29, %v9603_v18 }
 0x5fd   : > { %v4106_v48 = vmul.f32 %v4101_v21, %v9604_v53  ;;  %v4108_v24 = vmul.f32 %v4101_v21, %v9605_v1  ;;  %v4110_v22 = vmul.f32 %v4101_v21, %v9606_v32  ;;  %v4112_v2 = vmul.f32 %v4101_v21, %v9607_v39 }
 0x5fe   : > { %v4107_v0 = vmul.f32 %v4105_v37, %v9608_v16  ;;  %v4109_v10 = vmul.f32 %v4105_v37, %v9609_v36  ;;  %v4111_v4 = vmul.f32 %v4105_v37, %v9610_v7  ;;  %v4113_v28 = vmul.f32 %v4105_v37, %v9611_v9 }
 0x5ff   : > { %4114 = vst [vmem:[%s271_s7] sm:$0xff] %v4106_v48  ;;  %4116 = vst [vmem:[%s271_s7 + $0x10] sm:$0xff] %v4108_v24 }
 0x600   : > { %4118 = vst [vmem:[%s271_s7 + $0x20] sm:$0xff] %v4110_v22  ;;  %4120 = vst [vmem:[%s271_s7 + $0x30] sm:$0xff] %v4112_v2 }
 0x601   : > { %4115 = vst [vmem:[%s271_s7 + $0x8] sm:$0xff] %v4107_v0  ;;  %4117 = vst [vmem:[%s271_s7 + $0x18] sm:$0xff] %v4109_v10 }
 0x602   : > { %4119 = vst [vmem:[%s271_s7 + $0x28] sm:$0xff] %v4111_v4  ;;  %4121 = vst [vmem:[%s271_s7 + $0x38] sm:$0xff] %v4113_v28 }
 0x603   : > { %5427 = shalt.err (!%p5424_p1)
}
 0x604   : > { %s5428_s28 = scalar_lea.hbm %s8061_s22, 1024  ;;  %s5432_s30 = scalar_lea.hbm %s8116_s5, 2048 }
 0x605   : > { %p5429_p13 = scmp.ne.s32.totalorder %s8061_s22, %s5428_s28  ;;  %p5433_p4 = scmp.lt.u32.totalorder %s8061_s22, %s8116_s5 }
 0x606   : > { %p5434_p5 = scmp.lt.u32.totalorder %s5432_s30, %s5428_s28  ;;  %p5436_p11 = scmp.lt.u32.totalorder %s5428_s28, %s8061_s22 }
 0x607   : > { %p5430_p6 = pnand %p5429_p13, %p9612_p0 }
 0x608   : > { %p5435_p8 = por %p5434_p5, %p5433_p4 }
 0x609   : > { %p5431_p10 = pneg %p5430_p6 }
 0x60a   : > { %p5437_p2 = por %p5436_p11, %p5435_p8 }
 0x60c   : > { %p5438_p3 = pnand %p5437_p2, %p5431_p10 }
 0x60e   : > { %5441 = shalt.err (!%p5438_p3)
}
 0x60f   : > { %s5495_s7 = smov 256   ;;  %s5496_s12 = smov 16  }
 0x610   : > { %5244 = dma.vmem_to_hbm [thread:$0]  (%p9612_p0), %s8063_s8, 1024, %s8061_s22, %s4123_s6, %s5495_s7, %s5495_s7, %s5496_s12  }
 0x611 PF: > { %s4151_s24 = sand.u32 1, %s5472_s18   ;;  %p9613_p7 = scmp.ne.s32.totalorder %s8571_s25, 0 }
 0x612   : > { %p9614_p9 = scmp.ge.s32.totalorder %s5484_s21, 2  ;;  %s4152_s26 = scalar_lea.sflag [#allocation4], %s4151_s24 }
 0x614   : > { %p5258_p12 = pnand %p9614_p9, %p9613_p7 }
 0x616   : > { %5467 = dma.done.wait (!%p5258_p12), %s4152_s26, 1024  }
 0x617   : > { %5469 = vsyncadd (!%p5258_p12), %s4152_s26, 4294966272  ;;  %p19_p1 = scmp.ge.s32.totalorder %s5643_s29, 4   ;;  %s9615_s18 = smov %s5476_s19 }
 0x618   : > { %s9616_s19 = smov %s5480_s20  ;;  %s9617_s20 = smov %s5659_s27 }
 0x619   : > { %s9618_s21 = smov %s5643_s29  ;;  %21 = sbr.rel (!%p19_p1) target bundleno = 6 (0x6), region = 93 }
 0x620   :  { %4157 = vsyncpa [#allocation3], 1 }
 0x621   :  { %4159 = vsyncpa [#allocation3 + $0x1], 1 }
 0x622   :  { %4160 = vsyncpa [#allocation6], 1 }
 0x623   :  { %4161 = vsyncpa [#allocation4], 1 }
 0x624   :  { %4163 = vsyncpa [#allocation4 + $0x1], 1 }

</bundles_post_ra>
